<compile_context>
chip_gen: v7x
topology: tpu7x:2x2x1
jax: 0.10.0
libtpu: 0.0.40
codegen_flags: <defaults>
</compile_context>

<pallas_src>
from functools import partial

import jax
import jax.numpy as jnp
from jax import lax
from jax.experimental import pallas as pl
from jax.experimental.pallas import tpu as pltpu

LN_EPS = 1e-5

# packed-vector row indices -------------------------------------------------
# vec_d (8, D):  [pe_b, pe_ln1_w, pe_ln1_b, enc_fw, enc_fb, dec_fw, dec_fb, mask_tok]
# vec_f (2, F):  [pe_ln0_w, pe_ln0_b]
# l_vec (L,6,D): [ln1_w, ln1_b, attn_out_b, ln2_w, ln2_b, ff_out_b]


def _ln(x, w, b):
    """LayerNorm over the last dim (matches nn.LayerNorm, eps=1e-5), f32 math."""
    mu = jnp.mean(x, axis=-1, keepdims=True)
    var = jnp.mean((x - mu) ** 2, axis=-1, keepdims=True)
    return (x - mu) * lax.rsqrt(var + LN_EPS) * w + b


def _gelu_tanh(x):
    # tanh-approx GELU: the tanh goes to the otherwise-idle EUP slot.
    # TODO(synk): exact erf GELU (PyTorch default) differs by ~1e-3 absolute.
    c = 0.7978845608028654  # sqrt(2/pi)
    return 0.5 * x * (1.0 + jnp.tanh(c * (x + 0.044715 * x * x * x)))


# --------------------------------------------------------------- fused kernel
def fused_vit_ae_kernel(
        idx_ref,          # (1, M, 1) int32   mask indices for this batch element
        raw_ref,          # (1, P, F) f32     raw flattened patches
        enc_pos_ref,      # (1, P, D) f32
        dec_pos_ref,      # (1, P, D) f32
        vec_f_ref,        # (2, F)    f32     packed LN(F) weight/bias
        pe_w_ref,         # (F, D)    bf16    patch-embed linear
        vec_d_ref,        # (8, D)    f32     packed small D-vectors
        l_wq_ref,         # (L, H, D, dh) bf16
        l_wk_ref,         # (L, H, D, dh) bf16
        l_wv_ref,         # (L, H, D, dh) bf16
        l_wo_ref,         # (L, H, dh, D) bf16
        l_vec_ref,        # (L, 6, D) f32
        l_w1_ref,         # (L, D, FF) bf16
        l_b1_ref,         # (L, 1, FF) f32
        l_w2_ref,         # (L, FF, D) bf16
        proj_w_ref,       # (D, F_pad) bf16   pixel projection (lane-padded to 128)
        proj_b_ref,       # (1, F_pad) f32
        o_ref,            # (1, P, F_pad) f32
        *, depth, heads, dim_head, num_mask):
    P = raw_ref.shape[1]
    D = enc_pos_ref.shape[2]
    M = num_mask
    scale = float(dim_head) ** -0.5
    bf16 = jnp.bfloat16

    # ---- unpack small vectors (static sublane slices of packed slabs) ------
    vec_d = vec_d_ref[...]
    pe_b, pe_ln1_w, pe_ln1_b = vec_d[0:1], vec_d[1:2], vec_d[2:3]
    enc_fw, enc_fb = vec_d[3:4], vec_d[4:5]
    dec_fw, dec_fb = vec_d[5:6], vec_d[6:7]
    mask_tok = vec_d[7:8]
    vec_f = vec_f_ref[...]
    pe_ln0_w, pe_ln0_b = vec_f[0:1], vec_f[1:2]

    # ---- encoder.flatten_to_patches: LN -> Linear -> LN -> +pos ------------
    pat = _ln(raw_ref[0], pe_ln0_w, pe_ln0_b)                              # (P, F)
    emb = jnp.dot(pat.astype(bf16), pe_w_ref[...],
                  preferred_element_type=jnp.float32) + pe_b
    emb = _ln(emb, pe_ln1_w, pe_ln1_b) + enc_pos_ref[0]                    # (P, D)

    # ---- masked gather: one vectorized one-hot compare, exact f32 matmul ---
    idx_col = idx_ref[0]                                                   # (M, 1)
    col = lax.broadcasted_iota(jnp.int32, (M, P), 1)
    sel_oh = (col == idx_col).astype(jnp.float32)                          # (M, P)
    sel = jnp.dot(sel_oh, emb, preferred_element_type=jnp.float32)         # (M, D)

    # ---- one (Attention + FeedForward) block, layer l (static) -------------
    def block(x, l):
        n = x.shape[0]
        lv = l_vec_ref[l]                                                  # (6, D)
        xn = _ln(x, lv[0:1], lv[1:2])
        xb = jnp.broadcast_to(xn.astype(bf16)[None], (heads, n, D))        # (H,n,D)
        # head axis stays the leading batch dim for every matmul -> no relayouts
        q = jnp.einsum('hnd,hde->hne', xb, l_wq_ref[l],
                       preferred_element_type=jnp.float32) * scale
        k = jnp.einsum('hnd,hde->hne', xb, l_wk_ref[l],
                       preferred_element_type=jnp.float32)
        v = jnp.einsum('hnd,hde->hne', xb, l_wv_ref[l],
                       preferred_element_type=jnp.float32)
        dots = jnp.einsum('hqe,hke->hqk', q.astype(bf16), k.astype(bf16),
                          preferred_element_type=jnp.float32)              # (H,n,n)
        dots = dots - jnp.max(dots, axis=-1, keepdims=True)
        e = jnp.exp(dots)
        attn = e * pl.reciprocal(jnp.sum(e, axis=-1, keepdims=True), approx=True)
        ctx = jnp.einsum('hqk,hke->hqe', attn.astype(bf16), v.astype(bf16),
                         preferred_element_type=jnp.float32)               # (H,n,dh)
        out_h = jnp.einsum('hqe,hed->hqd', ctx.astype(bf16), l_wo_ref[l],
                           preferred_element_type=jnp.float32)             # (H,n,D)
        x = x + jnp.sum(out_h, axis=0) + lv[2:3]
        # feed-forward: LN -> Linear -> GELU(tanh) -> Linear
        xn2 = _ln(x, lv[3:4], lv[4:5])
        h1 = jnp.dot(xn2.astype(bf16), l_w1_ref[l],
                     preferred_element_type=jnp.float32) + l_b1_ref[l]
        h1 = _gelu_tanh(h1)
        return x + jnp.dot(h1.astype(bf16), l_w2_ref[l],
                           preferred_element_type=jnp.float32) + lv[5:6]

    # ---- encoder transformer on the selected patches -----------------------
    # TODO(synk): switch to lax.fori_loop with dynamic layer indexing (and stream
    # per-layer weights on an "arbitrary" grid axis) once depth / D grow.
    z = sel
    for l in range(depth):
        z = block(z, l)
    z = _ln(z, enc_fw, enc_fb)                                             # (M, D)

    # ---- scatter onto mask tokens (assignment for unique indices) ----------
    # y[p] = mask_tok + sum_m sel_oh[m,p] * (z[m] - mask_tok)
    scat = lax.dot_general(sel_oh, z - mask_tok, (((0,), (0,)), ((), ())),
                           preferred_element_type=jnp.float32)             # (P, D)
    y = scat + mask_tok + dec_pos_ref[0]

    # ---- decoder transformer + final LN -------------------------------------
    for l in range(depth):
        y = block(y, depth + l)
    y = _ln(y, dec_fw, dec_fb)

    # ---- project to pixels: lane-dense (P, 128) unmasked store --------------
    o_ref[0] = jnp.dot(y.astype(bf16), proj_w_ref[...],
                       preferred_element_type=jnp.float32) + proj_b_ref[...]


# ----------------------------------------------------------------- call glue
def _estimate_cost(B, P, F, F_pad, D, M, depth, heads, dim_head, ff, weight_bytes):
    inner = heads * dim_head

    def blk(n):
        return (6 * n * D * inner                 # q, k, v projections
                + 4 * heads * n * n * dim_head    # QK^T and attn@V
                + 2 * n * inner * D               # output projection
                + 4 * n * D * ff)                 # MLP (two matmuls)

    flops = B * (2 * P * F * D
                 + depth * (blk(M) + blk(P))
                 + 4 * M * P * D
                 + 2 * P * D * F_pad)
    trans = B * depth * (heads * (M * M + P * P) + (M + P) * ff)
    bytes_accessed = weight_bytes + B * (P * F * 4 + P * F_pad * 4 + M * 4)
    return pl.CostEstimate(flops=int(flops), transcendentals=int(trans),
                           bytes_accessed=int(bytes_accessed))


def fused_forward_call(raw, mask_indices, kp, *, depth, heads, dim_head):
    B, P, F = raw.shape
    D = kp["enc_pos"].shape[-1]
    M = mask_indices.shape[1]
    FF = kp["l_w1"].shape[-1]
    F_pad = kp["proj_w"].shape[-1]

    idx3 = mask_indices.astype(jnp.int32)[:, :, None]                 # (B, M, 1)

    weights = (kp["enc_pos"], kp["dec_pos"], kp["vec_f"], kp["pe_w"], kp["vec_d"],
               kp["l_wq"], kp["l_wk"], kp["l_wv"], kp["l_wo"], kp["l_vec"],
               kp["l_w1"], kp["l_b1"], kp["l_w2"], kp["proj_w"], kp["proj_b"])

    in_specs = [
        pl.BlockSpec((1, M, 1), lambda b: (b, 0, 0)),                 # mask indices
        pl.BlockSpec((1, P, F), lambda b: (b, 0, 0)),                 # raw patches
    ]
    for w in weights:                                                 # grid-invariant
        in_specs.append(pl.BlockSpec(w.shape, lambda b, _n=w.ndim: (0,) * _n))
    # TODO(synk): at real ViT sizes (v7x 64MiB VMEM), move the layer axis of the
    # stacked l_* weights onto an "arbitrary" grid axis so layers stream from HBM.

    weight_bytes = sum(int(w.size) * w.dtype.itemsize for w in weights)
    cost = _estimate_cost(B, P, F, F_pad, D, M, depth, heads, dim_head, FF,
                          weight_bytes)

    kern = partial(fused_vit_ae_kernel, depth=depth, heads=heads,
                   dim_head=dim_head, num_mask=M)

    out = pl.pallas_call(
        kern,
        grid_spec=pltpu.PrefetchScalarGridSpec(
            num_scalar_prefetch=0,
            grid=(B,),
            in_specs=in_specs,
            out_specs=pl.BlockSpec((1, P, F_pad), lambda b: (b, 0, 0)),
        ),
        out_shape=jax.ShapeDtypeStruct((B, P, F_pad), jnp.float32),
        compiler_params=pltpu.CompilerParams(
            dimension_semantics=("parallel",),     # batch -> both TCs on v7x
            vmem_limit_bytes=48 * 1024 * 1024),
        cost_estimate=cost,
    )(idx3, raw, *weights)
    return out[:, :, :F]                           # strip lane padding (plain JAX)


# ------------------------------------------------------------- rearranges
def flatten_to_patches_raw(x, ph, pw):
    # 'n c (h ph) (w pw) -> n (h w) (ph pw c)'   (layout plumbing, plain JAX)
    B, C, H, W = x.shape
    h, w = H // ph, W // pw
    x = x.reshape(B, C, h, ph, w, pw).transpose(0, 2, 4, 3, 5, 1)
    return x.reshape(B, h * w, ph * pw * C)


def patches_to_image(p, ph, pw, C, H, W):
    # 'n (h w) (ph pw c) -> n c (h ph) (w pw)'
    B = p.shape[0]
    h, w = H // ph, W // pw
    x = p.reshape(B, h, w, ph, pw, C).transpose(0, 5, 1, 3, 2, 4)
    return x.reshape(B, C, H, W)


# ------------------------------------------------------------------ params
def init_params(key, C, IMG, PATCH, D, HEADS, DEPTH, FF):
    """Random params mirroring SimpleViTAEwM (linears stored as (in, out))."""
    P = (IMG // PATCH) ** 2
    F = C * PATCH * PATCH
    dim_head = HEADS                      # TransEncoder passes heads as dim_head
    inner = HEADS * dim_head
    L = 2 * DEPTH                         # encoder layers then decoder layers
    ks = iter(jax.random.split(key, 20))
    nrm = lambda shape, s=0.02: s * jax.random.normal(next(ks), shape, jnp.float32)
    ones = lambda shape: jnp.ones(shape, jnp.float32)
    zeros = lambda shape: jnp.zeros(shape, jnp.float32)
    return dict(
        enc_pos=nrm((1, P, D), 1.0), dec_pos=nrm((1, P, D), 1.0),
        pe_ln0_w=ones((F,)), pe_ln0_b=zeros((F,)),
        pe_w=nrm((F, D)), pe_b=zeros((D,)),
        pe_ln1_w=ones((D,)), pe_ln1_b=zeros((D,)),
        ln1_w=ones((L, D)), ln1_b=zeros((L, D)),
        wqkv=nrm((L, D, 3 * inner)),
        wo=nrm((L, inner, D)), bo=zeros((L, D)),
        ln2_w=ones((L, D)), ln2_b=zeros((L, D)),
        w1=nrm((L, D, FF)), b1=zeros((L, FF)),
        w2=nrm((L, FF, D)), b2=zeros((L, D)),
        enc_final_w=ones((D,)), enc_final_b=zeros((D,)),
        dec_final_w=ones((D,)), dec_final_b=zeros((D,)),
        mask_token=nrm((D,), 1.0),
        proj_w=nrm((D, F)), proj_b=zeros((F,)),
    )


def pack_params(p, *, heads, dim_head):
    """Pack module params into the kernel layout (bf16 matmul weights, packed vecs)."""
    bf16 = jnp.bfloat16
    L = p["wqkv"].shape[0]
    inner = heads * dim_head

    def per_head_cols(w):                 # (L, D, inner) -> (L, H, D, dh)
        Lw, Dw, _ = w.shape
        return w.reshape(Lw, Dw, heads, dim_head).transpose(0, 2, 1, 3)

    l_wq = per_head_cols(p["wqkv"][:, :, 0 * inner:1 * inner]).astype(bf16)
    l_wk = per_head_cols(p["wqkv"][:, :, 1 * inner:2 * inner]).astype(bf16)
    l_wv = per_head_cols(p["wqkv"][:, :, 2 * inner:3 * inner]).astype(bf16)
    l_wo = p["wo"].reshape(L, heads, dim_head, -1).astype(bf16)   # (L, H, dh, D)
    l_vec = jnp.stack([p["ln1_w"], p["ln1_b"], p["bo"],
                       p["ln2_w"], p["ln2_b"], p["b2"]], axis=1)  # (L, 6, D)
    vec_d = jnp.stack([p["pe_b"], p["pe_ln1_w"], p["pe_ln1_b"],
                       p["enc_final_w"], p["enc_final_b"],
                       p["dec_final_w"], p["dec_final_b"], p["mask_token"]], axis=0)
    vec_f = jnp.stack([p["pe_ln0_w"], p["pe_ln0_b"]], axis=0)

    D, F = p["proj_w"].shape
    f_pad = max(128, ((F + 127) // 128) * 128)                    # lane-dense output
    proj_w = jnp.zeros((D, f_pad), jnp.float32).at[:, :F].set(p["proj_w"]).astype(bf16)
    proj_b = jnp.zeros((1, f_pad), jnp.float32).at[:, :F].set(p["proj_b"][None, :])

    return dict(
        enc_pos=p["enc_pos"], dec_pos=p["dec_pos"],
        vec_f=vec_f, pe_w=p["pe_w"].astype(bf16), vec_d=vec_d,
        l_wq=l_wq, l_wk=l_wk, l_wv=l_wv, l_wo=l_wo, l_vec=l_vec,
        l_w1=p["w1"].astype(bf16), l_b1=p["b1"][:, None, :],
        l_w2=p["w2"].astype(bf16),
        proj_w=proj_w, proj_b=proj_b)


# ----------------------------------------------------------------- forward
def simple_vit_ae_forward(params, x, mask_indices, *, PATCH, DEPTH, HEADS):
    B, C, H, W = x.shape
    kp = pack_params(params, heads=HEADS, dim_head=HEADS)
    raw = flatten_to_patches_raw(x, PATCH, PATCH)                 # (B, P, F)
    flat = fused_forward_call(raw, mask_indices, kp,
                              depth=DEPTH, heads=HEADS, dim_head=HEADS)
    return patches_to_image(flat, PATCH, PATCH, C, H, W)


# -------------------------------------------------------------------- main
if __name__ == "__main__":
    B, C, IMG, PATCH = 2, 4, 16, 4          # 16 patches of 4x4x4 = 64 features
    D, HEADS, DEPTH, FF = 32, 4, 2, 64      # dim_head == heads (TransEncoder quirk)
    P = (IMG // PATCH) ** 2
    NUM_MASK = 8

    key = jax.random.PRNGKey(0)
    k_params, k_x, k_idx = jax.random.split(key, 3)

    params = init_params(k_params, C, IMG, PATCH, D, HEADS, DEPTH, FF)
    x = jax.random.normal(k_x, (B, C, IMG, IMG), jnp.float32)
    idx_keys = jax.random.split(k_idx, B)
    mask_indices = jnp.stack(
        [jax.random.permutation(k, P)[:NUM_MASK] for k in idx_keys]
    ).astype(jnp.int32)                                           # (B, NUM_MASK)

    fwd = jax.jit(partial(simple_vit_ae_forward,
                          PATCH=PATCH, DEPTH=DEPTH, HEADS=HEADS))
    out = fwd(params, x, mask_indices)
    jax.block_until_ready(out)
    assert out.shape == (B, C, IMG, IMG) and out.dtype == jnp.float32
    assert bool(jnp.all(jnp.isfinite(out)))
    print("KERNEL_OK")
</pallas_src>

<mosaic_0001>
module attributes {stable_mosaic.version = 11 : i64} {
  func.func @fused_vit_ae_kernel(%arg0: i32, %arg1: memref<1x8x1xi32, #tpu.memory_space<vmem>>, %arg2: memref<1x16x64xf32, #tpu.memory_space<vmem>>, %arg3: memref<1x16x32xf32, #tpu.memory_space<vmem>>, %arg4: memref<1x16x32xf32, #tpu.memory_space<vmem>>, %arg5: memref<2x64xf32, #tpu.memory_space<vmem>>, %arg6: memref<64x32xbf16, #tpu.memory_space<vmem>>, %arg7: memref<8x32xf32, #tpu.memory_space<vmem>>, %arg8: memref<4x4x32x4xbf16, #tpu.memory_space<vmem>>, %arg9: memref<4x4x32x4xbf16, #tpu.memory_space<vmem>>, %arg10: memref<4x4x32x4xbf16, #tpu.memory_space<vmem>>, %arg11: memref<4x4x4x32xbf16, #tpu.memory_space<vmem>>, %arg12: memref<4x6x32xf32, #tpu.memory_space<vmem>>, %arg13: memref<4x32x64xbf16, #tpu.memory_space<vmem>>, %arg14: memref<4x1x64xf32, #tpu.memory_space<vmem>>, %arg15: memref<4x64x32xbf16, #tpu.memory_space<vmem>>, %arg16: memref<32x128xbf16, #tpu.memory_space<vmem>>, %arg17: memref<1x128xf32, #tpu.memory_space<vmem>>, %arg18: memref<1x16x128xf32, #tpu.memory_space<vmem>>) attributes {dimension_semantics = [#tpu.dimension_semantics<parallel>], iteration_bounds = array<i64: 2>, scalar_prefetch = 0 : i64, scratch_operands = 0 : i64, tpu.core_type = #tpu.core_type<tc>, window_params = [{transform_indices = @transform_0, window_bounds = array<i64: 1, 8, 1>}, {transform_indices = @transform_1, window_bounds = array<i64: 1, 16, 64>}, {pipeline_mode = #tpu.pipeline_mode<synchronous>, transform_indices = @transform_2, window_bounds = array<i64: 1, 16, 32>}, {pipeline_mode = #tpu.pipeline_mode<synchronous>, transform_indices = @transform_3, window_bounds = array<i64: 1, 16, 32>}, {pipeline_mode = #tpu.pipeline_mode<synchronous>, transform_indices = @transform_4, window_bounds = array<i64: 2, 64>}, {pipeline_mode = #tpu.pipeline_mode<synchronous>, transform_indices = @transform_5, window_bounds = array<i64: 64, 32>}, {pipeline_mode = #tpu.pipeline_mode<synchronous>, transform_indices = @transform_6, window_bounds = array<i64: 8, 32>}, {pipeline_mode = #tpu.pipeline_mode<synchronous>, transform_indices = @transform_7, window_bounds = array<i64: 4, 4, 32, 4>}, {pipeline_mode = #tpu.pipeline_mode<synchronous>, transform_indices = @transform_8, window_bounds = array<i64: 4, 4, 32, 4>}, {pipeline_mode = #tpu.pipeline_mode<synchronous>, transform_indices = @transform_9, window_bounds = array<i64: 4, 4, 32, 4>}, {pipeline_mode = #tpu.pipeline_mode<synchronous>, transform_indices = @transform_10, window_bounds = array<i64: 4, 4, 4, 32>}, {pipeline_mode = #tpu.pipeline_mode<synchronous>, transform_indices = @transform_11, window_bounds = array<i64: 4, 6, 32>}, {pipeline_mode = #tpu.pipeline_mode<synchronous>, transform_indices = @transform_12, window_bounds = array<i64: 4, 32, 64>}, {pipeline_mode = #tpu.pipeline_mode<synchronous>, transform_indices = @transform_13, window_bounds = array<i64: 4, 1, 64>}, {pipeline_mode = #tpu.pipeline_mode<synchronous>, transform_indices = @transform_14, window_bounds = array<i64: 4, 64, 32>}, {pipeline_mode = #tpu.pipeline_mode<synchronous>, transform_indices = @transform_15, window_bounds = array<i64: 32, 128>}, {pipeline_mode = #tpu.pipeline_mode<synchronous>, transform_indices = @transform_16, window_bounds = array<i64: 1, 128>}, {transform_indices = @transform_17, window_bounds = array<i64: 1, 16, 128>}]} {
    %c0 = arith.constant 0 : index
    %c0_0 = arith.constant 0 : index
    %0 = vector.load %arg7[%c0, %c0_0] : memref<8x32xf32, #tpu.memory_space<vmem>>, vector<8x32xf32>
    %1 = vector.extract_strided_slice %0 {offsets = [0, 0], sizes = [1, 32], strides = [1, 1]} : vector<8x32xf32> to vector<1x32xf32>
    %2 = vector.extract_strided_slice %0 {offsets = [1, 0], sizes = [1, 32], strides = [1, 1]} : vector<8x32xf32> to vector<1x32xf32>
    %3 = vector.extract_strided_slice %0 {offsets = [2, 0], sizes = [1, 32], strides = [1, 1]} : vector<8x32xf32> to vector<1x32xf32>
    %4 = vector.extract_strided_slice %0 {offsets = [3, 0], sizes = [1, 32], strides = [1, 1]} : vector<8x32xf32> to vector<1x32xf32>
    %5 = vector.extract_strided_slice %0 {offsets = [4, 0], sizes = [1, 32], strides = [1, 1]} : vector<8x32xf32> to vector<1x32xf32>
    %6 = vector.extract_strided_slice %0 {offsets = [5, 0], sizes = [1, 32], strides = [1, 1]} : vector<8x32xf32> to vector<1x32xf32>
    %7 = vector.extract_strided_slice %0 {offsets = [6, 0], sizes = [1, 32], strides = [1, 1]} : vector<8x32xf32> to vector<1x32xf32>
    %8 = vector.extract_strided_slice %0 {offsets = [7, 0], sizes = [1, 32], strides = [1, 1]} : vector<8x32xf32> to vector<1x32xf32>
    %c0_1 = arith.constant 0 : index
    %c0_2 = arith.constant 0 : index
    %9 = vector.load %arg5[%c0_1, %c0_2] : memref<2x64xf32, #tpu.memory_space<vmem>>, vector<2x64xf32>
    %10 = vector.extract_strided_slice %9 {offsets = [0, 0], sizes = [1, 64], strides = [1, 1]} : vector<2x64xf32> to vector<1x64xf32>
    %11 = vector.extract_strided_slice %9 {offsets = [1, 0], sizes = [1, 64], strides = [1, 1]} : vector<2x64xf32> to vector<1x64xf32>
    %c0_3 = arith.constant 0 : index
    %c0_4 = arith.constant 0 : index
    %c0_5 = arith.constant 0 : index
    %12 = vector.load %arg2[%c0_3, %c0_4, %c0_5] : memref<1x16x64xf32, #tpu.memory_space<vmem>>, vector<1x16x64xf32>
    %13 = vector.shape_cast %12 : vector<1x16x64xf32> to vector<16x64xf32>
    %cst = arith.constant dense<0.000000e+00> : vector<16xf32>
    %14 = vector.multi_reduction <add>, %13, %cst [1] : vector<16x64xf32> to vector<16xf32>
    %15 = vector.shape_cast %14 : vector<16xf32> to vector<16x1xf32>
    %cst_6 = arith.constant 6.400000e+01 : f32
    %16 = vector.broadcast %cst_6 : f32 to vector<16x1xf32>
    %17 = arith.divf %15, %16 : vector<16x1xf32>
    %18 = vector.broadcast %17 : vector<16x1xf32> to vector<16x64xf32>
    %19 = arith.subf %13, %18 : vector<16x64xf32>
    %20 = arith.mulf %19, %19 : vector<16x64xf32>
    %cst_7 = arith.constant dense<0.000000e+00> : vector<16xf32>
    %21 = vector.multi_reduction <add>, %20, %cst_7 [1] : vector<16x64xf32> to vector<16xf32>
    %22 = vector.shape_cast %21 : vector<16xf32> to vector<16x1xf32>
    %cst_8 = arith.constant 6.400000e+01 : f32
    %23 = vector.broadcast %cst_8 : f32 to vector<16x1xf32>
    %24 = arith.divf %22, %23 : vector<16x1xf32>
    %25 = vector.broadcast %17 : vector<16x1xf32> to vector<16x64xf32>
    %26 = arith.subf %13, %25 : vector<16x64xf32>
    %cst_9 = arith.constant 9.99999974E-6 : f32
    %27 = vector.broadcast %cst_9 : f32 to vector<16x1xf32>
    %28 = arith.addf %24, %27 : vector<16x1xf32>
    %29 = math.rsqrt %28 : vector<16x1xf32>
    %30 = vector.broadcast %29 : vector<16x1xf32> to vector<16x64xf32>
    %31 = arith.mulf %26, %30 : vector<16x64xf32>
    %32 = vector.broadcast %10 : vector<1x64xf32> to vector<16x64xf32>
    %33 = arith.mulf %31, %32 : vector<16x64xf32>
    %34 = vector.broadcast %11 : vector<1x64xf32> to vector<16x64xf32>
    %35 = arith.addf %33, %34 : vector<16x64xf32>
    %36 = arith.truncf %35 : vector<16x64xf32> to vector<16x64xbf16>
    %c0_10 = arith.constant 0 : index
    %c0_11 = arith.constant 0 : index
    %37 = vector.load %arg6[%c0_10, %c0_11] : memref<64x32xbf16, #tpu.memory_space<vmem>>, vector<64x32xbf16>
    %cst_12 = arith.constant dense<0.000000e+00> : vector<16x32xf32>
    %38 = tpu.matmul %36, %37, %cst_12 {dimension_numbers = #tpu.dot_dimension_numbers<[1], [0], [0], [1], [0, 0, 1, 1], [], []>} : vector<16x64xbf16>, vector<64x32xbf16>, vector<16x32xf32> -> vector<16x32xf32>
    %39 = vector.broadcast %1 : vector<1x32xf32> to vector<16x32xf32>
    %40 = arith.addf %38, %39 : vector<16x32xf32>
    %cst_13 = arith.constant dense<0.000000e+00> : vector<16xf32>
    %41 = vector.multi_reduction <add>, %40, %cst_13 [1] : vector<16x32xf32> to vector<16xf32>
    %42 = vector.shape_cast %41 : vector<16xf32> to vector<16x1xf32>
    %cst_14 = arith.constant 3.200000e+01 : f32
    %43 = vector.broadcast %cst_14 : f32 to vector<16x1xf32>
    %44 = arith.divf %42, %43 : vector<16x1xf32>
    %45 = vector.broadcast %44 : vector<16x1xf32> to vector<16x32xf32>
    %46 = arith.subf %40, %45 : vector<16x32xf32>
    %47 = arith.mulf %46, %46 : vector<16x32xf32>
    %cst_15 = arith.constant dense<0.000000e+00> : vector<16xf32>
    %48 = vector.multi_reduction <add>, %47, %cst_15 [1] : vector<16x32xf32> to vector<16xf32>
    %49 = vector.shape_cast %48 : vector<16xf32> to vector<16x1xf32>
    %cst_16 = arith.constant 3.200000e+01 : f32
    %50 = vector.broadcast %cst_16 : f32 to vector<16x1xf32>
    %51 = arith.divf %49, %50 : vector<16x1xf32>
    %52 = vector.broadcast %44 : vector<16x1xf32> to vector<16x32xf32>
    %53 = arith.subf %40, %52 : vector<16x32xf32>
    %cst_17 = arith.constant 9.99999974E-6 : f32
    %54 = vector.broadcast %cst_17 : f32 to vector<16x1xf32>
    %55 = arith.addf %51, %54 : vector<16x1xf32>
    %56 = math.rsqrt %55 : vector<16x1xf32>
    %57 = vector.broadcast %56 : vector<16x1xf32> to vector<16x32xf32>
    %58 = arith.mulf %53, %57 : vector<16x32xf32>
    %59 = vector.broadcast %2 : vector<1x32xf32> to vector<16x32xf32>
    %60 = arith.mulf %58, %59 : vector<16x32xf32>
    %61 = vector.broadcast %3 : vector<1x32xf32> to vector<16x32xf32>
    %62 = arith.addf %60, %61 : vector<16x32xf32>
    %c0_18 = arith.constant 0 : index
    %c0_19 = arith.constant 0 : index
    %c0_20 = arith.constant 0 : index
    %63 = vector.load %arg3[%c0_18, %c0_19, %c0_20] : memref<1x16x32xf32, #tpu.memory_space<vmem>>, vector<1x16x32xf32>
    %64 = vector.shape_cast %63 : vector<1x16x32xf32> to vector<16x32xf32>
    %65 = arith.addf %62, %64 : vector<16x32xf32>
    %c0_21 = arith.constant 0 : index
    %c0_22 = arith.constant 0 : index
    %c0_23 = arith.constant 0 : index
    %66 = vector.load %arg1[%c0_21, %c0_22, %c0_23] : memref<1x8x1xi32, #tpu.memory_space<vmem>>, vector<1x8x1xi32>
    %67 = vector.shape_cast %66 : vector<1x8x1xi32> to vector<8x1xi32>
    %68 = tpu.iota {dimensions = array<i32: 1>} : vector<8x16xi32>
    %69 = vector.broadcast %67 : vector<8x1xi32> to vector<8x16xi32>
    %70 = arith.cmpi eq, %68, %69 : vector<8x16xi32>
    %71 = arith.extui %70 : vector<8x16xi1> to vector<8x16xi32>
    %72 = arith.sitofp %71 : vector<8x16xi32> to vector<8x16xf32>
    %cst_24 = arith.constant dense<0.000000e+00> : vector<8x32xf32>
    %73 = tpu.matmul %72, %65, %cst_24 {dimension_numbers = #tpu.dot_dimension_numbers<[1], [0], [0], [1], [0, 0, 1, 1], [], []>} : vector<8x16xf32>, vector<16x32xf32>, vector<8x32xf32> -> vector<8x32xf32>
    %c0_25 = arith.constant 0 : index
    %c0_26 = arith.constant 0 : index
    %c0_27 = arith.constant 0 : index
    %74 = vector.load %arg12[%c0_25, %c0_26, %c0_27] : memref<4x6x32xf32, #tpu.memory_space<vmem>>, vector<1x6x32xf32>
    %75 = vector.shape_cast %74 : vector<1x6x32xf32> to vector<6x32xf32>
    %76 = vector.extract_strided_slice %75 {offsets = [0, 0], sizes = [1, 32], strides = [1, 1]} : vector<6x32xf32> to vector<1x32xf32>
    %77 = vector.extract_strided_slice %75 {offsets = [1, 0], sizes = [1, 32], strides = [1, 1]} : vector<6x32xf32> to vector<1x32xf32>
    %cst_28 = arith.constant dense<0.000000e+00> : vector<8xf32>
    %78 = vector.multi_reduction <add>, %73, %cst_28 [1] : vector<8x32xf32> to vector<8xf32>
    %79 = vector.shape_cast %78 : vector<8xf32> to vector<8x1xf32>
    %cst_29 = arith.constant 3.200000e+01 : f32
    %80 = vector.broadcast %cst_29 : f32 to vector<8x1xf32>
    %81 = arith.divf %79, %80 : vector<8x1xf32>
    %82 = vector.broadcast %81 : vector<8x1xf32> to vector<8x32xf32>
    %83 = arith.subf %73, %82 : vector<8x32xf32>
    %84 = arith.mulf %83, %83 : vector<8x32xf32>
    %cst_30 = arith.constant dense<0.000000e+00> : vector<8xf32>
    %85 = vector.multi_reduction <add>, %84, %cst_30 [1] : vector<8x32xf32> to vector<8xf32>
    %86 = vector.shape_cast %85 : vector<8xf32> to vector<8x1xf32>
    %cst_31 = arith.constant 3.200000e+01 : f32
    %87 = vector.broadcast %cst_31 : f32 to vector<8x1xf32>
    %88 = arith.divf %86, %87 : vector<8x1xf32>
    %89 = vector.broadcast %81 : vector<8x1xf32> to vector<8x32xf32>
    %90 = arith.subf %73, %89 : vector<8x32xf32>
    %cst_32 = arith.constant 9.99999974E-6 : f32
    %91 = vector.broadcast %cst_32 : f32 to vector<8x1xf32>
    %92 = arith.addf %88, %91 : vector<8x1xf32>
    %93 = math.rsqrt %92 : vector<8x1xf32>
    %94 = vector.broadcast %93 : vector<8x1xf32> to vector<8x32xf32>
    %95 = arith.mulf %90, %94 : vector<8x32xf32>
    %96 = vector.broadcast %76 : vector<1x32xf32> to vector<8x32xf32>
    %97 = arith.mulf %95, %96 : vector<8x32xf32>
    %98 = vector.broadcast %77 : vector<1x32xf32> to vector<8x32xf32>
    %99 = arith.addf %97, %98 : vector<8x32xf32>
    %100 = arith.truncf %99 : vector<8x32xf32> to vector<8x32xbf16>
    %101 = vector.shape_cast %100 : vector<8x32xbf16> to vector<1x8x32xbf16>
    %102 = vector.shape_cast %101 : vector<1x8x32xbf16> to vector<1x8x32xbf16>
    %103 = vector.broadcast %102 : vector<1x8x32xbf16> to vector<4x8x32xbf16>
    %c0_33 = arith.constant 0 : index
    %c0_34 = arith.constant 0 : index
    %c0_35 = arith.constant 0 : index
    %c0_36 = arith.constant 0 : index
    %104 = vector.load %arg8[%c0_33, %c0_34, %c0_35, %c0_36] : memref<4x4x32x4xbf16, #tpu.memory_space<vmem>>, vector<1x4x32x4xbf16>
    %105 = vector.shape_cast %104 : vector<1x4x32x4xbf16> to vector<4x32x4xbf16>
    "tpu.trace_start"() <{level = 10 : i32, message = "hnd,hde->hne"}> : () -> ()
    %cst_37 = arith.constant dense<0.000000e+00> : vector<4x8x4xf32>
    %106 = tpu.matmul %103, %105, %cst_37 {dimension_numbers = #tpu.dot_dimension_numbers<[2], [1], [1], [2], [0, 0, 0, 1, 1, 2], [0], [0]>} : vector<4x8x32xbf16>, vector<4x32x4xbf16>, vector<4x8x4xf32> -> vector<4x8x4xf32>
    "tpu.trace_stop"() : () -> ()
    %cst_38 = arith.constant 5.000000e-01 : f32
    %107 = vector.broadcast %cst_38 : f32 to vector<4x8x4xf32>
    %108 = arith.mulf %106, %107 : vector<4x8x4xf32>
    %c0_39 = arith.constant 0 : index
    %c0_40 = arith.constant 0 : index
    %c0_41 = arith.constant 0 : index
    %c0_42 = arith.constant 0 : index
    %109 = vector.load %arg9[%c0_39, %c0_40, %c0_41, %c0_42] : memref<4x4x32x4xbf16, #tpu.memory_space<vmem>>, vector<1x4x32x4xbf16>
    %110 = vector.shape_cast %109 : vector<1x4x32x4xbf16> to vector<4x32x4xbf16>
    "tpu.trace_start"() <{level = 10 : i32, message = "hnd,hde->hne"}> : () -> ()
    %cst_43 = arith.constant dense<0.000000e+00> : vector<4x8x4xf32>
    %111 = tpu.matmul %103, %110, %cst_43 {dimension_numbers = #tpu.dot_dimension_numbers<[2], [1], [1], [2], [0, 0, 0, 1, 1, 2], [0], [0]>} : vector<4x8x32xbf16>, vector<4x32x4xbf16>, vector<4x8x4xf32> -> vector<4x8x4xf32>
    "tpu.trace_stop"() : () -> ()
    %c0_44 = arith.constant 0 : index
    %c0_45 = arith.constant 0 : index
    %c0_46 = arith.constant 0 : index
    %c0_47 = arith.constant 0 : index
    %112 = vector.load %arg10[%c0_44, %c0_45, %c0_46, %c0_47] : memref<4x4x32x4xbf16, #tpu.memory_space<vmem>>, vector<1x4x32x4xbf16>
    %113 = vector.shape_cast %112 : vector<1x4x32x4xbf16> to vector<4x32x4xbf16>
    "tpu.trace_start"() <{level = 10 : i32, message = "hnd,hde->hne"}> : () -> ()
    %cst_48 = arith.constant dense<0.000000e+00> : vector<4x8x4xf32>
    %114 = tpu.matmul %103, %113, %cst_48 {dimension_numbers = #tpu.dot_dimension_numbers<[2], [1], [1], [2], [0, 0, 0, 1, 1, 2], [0], [0]>} : vector<4x8x32xbf16>, vector<4x32x4xbf16>, vector<4x8x4xf32> -> vector<4x8x4xf32>
    "tpu.trace_stop"() : () -> ()
    %115 = arith.truncf %108 : vector<4x8x4xf32> to vector<4x8x4xbf16>
    %116 = arith.truncf %111 : vector<4x8x4xf32> to vector<4x8x4xbf16>
    "tpu.trace_start"() <{level = 10 : i32, message = "hqe,hke->hqk"}> : () -> ()
    %cst_49 = arith.constant dense<0.000000e+00> : vector<4x8x8xf32>
    %117 = tpu.matmul %115, %116, %cst_49 {dimension_numbers = #tpu.dot_dimension_numbers<[2], [2], [1], [1], [0, 0, 0, 1, 1, 1], [0], [0]>} : vector<4x8x4xbf16>, vector<4x8x4xbf16>, vector<4x8x8xf32> -> vector<4x8x8xf32>
    "tpu.trace_stop"() : () -> ()
    %cst_50 = arith.constant dense<0xFF800000> : vector<4x8xf32>
    %118 = vector.multi_reduction <maximumf>, %117, %cst_50 [2] : vector<4x8x8xf32> to vector<4x8xf32>
    %119 = vector.shape_cast %118 : vector<4x8xf32> to vector<4x8x1xf32>
    %120 = vector.broadcast %119 : vector<4x8x1xf32> to vector<4x8x8xf32>
    %121 = arith.subf %117, %120 : vector<4x8x8xf32>
    %122 = math.exp %121 : vector<4x8x8xf32>
    %cst_51 = arith.constant dense<0.000000e+00> : vector<4x8xf32>
    %123 = vector.multi_reduction <add>, %122, %cst_51 [2] : vector<4x8x8xf32> to vector<4x8xf32>
    %124 = vector.shape_cast %123 : vector<4x8xf32> to vector<4x8x1xf32>
    %125 = tpu.reciprocal %124 {approx = true} : vector<4x8x1xf32> -> vector<4x8x1xf32>
    %126 = vector.broadcast %125 : vector<4x8x1xf32> to vector<4x8x8xf32>
    %127 = arith.mulf %122, %126 : vector<4x8x8xf32>
    %128 = arith.truncf %127 : vector<4x8x8xf32> to vector<4x8x8xbf16>
    %129 = arith.truncf %114 : vector<4x8x4xf32> to vector<4x8x4xbf16>
    "tpu.trace_start"() <{level = 10 : i32, message = "hqk,hke->hqe"}> : () -> ()
    %cst_52 = arith.constant dense<0.000000e+00> : vector<4x8x4xf32>
    %130 = tpu.matmul %128, %129, %cst_52 {dimension_numbers = #tpu.dot_dimension_numbers<[2], [1], [1], [2], [0, 0, 0, 1, 1, 2], [0], [0]>} : vector<4x8x8xbf16>, vector<4x8x4xbf16>, vector<4x8x4xf32> -> vector<4x8x4xf32>
    "tpu.trace_stop"() : () -> ()
    %131 = arith.truncf %130 : vector<4x8x4xf32> to vector<4x8x4xbf16>
    %c0_53 = arith.constant 0 : index
    %c0_54 = arith.constant 0 : index
    %c0_55 = arith.constant 0 : index
    %c0_56 = arith.constant 0 : index
    %132 = vector.load %arg11[%c0_53, %c0_54, %c0_55, %c0_56] : memref<4x4x4x32xbf16, #tpu.memory_space<vmem>>, vector<1x4x4x32xbf16>
    %133 = vector.shape_cast %132 : vector<1x4x4x32xbf16> to vector<4x4x32xbf16>
    "tpu.trace_start"() <{level = 10 : i32, message = "hqe,hed->hqd"}> : () -> ()
    %cst_57 = arith.constant dense<0.000000e+00> : vector<4x8x32xf32>
    %134 = tpu.matmul %131, %133, %cst_57 {dimension_numbers = #tpu.dot_dimension_numbers<[2], [1], [1], [2], [0, 0, 0, 1, 1, 2], [0], [0]>} : vector<4x8x4xbf16>, vector<4x4x32xbf16>, vector<4x8x32xf32> -> vector<4x8x32xf32>
    "tpu.trace_stop"() : () -> ()
    %cst_58 = arith.constant dense<0.000000e+00> : vector<8x32xf32>
    %135 = vector.multi_reduction <add>, %134, %cst_58 [0] : vector<4x8x32xf32> to vector<8x32xf32>
    %136 = arith.addf %73, %135 : vector<8x32xf32>
    %137 = vector.extract_strided_slice %75 {offsets = [2, 0], sizes = [1, 32], strides = [1, 1]} : vector<6x32xf32> to vector<1x32xf32>
    %138 = vector.broadcast %137 : vector<1x32xf32> to vector<8x32xf32>
    %139 = arith.addf %136, %138 : vector<8x32xf32>
    %140 = vector.extract_strided_slice %75 {offsets = [3, 0], sizes = [1, 32], strides = [1, 1]} : vector<6x32xf32> to vector<1x32xf32>
    %141 = vector.extract_strided_slice %75 {offsets = [4, 0], sizes = [1, 32], strides = [1, 1]} : vector<6x32xf32> to vector<1x32xf32>
    %cst_59 = arith.constant dense<0.000000e+00> : vector<8xf32>
    %142 = vector.multi_reduction <add>, %139, %cst_59 [1] : vector<8x32xf32> to vector<8xf32>
    %143 = vector.shape_cast %142 : vector<8xf32> to vector<8x1xf32>
    %cst_60 = arith.constant 3.200000e+01 : f32
    %144 = vector.broadcast %cst_60 : f32 to vector<8x1xf32>
    %145 = arith.divf %143, %144 : vector<8x1xf32>
    %146 = vector.broadcast %145 : vector<8x1xf32> to vector<8x32xf32>
    %147 = arith.subf %139, %146 : vector<8x32xf32>
    %148 = arith.mulf %147, %147 : vector<8x32xf32>
    %cst_61 = arith.constant dense<0.000000e+00> : vector<8xf32>
    %149 = vector.multi_reduction <add>, %148, %cst_61 [1] : vector<8x32xf32> to vector<8xf32>
    %150 = vector.shape_cast %149 : vector<8xf32> to vector<8x1xf32>
    %cst_62 = arith.constant 3.200000e+01 : f32
    %151 = vector.broadcast %cst_62 : f32 to vector<8x1xf32>
    %152 = arith.divf %150, %151 : vector<8x1xf32>
    %153 = vector.broadcast %145 : vector<8x1xf32> to vector<8x32xf32>
    %154 = arith.subf %139, %153 : vector<8x32xf32>
    %cst_63 = arith.constant 9.99999974E-6 : f32
    %155 = vector.broadcast %cst_63 : f32 to vector<8x1xf32>
    %156 = arith.addf %152, %155 : vector<8x1xf32>
    %157 = math.rsqrt %156 : vector<8x1xf32>
    %158 = vector.broadcast %157 : vector<8x1xf32> to vector<8x32xf32>
    %159 = arith.mulf %154, %158 : vector<8x32xf32>
    %160 = vector.broadcast %140 : vector<1x32xf32> to vector<8x32xf32>
    %161 = arith.mulf %159, %160 : vector<8x32xf32>
    %162 = vector.broadcast %141 : vector<1x32xf32> to vector<8x32xf32>
    %163 = arith.addf %161, %162 : vector<8x32xf32>
    %164 = arith.truncf %163 : vector<8x32xf32> to vector<8x32xbf16>
    %c0_64 = arith.constant 0 : index
    %c0_65 = arith.constant 0 : index
    %c0_66 = arith.constant 0 : index
    %165 = vector.load %arg13[%c0_64, %c0_65, %c0_66] : memref<4x32x64xbf16, #tpu.memory_space<vmem>>, vector<1x32x64xbf16>
    %166 = vector.shape_cast %165 : vector<1x32x64xbf16> to vector<32x64xbf16>
    %cst_67 = arith.constant dense<0.000000e+00> : vector<8x64xf32>
    %167 = tpu.matmul %164, %166, %cst_67 {dimension_numbers = #tpu.dot_dimension_numbers<[1], [0], [0], [1], [0, 0, 1, 1], [], []>} : vector<8x32xbf16>, vector<32x64xbf16>, vector<8x64xf32> -> vector<8x64xf32>
    %c0_68 = arith.constant 0 : index
    %c0_69 = arith.constant 0 : index
    %c0_70 = arith.constant 0 : index
    %168 = vector.load %arg14[%c0_68, %c0_69, %c0_70] : memref<4x1x64xf32, #tpu.memory_space<vmem>>, vector<1x1x64xf32>
    %169 = vector.shape_cast %168 : vector<1x1x64xf32> to vector<1x64xf32>
    %170 = vector.broadcast %169 : vector<1x64xf32> to vector<8x64xf32>
    %171 = arith.addf %167, %170 : vector<8x64xf32>
    %cst_71 = arith.constant 5.000000e-01 : f32
    %172 = vector.broadcast %cst_71 : f32 to vector<8x64xf32>
    %173 = arith.mulf %172, %171 : vector<8x64xf32>
    %cst_72 = arith.constant 4.471500e-02 : f32
    %174 = vector.broadcast %cst_72 : f32 to vector<8x64xf32>
    %175 = arith.mulf %174, %171 : vector<8x64xf32>
    %176 = arith.mulf %175, %171 : vector<8x64xf32>
    %177 = arith.mulf %176, %171 : vector<8x64xf32>
    %178 = arith.addf %171, %177 : vector<8x64xf32>
    %cst_73 = arith.constant 0.797884583 : f32
    %179 = vector.broadcast %cst_73 : f32 to vector<8x64xf32>
    %180 = arith.mulf %179, %178 : vector<8x64xf32>
    %181 = math.tanh %180 : vector<8x64xf32>
    %cst_74 = arith.constant 1.000000e+00 : f32
    %182 = vector.broadcast %cst_74 : f32 to vector<8x64xf32>
    %183 = arith.addf %182, %181 : vector<8x64xf32>
    %184 = arith.mulf %173, %183 : vector<8x64xf32>
    %185 = arith.truncf %184 : vector<8x64xf32> to vector<8x64xbf16>
    %c0_75 = arith.constant 0 : index
    %c0_76 = arith.constant 0 : index
    %c0_77 = arith.constant 0 : index
    %186 = vector.load %arg15[%c0_75, %c0_76, %c0_77] : memref<4x64x32xbf16, #tpu.memory_space<vmem>>, vector<1x64x32xbf16>
    %187 = vector.shape_cast %186 : vector<1x64x32xbf16> to vector<64x32xbf16>
    %cst_78 = arith.constant dense<0.000000e+00> : vector<8x32xf32>
    %188 = tpu.matmul %185, %187, %cst_78 {dimension_numbers = #tpu.dot_dimension_numbers<[1], [0], [0], [1], [0, 0, 1, 1], [], []>} : vector<8x64xbf16>, vector<64x32xbf16>, vector<8x32xf32> -> vector<8x32xf32>
    %189 = arith.addf %139, %188 : vector<8x32xf32>
    %190 = vector.extract_strided_slice %75 {offsets = [5, 0], sizes = [1, 32], strides = [1, 1]} : vector<6x32xf32> to vector<1x32xf32>
    %191 = vector.broadcast %190 : vector<1x32xf32> to vector<8x32xf32>
    %192 = arith.addf %189, %191 : vector<8x32xf32>
    %c1 = arith.constant 1 : index
    %c0_79 = arith.constant 0 : index
    %c0_80 = arith.constant 0 : index
    %193 = vector.load %arg12[%c1, %c0_79, %c0_80] : memref<4x6x32xf32, #tpu.memory_space<vmem>>, vector<1x6x32xf32>
    %194 = vector.shape_cast %193 : vector<1x6x32xf32> to vector<6x32xf32>
    %195 = vector.extract_strided_slice %194 {offsets = [0, 0], sizes = [1, 32], strides = [1, 1]} : vector<6x32xf32> to vector<1x32xf32>
    %196 = vector.extract_strided_slice %194 {offsets = [1, 0], sizes = [1, 32], strides = [1, 1]} : vector<6x32xf32> to vector<1x32xf32>
    %cst_81 = arith.constant dense<0.000000e+00> : vector<8xf32>
    %197 = vector.multi_reduction <add>, %192, %cst_81 [1] : vector<8x32xf32> to vector<8xf32>
    %198 = vector.shape_cast %197 : vector<8xf32> to vector<8x1xf32>
    %cst_82 = arith.constant 3.200000e+01 : f32
    %199 = vector.broadcast %cst_82 : f32 to vector<8x1xf32>
    %200 = arith.divf %198, %199 : vector<8x1xf32>
    %201 = vector.broadcast %200 : vector<8x1xf32> to vector<8x32xf32>
    %202 = arith.subf %192, %201 : vector<8x32xf32>
    %203 = arith.mulf %202, %202 : vector<8x32xf32>
    %cst_83 = arith.constant dense<0.000000e+00> : vector<8xf32>
    %204 = vector.multi_reduction <add>, %203, %cst_83 [1] : vector<8x32xf32> to vector<8xf32>
    %205 = vector.shape_cast %204 : vector<8xf32> to vector<8x1xf32>
    %cst_84 = arith.constant 3.200000e+01 : f32
    %206 = vector.broadcast %cst_84 : f32 to vector<8x1xf32>
    %207 = arith.divf %205, %206 : vector<8x1xf32>
    %208 = vector.broadcast %200 : vector<8x1xf32> to vector<8x32xf32>
    %209 = arith.subf %192, %208 : vector<8x32xf32>
    %cst_85 = arith.constant 9.99999974E-6 : f32
    %210 = vector.broadcast %cst_85 : f32 to vector<8x1xf32>
    %211 = arith.addf %207, %210 : vector<8x1xf32>
    %212 = math.rsqrt %211 : vector<8x1xf32>
    %213 = vector.broadcast %212 : vector<8x1xf32> to vector<8x32xf32>
    %214 = arith.mulf %209, %213 : vector<8x32xf32>
    %215 = vector.broadcast %195 : vector<1x32xf32> to vector<8x32xf32>
    %216 = arith.mulf %214, %215 : vector<8x32xf32>
    %217 = vector.broadcast %196 : vector<1x32xf32> to vector<8x32xf32>
    %218 = arith.addf %216, %217 : vector<8x32xf32>
    %219 = arith.truncf %218 : vector<8x32xf32> to vector<8x32xbf16>
    %220 = vector.shape_cast %219 : vector<8x32xbf16> to vector<1x8x32xbf16>
    %221 = vector.shape_cast %220 : vector<1x8x32xbf16> to vector<1x8x32xbf16>
    %222 = vector.broadcast %221 : vector<1x8x32xbf16> to vector<4x8x32xbf16>
    %c1_86 = arith.constant 1 : index
    %c0_87 = arith.constant 0 : index
    %c0_88 = arith.constant 0 : index
    %c0_89 = arith.constant 0 : index
    %223 = vector.load %arg8[%c1_86, %c0_87, %c0_88, %c0_89] : memref<4x4x32x4xbf16, #tpu.memory_space<vmem>>, vector<1x4x32x4xbf16>
    %224 = vector.shape_cast %223 : vector<1x4x32x4xbf16> to vector<4x32x4xbf16>
    "tpu.trace_start"() <{level = 10 : i32, message = "hnd,hde->hne"}> : () -> ()
    %cst_90 = arith.constant dense<0.000000e+00> : vector<4x8x4xf32>
    %225 = tpu.matmul %222, %224, %cst_90 {dimension_numbers = #tpu.dot_dimension_numbers<[2], [1], [1], [2], [0, 0, 0, 1, 1, 2], [0], [0]>} : vector<4x8x32xbf16>, vector<4x32x4xbf16>, vector<4x8x4xf32> -> vector<4x8x4xf32>
    "tpu.trace_stop"() : () -> ()
    %cst_91 = arith.constant 5.000000e-01 : f32
    %226 = vector.broadcast %cst_91 : f32 to vector<4x8x4xf32>
    %227 = arith.mulf %225, %226 : vector<4x8x4xf32>
    %c1_92 = arith.constant 1 : index
    %c0_93 = arith.constant 0 : index
    %c0_94 = arith.constant 0 : index
    %c0_95 = arith.constant 0 : index
    %228 = vector.load %arg9[%c1_92, %c0_93, %c0_94, %c0_95] : memref<4x4x32x4xbf16, #tpu.memory_space<vmem>>, vector<1x4x32x4xbf16>
    %229 = vector.shape_cast %228 : vector<1x4x32x4xbf16> to vector<4x32x4xbf16>
    "tpu.trace_start"() <{level = 10 : i32, message = "hnd,hde->hne"}> : () -> ()
    %cst_96 = arith.constant dense<0.000000e+00> : vector<4x8x4xf32>
    %230 = tpu.matmul %222, %229, %cst_96 {dimension_numbers = #tpu.dot_dimension_numbers<[2], [1], [1], [2], [0, 0, 0, 1, 1, 2], [0], [0]>} : vector<4x8x32xbf16>, vector<4x32x4xbf16>, vector<4x8x4xf32> -> vector<4x8x4xf32>
    "tpu.trace_stop"() : () -> ()
    %c1_97 = arith.constant 1 : index
    %c0_98 = arith.constant 0 : index
    %c0_99 = arith.constant 0 : index
    %c0_100 = arith.constant 0 : index
    %231 = vector.load %arg10[%c1_97, %c0_98, %c0_99, %c0_100] : memref<4x4x32x4xbf16, #tpu.memory_space<vmem>>, vector<1x4x32x4xbf16>
    %232 = vector.shape_cast %231 : vector<1x4x32x4xbf16> to vector<4x32x4xbf16>
    "tpu.trace_start"() <{level = 10 : i32, message = "hnd,hde->hne"}> : () -> ()
    %cst_101 = arith.constant dense<0.000000e+00> : vector<4x8x4xf32>
    %233 = tpu.matmul %222, %232, %cst_101 {dimension_numbers = #tpu.dot_dimension_numbers<[2], [1], [1], [2], [0, 0, 0, 1, 1, 2], [0], [0]>} : vector<4x8x32xbf16>, vector<4x32x4xbf16>, vector<4x8x4xf32> -> vector<4x8x4xf32>
    "tpu.trace_stop"() : () -> ()
    %234 = arith.truncf %227 : vector<4x8x4xf32> to vector<4x8x4xbf16>
    %235 = arith.truncf %230 : vector<4x8x4xf32> to vector<4x8x4xbf16>
    "tpu.trace_start"() <{level = 10 : i32, message = "hqe,hke->hqk"}> : () -> ()
    %cst_102 = arith.constant dense<0.000000e+00> : vector<4x8x8xf32>
    %236 = tpu.matmul %234, %235, %cst_102 {dimension_numbers = #tpu.dot_dimension_numbers<[2], [2], [1], [1], [0, 0, 0, 1, 1, 1], [0], [0]>} : vector<4x8x4xbf16>, vector<4x8x4xbf16>, vector<4x8x8xf32> -> vector<4x8x8xf32>
    "tpu.trace_stop"() : () -> ()
    %cst_103 = arith.constant dense<0xFF800000> : vector<4x8xf32>
    %237 = vector.multi_reduction <maximumf>, %236, %cst_103 [2] : vector<4x8x8xf32> to vector<4x8xf32>
    %238 = vector.shape_cast %237 : vector<4x8xf32> to vector<4x8x1xf32>
    %239 = vector.broadcast %238 : vector<4x8x1xf32> to vector<4x8x8xf32>
    %240 = arith.subf %236, %239 : vector<4x8x8xf32>
    %241 = math.exp %240 : vector<4x8x8xf32>
    %cst_104 = arith.constant dense<0.000000e+00> : vector<4x8xf32>
    %242 = vector.multi_reduction <add>, %241, %cst_104 [2] : vector<4x8x8xf32> to vector<4x8xf32>
    %243 = vector.shape_cast %242 : vector<4x8xf32> to vector<4x8x1xf32>
    %244 = tpu.reciprocal %243 {approx = true} : vector<4x8x1xf32> -> vector<4x8x1xf32>
    %245 = vector.broadcast %244 : vector<4x8x1xf32> to vector<4x8x8xf32>
    %246 = arith.mulf %241, %245 : vector<4x8x8xf32>
    %247 = arith.truncf %246 : vector<4x8x8xf32> to vector<4x8x8xbf16>
    %248 = arith.truncf %233 : vector<4x8x4xf32> to vector<4x8x4xbf16>
    "tpu.trace_start"() <{level = 10 : i32, message = "hqk,hke->hqe"}> : () -> ()
    %cst_105 = arith.constant dense<0.000000e+00> : vector<4x8x4xf32>
    %249 = tpu.matmul %247, %248, %cst_105 {dimension_numbers = #tpu.dot_dimension_numbers<[2], [1], [1], [2], [0, 0, 0, 1, 1, 2], [0], [0]>} : vector<4x8x8xbf16>, vector<4x8x4xbf16>, vector<4x8x4xf32> -> vector<4x8x4xf32>
    "tpu.trace_stop"() : () -> ()
    %250 = arith.truncf %249 : vector<4x8x4xf32> to vector<4x8x4xbf16>
    %c1_106 = arith.constant 1 : index
    %c0_107 = arith.constant 0 : index
    %c0_108 = arith.constant 0 : index
    %c0_109 = arith.constant 0 : index
    %251 = vector.load %arg11[%c1_106, %c0_107, %c0_108, %c0_109] : memref<4x4x4x32xbf16, #tpu.memory_space<vmem>>, vector<1x4x4x32xbf16>
    %252 = vector.shape_cast %251 : vector<1x4x4x32xbf16> to vector<4x4x32xbf16>
    "tpu.trace_start"() <{level = 10 : i32, message = "hqe,hed->hqd"}> : () -> ()
    %cst_110 = arith.constant dense<0.000000e+00> : vector<4x8x32xf32>
    %253 = tpu.matmul %250, %252, %cst_110 {dimension_numbers = #tpu.dot_dimension_numbers<[2], [1], [1], [2], [0, 0, 0, 1, 1, 2], [0], [0]>} : vector<4x8x4xbf16>, vector<4x4x32xbf16>, vector<4x8x32xf32> -> vector<4x8x32xf32>
    "tpu.trace_stop"() : () -> ()
    %cst_111 = arith.constant dense<0.000000e+00> : vector<8x32xf32>
    %254 = vector.multi_reduction <add>, %253, %cst_111 [0] : vector<4x8x32xf32> to vector<8x32xf32>
    %255 = arith.addf %192, %254 : vector<8x32xf32>
    %256 = vector.extract_strided_slice %194 {offsets = [2, 0], sizes = [1, 32], strides = [1, 1]} : vector<6x32xf32> to vector<1x32xf32>
    %257 = vector.broadcast %256 : vector<1x32xf32> to vector<8x32xf32>
    %258 = arith.addf %255, %257 : vector<8x32xf32>
    %259 = vector.extract_strided_slice %194 {offsets = [3, 0], sizes = [1, 32], strides = [1, 1]} : vector<6x32xf32> to vector<1x32xf32>
    %260 = vector.extract_strided_slice %194 {offsets = [4, 0], sizes = [1, 32], strides = [1, 1]} : vector<6x32xf32> to vector<1x32xf32>
    %cst_112 = arith.constant dense<0.000000e+00> : vector<8xf32>
    %261 = vector.multi_reduction <add>, %258, %cst_112 [1] : vector<8x32xf32> to vector<8xf32>
    %262 = vector.shape_cast %261 : vector<8xf32> to vector<8x1xf32>
    %cst_113 = arith.constant 3.200000e+01 : f32
    %263 = vector.broadcast %cst_113 : f32 to vector<8x1xf32>
    %264 = arith.divf %262, %263 : vector<8x1xf32>
    %265 = vector.broadcast %264 : vector<8x1xf32> to vector<8x32xf32>
    %266 = arith.subf %258, %265 : vector<8x32xf32>
    %267 = arith.mulf %266, %266 : vector<8x32xf32>
    %cst_114 = arith.constant dense<0.000000e+00> : vector<8xf32>
    %268 = vector.multi_reduction <add>, %267, %cst_114 [1] : vector<8x32xf32> to vector<8xf32>
    %269 = vector.shape_cast %268 : vector<8xf32> to vector<8x1xf32>
    %cst_115 = arith.constant 3.200000e+01 : f32
    %270 = vector.broadcast %cst_115 : f32 to vector<8x1xf32>
    %271 = arith.divf %269, %270 : vector<8x1xf32>
    %272 = vector.broadcast %264 : vector<8x1xf32> to vector<8x32xf32>
    %273 = arith.subf %258, %272 : vector<8x32xf32>
    %cst_116 = arith.constant 9.99999974E-6 : f32
    %274 = vector.broadcast %cst_116 : f32 to vector<8x1xf32>
    %275 = arith.addf %271, %274 : vector<8x1xf32>
    %276 = math.rsqrt %275 : vector<8x1xf32>
    %277 = vector.broadcast %276 : vector<8x1xf32> to vector<8x32xf32>
    %278 = arith.mulf %273, %277 : vector<8x32xf32>
    %279 = vector.broadcast %259 : vector<1x32xf32> to vector<8x32xf32>
    %280 = arith.mulf %278, %279 : vector<8x32xf32>
    %281 = vector.broadcast %260 : vector<1x32xf32> to vector<8x32xf32>
    %282 = arith.addf %280, %281 : vector<8x32xf32>
    %283 = arith.truncf %282 : vector<8x32xf32> to vector<8x32xbf16>
    %c1_117 = arith.constant 1 : index
    %c0_118 = arith.constant 0 : index
    %c0_119 = arith.constant 0 : index
    %284 = vector.load %arg13[%c1_117, %c0_118, %c0_119] : memref<4x32x64xbf16, #tpu.memory_space<vmem>>, vector<1x32x64xbf16>
    %285 = vector.shape_cast %284 : vector<1x32x64xbf16> to vector<32x64xbf16>
    %cst_120 = arith.constant dense<0.000000e+00> : vector<8x64xf32>
    %286 = tpu.matmul %283, %285, %cst_120 {dimension_numbers = #tpu.dot_dimension_numbers<[1], [0], [0], [1], [0, 0, 1, 1], [], []>} : vector<8x32xbf16>, vector<32x64xbf16>, vector<8x64xf32> -> vector<8x64xf32>
    %c1_121 = arith.constant 1 : index
    %c0_122 = arith.constant 0 : index
    %c0_123 = arith.constant 0 : index
    %287 = vector.load %arg14[%c1_121, %c0_122, %c0_123] : memref<4x1x64xf32, #tpu.memory_space<vmem>>, vector<1x1x64xf32>
    %288 = vector.shape_cast %287 : vector<1x1x64xf32> to vector<1x64xf32>
    %289 = vector.broadcast %288 : vector<1x64xf32> to vector<8x64xf32>
    %290 = arith.addf %286, %289 : vector<8x64xf32>
    %cst_124 = arith.constant 5.000000e-01 : f32
    %291 = vector.broadcast %cst_124 : f32 to vector<8x64xf32>
    %292 = arith.mulf %291, %290 : vector<8x64xf32>
    %cst_125 = arith.constant 4.471500e-02 : f32
    %293 = vector.broadcast %cst_125 : f32 to vector<8x64xf32>
    %294 = arith.mulf %293, %290 : vector<8x64xf32>
    %295 = arith.mulf %294, %290 : vector<8x64xf32>
    %296 = arith.mulf %295, %290 : vector<8x64xf32>
    %297 = arith.addf %290, %296 : vector<8x64xf32>
    %cst_126 = arith.constant 0.797884583 : f32
    %298 = vector.broadcast %cst_126 : f32 to vector<8x64xf32>
    %299 = arith.mulf %298, %297 : vector<8x64xf32>
    %300 = math.tanh %299 : vector<8x64xf32>
    %cst_127 = arith.constant 1.000000e+00 : f32
    %301 = vector.broadcast %cst_127 : f32 to vector<8x64xf32>
    %302 = arith.addf %301, %300 : vector<8x64xf32>
    %303 = arith.mulf %292, %302 : vector<8x64xf32>
    %304 = arith.truncf %303 : vector<8x64xf32> to vector<8x64xbf16>
    %c1_128 = arith.constant 1 : index
    %c0_129 = arith.constant 0 : index
    %c0_130 = arith.constant 0 : index
    %305 = vector.load %arg15[%c1_128, %c0_129, %c0_130] : memref<4x64x32xbf16, #tpu.memory_space<vmem>>, vector<1x64x32xbf16>
    %306 = vector.shape_cast %305 : vector<1x64x32xbf16> to vector<64x32xbf16>
    %cst_131 = arith.constant dense<0.000000e+00> : vector<8x32xf32>
    %307 = tpu.matmul %304, %306, %cst_131 {dimension_numbers = #tpu.dot_dimension_numbers<[1], [0], [0], [1], [0, 0, 1, 1], [], []>} : vector<8x64xbf16>, vector<64x32xbf16>, vector<8x32xf32> -> vector<8x32xf32>
    %308 = arith.addf %258, %307 : vector<8x32xf32>
    %309 = vector.extract_strided_slice %194 {offsets = [5, 0], sizes = [1, 32], strides = [1, 1]} : vector<6x32xf32> to vector<1x32xf32>
    %310 = vector.broadcast %309 : vector<1x32xf32> to vector<8x32xf32>
    %311 = arith.addf %308, %310 : vector<8x32xf32>
    %cst_132 = arith.constant dense<0.000000e+00> : vector<8xf32>
    %312 = vector.multi_reduction <add>, %311, %cst_132 [1] : vector<8x32xf32> to vector<8xf32>
    %313 = vector.shape_cast %312 : vector<8xf32> to vector<8x1xf32>
    %cst_133 = arith.constant 3.200000e+01 : f32
    %314 = vector.broadcast %cst_133 : f32 to vector<8x1xf32>
    %315 = arith.divf %313, %314 : vector<8x1xf32>
    %316 = vector.broadcast %315 : vector<8x1xf32> to vector<8x32xf32>
    %317 = arith.subf %311, %316 : vector<8x32xf32>
    %318 = arith.mulf %317, %317 : vector<8x32xf32>
    %cst_134 = arith.constant dense<0.000000e+00> : vector<8xf32>
    %319 = vector.multi_reduction <add>, %318, %cst_134 [1] : vector<8x32xf32> to vector<8xf32>
    %320 = vector.shape_cast %319 : vector<8xf32> to vector<8x1xf32>
    %cst_135 = arith.constant 3.200000e+01 : f32
    %321 = vector.broadcast %cst_135 : f32 to vector<8x1xf32>
    %322 = arith.divf %320, %321 : vector<8x1xf32>
    %323 = vector.broadcast %315 : vector<8x1xf32> to vector<8x32xf32>
    %324 = arith.subf %311, %323 : vector<8x32xf32>
    %cst_136 = arith.constant 9.99999974E-6 : f32
    %325 = vector.broadcast %cst_136 : f32 to vector<8x1xf32>
    %326 = arith.addf %322, %325 : vector<8x1xf32>
    %327 = math.rsqrt %326 : vector<8x1xf32>
    %328 = vector.broadcast %327 : vector<8x1xf32> to vector<8x32xf32>
    %329 = arith.mulf %324, %328 : vector<8x32xf32>
    %330 = vector.broadcast %4 : vector<1x32xf32> to vector<8x32xf32>
    %331 = arith.mulf %329, %330 : vector<8x32xf32>
    %332 = vector.broadcast %5 : vector<1x32xf32> to vector<8x32xf32>
    %333 = arith.addf %331, %332 : vector<8x32xf32>
    %334 = vector.broadcast %8 : vector<1x32xf32> to vector<8x32xf32>
    %335 = arith.subf %333, %334 : vector<8x32xf32>
    %cst_137 = arith.constant dense<0.000000e+00> : vector<16x32xf32>
    %336 = tpu.matmul %72, %335, %cst_137 {dimension_numbers = #tpu.dot_dimension_numbers<[0], [0], [1], [1], [0, 1, 1, 1], [], []>} : vector<8x16xf32>, vector<8x32xf32>, vector<16x32xf32> -> vector<16x32xf32>
    %337 = vector.broadcast %8 : vector<1x32xf32> to vector<16x32xf32>
    %338 = arith.addf %336, %337 : vector<16x32xf32>
    %c0_138 = arith.constant 0 : index
    %c0_139 = arith.constant 0 : index
    %c0_140 = arith.constant 0 : index
    %339 = vector.load %arg4[%c0_138, %c0_139, %c0_140] : memref<1x16x32xf32, #tpu.memory_space<vmem>>, vector<1x16x32xf32>
    %340 = vector.shape_cast %339 : vector<1x16x32xf32> to vector<16x32xf32>
    %341 = arith.addf %338, %340 : vector<16x32xf32>
    %c2 = arith.constant 2 : index
    %c0_141 = arith.constant 0 : index
    %c0_142 = arith.constant 0 : index
    %342 = vector.load %arg12[%c2, %c0_141, %c0_142] : memref<4x6x32xf32, #tpu.memory_space<vmem>>, vector<1x6x32xf32>
    %343 = vector.shape_cast %342 : vector<1x6x32xf32> to vector<6x32xf32>
    %344 = vector.extract_strided_slice %343 {offsets = [0, 0], sizes = [1, 32], strides = [1, 1]} : vector<6x32xf32> to vector<1x32xf32>
    %345 = vector.extract_strided_slice %343 {offsets = [1, 0], sizes = [1, 32], strides = [1, 1]} : vector<6x32xf32> to vector<1x32xf32>
    %cst_143 = arith.constant dense<0.000000e+00> : vector<16xf32>
    %346 = vector.multi_reduction <add>, %341, %cst_143 [1] : vector<16x32xf32> to vector<16xf32>
    %347 = vector.shape_cast %346 : vector<16xf32> to vector<16x1xf32>
    %cst_144 = arith.constant 3.200000e+01 : f32
    %348 = vector.broadcast %cst_144 : f32 to vector<16x1xf32>
    %349 = arith.divf %347, %348 : vector<16x1xf32>
    %350 = vector.broadcast %349 : vector<16x1xf32> to vector<16x32xf32>
    %351 = arith.subf %341, %350 : vector<16x32xf32>
    %352 = arith.mulf %351, %351 : vector<16x32xf32>
    %cst_145 = arith.constant dense<0.000000e+00> : vector<16xf32>
    %353 = vector.multi_reduction <add>, %352, %cst_145 [1] : vector<16x32xf32> to vector<16xf32>
    %354 = vector.shape_cast %353 : vector<16xf32> to vector<16x1xf32>
    %cst_146 = arith.constant 3.200000e+01 : f32
    %355 = vector.broadcast %cst_146 : f32 to vector<16x1xf32>
    %356 = arith.divf %354, %355 : vector<16x1xf32>
    %357 = vector.broadcast %349 : vector<16x1xf32> to vector<16x32xf32>
    %358 = arith.subf %341, %357 : vector<16x32xf32>
    %cst_147 = arith.constant 9.99999974E-6 : f32
    %359 = vector.broadcast %cst_147 : f32 to vector<16x1xf32>
    %360 = arith.addf %356, %359 : vector<16x1xf32>
    %361 = math.rsqrt %360 : vector<16x1xf32>
    %362 = vector.broadcast %361 : vector<16x1xf32> to vector<16x32xf32>
    %363 = arith.mulf %358, %362 : vector<16x32xf32>
    %364 = vector.broadcast %344 : vector<1x32xf32> to vector<16x32xf32>
    %365 = arith.mulf %363, %364 : vector<16x32xf32>
    %366 = vector.broadcast %345 : vector<1x32xf32> to vector<16x32xf32>
    %367 = arith.addf %365, %366 : vector<16x32xf32>
    %368 = arith.truncf %367 : vector<16x32xf32> to vector<16x32xbf16>
    %369 = vector.shape_cast %368 : vector<16x32xbf16> to vector<1x16x32xbf16>
    %370 = vector.shape_cast %369 : vector<1x16x32xbf16> to vector<1x16x32xbf16>
    %371 = vector.broadcast %370 : vector<1x16x32xbf16> to vector<4x16x32xbf16>
    %c2_148 = arith.constant 2 : index
    %c0_149 = arith.constant 0 : index
    %c0_150 = arith.constant 0 : index
    %c0_151 = arith.constant 0 : index
    %372 = vector.load %arg8[%c2_148, %c0_149, %c0_150, %c0_151] : memref<4x4x32x4xbf16, #tpu.memory_space<vmem>>, vector<1x4x32x4xbf16>
    %373 = vector.shape_cast %372 : vector<1x4x32x4xbf16> to vector<4x32x4xbf16>
    "tpu.trace_start"() <{level = 10 : i32, message = "hnd,hde->hne"}> : () -> ()
    %cst_152 = arith.constant dense<0.000000e+00> : vector<4x16x4xf32>
    %374 = tpu.matmul %371, %373, %cst_152 {dimension_numbers = #tpu.dot_dimension_numbers<[2], [1], [1], [2], [0, 0, 0, 1, 1, 2], [0], [0]>} : vector<4x16x32xbf16>, vector<4x32x4xbf16>, vector<4x16x4xf32> -> vector<4x16x4xf32>
    "tpu.trace_stop"() : () -> ()
    %cst_153 = arith.constant 5.000000e-01 : f32
    %375 = vector.broadcast %cst_153 : f32 to vector<4x16x4xf32>
    %376 = arith.mulf %374, %375 : vector<4x16x4xf32>
    %c2_154 = arith.constant 2 : index
    %c0_155 = arith.constant 0 : index
    %c0_156 = arith.constant 0 : index
    %c0_157 = arith.constant 0 : index
    %377 = vector.load %arg9[%c2_154, %c0_155, %c0_156, %c0_157] : memref<4x4x32x4xbf16, #tpu.memory_space<vmem>>, vector<1x4x32x4xbf16>
    %378 = vector.shape_cast %377 : vector<1x4x32x4xbf16> to vector<4x32x4xbf16>
    "tpu.trace_start"() <{level = 10 : i32, message = "hnd,hde->hne"}> : () -> ()
    %cst_158 = arith.constant dense<0.000000e+00> : vector<4x16x4xf32>
    %379 = tpu.matmul %371, %378, %cst_158 {dimension_numbers = #tpu.dot_dimension_numbers<[2], [1], [1], [2], [0, 0, 0, 1, 1, 2], [0], [0]>} : vector<4x16x32xbf16>, vector<4x32x4xbf16>, vector<4x16x4xf32> -> vector<4x16x4xf32>
    "tpu.trace_stop"() : () -> ()
    %c2_159 = arith.constant 2 : index
    %c0_160 = arith.constant 0 : index
    %c0_161 = arith.constant 0 : index
    %c0_162 = arith.constant 0 : index
    %380 = vector.load %arg10[%c2_159, %c0_160, %c0_161, %c0_162] : memref<4x4x32x4xbf16, #tpu.memory_space<vmem>>, vector<1x4x32x4xbf16>
    %381 = vector.shape_cast %380 : vector<1x4x32x4xbf16> to vector<4x32x4xbf16>
    "tpu.trace_start"() <{level = 10 : i32, message = "hnd,hde->hne"}> : () -> ()
    %cst_163 = arith.constant dense<0.000000e+00> : vector<4x16x4xf32>
    %382 = tpu.matmul %371, %381, %cst_163 {dimension_numbers = #tpu.dot_dimension_numbers<[2], [1], [1], [2], [0, 0, 0, 1, 1, 2], [0], [0]>} : vector<4x16x32xbf16>, vector<4x32x4xbf16>, vector<4x16x4xf32> -> vector<4x16x4xf32>
    "tpu.trace_stop"() : () -> ()
    %383 = arith.truncf %376 : vector<4x16x4xf32> to vector<4x16x4xbf16>
    %384 = arith.truncf %379 : vector<4x16x4xf32> to vector<4x16x4xbf16>
    "tpu.trace_start"() <{level = 10 : i32, message = "hqe,hke->hqk"}> : () -> ()
    %cst_164 = arith.constant dense<0.000000e+00> : vector<4x16x16xf32>
    %385 = tpu.matmul %383, %384, %cst_164 {dimension_numbers = #tpu.dot_dimension_numbers<[2], [2], [1], [1], [0, 0, 0, 1, 1, 1], [0], [0]>} : vector<4x16x4xbf16>, vector<4x16x4xbf16>, vector<4x16x16xf32> -> vector<4x16x16xf32>
    "tpu.trace_stop"() : () -> ()
    %cst_165 = arith.constant dense<0xFF800000> : vector<4x16xf32>
    %386 = vector.multi_reduction <maximumf>, %385, %cst_165 [2] : vector<4x16x16xf32> to vector<4x16xf32>
    %387 = vector.shape_cast %386 : vector<4x16xf32> to vector<4x16x1xf32>
    %388 = vector.broadcast %387 : vector<4x16x1xf32> to vector<4x16x16xf32>
    %389 = arith.subf %385, %388 : vector<4x16x16xf32>
    %390 = math.exp %389 : vector<4x16x16xf32>
    %cst_166 = arith.constant dense<0.000000e+00> : vector<4x16xf32>
    %391 = vector.multi_reduction <add>, %390, %cst_166 [2] : vector<4x16x16xf32> to vector<4x16xf32>
    %392 = vector.shape_cast %391 : vector<4x16xf32> to vector<4x16x1xf32>
    %393 = tpu.reciprocal %392 {approx = true} : vector<4x16x1xf32> -> vector<4x16x1xf32>
    %394 = vector.broadcast %393 : vector<4x16x1xf32> to vector<4x16x16xf32>
    %395 = arith.mulf %390, %394 : vector<4x16x16xf32>
    %396 = arith.truncf %395 : vector<4x16x16xf32> to vector<4x16x16xbf16>
    %397 = arith.truncf %382 : vector<4x16x4xf32> to vector<4x16x4xbf16>
    "tpu.trace_start"() <{level = 10 : i32, message = "hqk,hke->hqe"}> : () -> ()
    %cst_167 = arith.constant dense<0.000000e+00> : vector<4x16x4xf32>
    %398 = tpu.matmul %396, %397, %cst_167 {dimension_numbers = #tpu.dot_dimension_numbers<[2], [1], [1], [2], [0, 0, 0, 1, 1, 2], [0], [0]>} : vector<4x16x16xbf16>, vector<4x16x4xbf16>, vector<4x16x4xf32> -> vector<4x16x4xf32>
    "tpu.trace_stop"() : () -> ()
    %399 = arith.truncf %398 : vector<4x16x4xf32> to vector<4x16x4xbf16>
    %c2_168 = arith.constant 2 : index
    %c0_169 = arith.constant 0 : index
    %c0_170 = arith.constant 0 : index
    %c0_171 = arith.constant 0 : index
    %400 = vector.load %arg11[%c2_168, %c0_169, %c0_170, %c0_171] : memref<4x4x4x32xbf16, #tpu.memory_space<vmem>>, vector<1x4x4x32xbf16>
    %401 = vector.shape_cast %400 : vector<1x4x4x32xbf16> to vector<4x4x32xbf16>
    "tpu.trace_start"() <{level = 10 : i32, message = "hqe,hed->hqd"}> : () -> ()
    %cst_172 = arith.constant dense<0.000000e+00> : vector<4x16x32xf32>
    %402 = tpu.matmul %399, %401, %cst_172 {dimension_numbers = #tpu.dot_dimension_numbers<[2], [1], [1], [2], [0, 0, 0, 1, 1, 2], [0], [0]>} : vector<4x16x4xbf16>, vector<4x4x32xbf16>, vector<4x16x32xf32> -> vector<4x16x32xf32>
    "tpu.trace_stop"() : () -> ()
    %cst_173 = arith.constant dense<0.000000e+00> : vector<16x32xf32>
    %403 = vector.multi_reduction <add>, %402, %cst_173 [0] : vector<4x16x32xf32> to vector<16x32xf32>
    %404 = arith.addf %341, %403 : vector<16x32xf32>
    %405 = vector.extract_strided_slice %343 {offsets = [2, 0], sizes = [1, 32], strides = [1, 1]} : vector<6x32xf32> to vector<1x32xf32>
    %406 = vector.broadcast %405 : vector<1x32xf32> to vector<16x32xf32>
    %407 = arith.addf %404, %406 : vector<16x32xf32>
    %408 = vector.extract_strided_slice %343 {offsets = [3, 0], sizes = [1, 32], strides = [1, 1]} : vector<6x32xf32> to vector<1x32xf32>
    %409 = vector.extract_strided_slice %343 {offsets = [4, 0], sizes = [1, 32], strides = [1, 1]} : vector<6x32xf32> to vector<1x32xf32>
    %cst_174 = arith.constant dense<0.000000e+00> : vector<16xf32>
    %410 = vector.multi_reduction <add>, %407, %cst_174 [1] : vector<16x32xf32> to vector<16xf32>
    %411 = vector.shape_cast %410 : vector<16xf32> to vector<16x1xf32>
    %cst_175 = arith.constant 3.200000e+01 : f32
    %412 = vector.broadcast %cst_175 : f32 to vector<16x1xf32>
    %413 = arith.divf %411, %412 : vector<16x1xf32>
    %414 = vector.broadcast %413 : vector<16x1xf32> to vector<16x32xf32>
    %415 = arith.subf %407, %414 : vector<16x32xf32>
    %416 = arith.mulf %415, %415 : vector<16x32xf32>
    %cst_176 = arith.constant dense<0.000000e+00> : vector<16xf32>
    %417 = vector.multi_reduction <add>, %416, %cst_176 [1] : vector<16x32xf32> to vector<16xf32>
    %418 = vector.shape_cast %417 : vector<16xf32> to vector<16x1xf32>
    %cst_177 = arith.constant 3.200000e+01 : f32
    %419 = vector.broadcast %cst_177 : f32 to vector<16x1xf32>
    %420 = arith.divf %418, %419 : vector<16x1xf32>
    %421 = vector.broadcast %413 : vector<16x1xf32> to vector<16x32xf32>
    %422 = arith.subf %407, %421 : vector<16x32xf32>
    %cst_178 = arith.constant 9.99999974E-6 : f32
    %423 = vector.broadcast %cst_178 : f32 to vector<16x1xf32>
    %424 = arith.addf %420, %423 : vector<16x1xf32>
    %425 = math.rsqrt %424 : vector<16x1xf32>
    %426 = vector.broadcast %425 : vector<16x1xf32> to vector<16x32xf32>
    %427 = arith.mulf %422, %426 : vector<16x32xf32>
    %428 = vector.broadcast %408 : vector<1x32xf32> to vector<16x32xf32>
    %429 = arith.mulf %427, %428 : vector<16x32xf32>
    %430 = vector.broadcast %409 : vector<1x32xf32> to vector<16x32xf32>
    %431 = arith.addf %429, %430 : vector<16x32xf32>
    %432 = arith.truncf %431 : vector<16x32xf32> to vector<16x32xbf16>
    %c2_179 = arith.constant 2 : index
    %c0_180 = arith.constant 0 : index
    %c0_181 = arith.constant 0 : index
    %433 = vector.load %arg13[%c2_179, %c0_180, %c0_181] : memref<4x32x64xbf16, #tpu.memory_space<vmem>>, vector<1x32x64xbf16>
    %434 = vector.shape_cast %433 : vector<1x32x64xbf16> to vector<32x64xbf16>
    %cst_182 = arith.constant dense<0.000000e+00> : vector<16x64xf32>
    %435 = tpu.matmul %432, %434, %cst_182 {dimension_numbers = #tpu.dot_dimension_numbers<[1], [0], [0], [1], [0, 0, 1, 1], [], []>} : vector<16x32xbf16>, vector<32x64xbf16>, vector<16x64xf32> -> vector<16x64xf32>
    %c2_183 = arith.constant 2 : index
    %c0_184 = arith.constant 0 : index
    %c0_185 = arith.constant 0 : index
    %436 = vector.load %arg14[%c2_183, %c0_184, %c0_185] : memref<4x1x64xf32, #tpu.memory_space<vmem>>, vector<1x1x64xf32>
    %437 = vector.shape_cast %436 : vector<1x1x64xf32> to vector<1x64xf32>
    %438 = vector.broadcast %437 : vector<1x64xf32> to vector<16x64xf32>
    %439 = arith.addf %435, %438 : vector<16x64xf32>
    %cst_186 = arith.constant 5.000000e-01 : f32
    %440 = vector.broadcast %cst_186 : f32 to vector<16x64xf32>
    %441 = arith.mulf %440, %439 : vector<16x64xf32>
    %cst_187 = arith.constant 4.471500e-02 : f32
    %442 = vector.broadcast %cst_187 : f32 to vector<16x64xf32>
    %443 = arith.mulf %442, %439 : vector<16x64xf32>
    %444 = arith.mulf %443, %439 : vector<16x64xf32>
    %445 = arith.mulf %444, %439 : vector<16x64xf32>
    %446 = arith.addf %439, %445 : vector<16x64xf32>
    %cst_188 = arith.constant 0.797884583 : f32
    %447 = vector.broadcast %cst_188 : f32 to vector<16x64xf32>
    %448 = arith.mulf %447, %446 : vector<16x64xf32>
    %449 = math.tanh %448 : vector<16x64xf32>
    %cst_189 = arith.constant 1.000000e+00 : f32
    %450 = vector.broadcast %cst_189 : f32 to vector<16x64xf32>
    %451 = arith.addf %450, %449 : vector<16x64xf32>
    %452 = arith.mulf %441, %451 : vector<16x64xf32>
    %453 = arith.truncf %452 : vector<16x64xf32> to vector<16x64xbf16>
    %c2_190 = arith.constant 2 : index
    %c0_191 = arith.constant 0 : index
    %c0_192 = arith.constant 0 : index
    %454 = vector.load %arg15[%c2_190, %c0_191, %c0_192] : memref<4x64x32xbf16, #tpu.memory_space<vmem>>, vector<1x64x32xbf16>
    %455 = vector.shape_cast %454 : vector<1x64x32xbf16> to vector<64x32xbf16>
    %cst_193 = arith.constant dense<0.000000e+00> : vector<16x32xf32>
    %456 = tpu.matmul %453, %455, %cst_193 {dimension_numbers = #tpu.dot_dimension_numbers<[1], [0], [0], [1], [0, 0, 1, 1], [], []>} : vector<16x64xbf16>, vector<64x32xbf16>, vector<16x32xf32> -> vector<16x32xf32>
    %457 = arith.addf %407, %456 : vector<16x32xf32>
    %458 = vector.extract_strided_slice %343 {offsets = [5, 0], sizes = [1, 32], strides = [1, 1]} : vector<6x32xf32> to vector<1x32xf32>
    %459 = vector.broadcast %458 : vector<1x32xf32> to vector<16x32xf32>
    %460 = arith.addf %457, %459 : vector<16x32xf32>
    %c3 = arith.constant 3 : index
    %c0_194 = arith.constant 0 : index
    %c0_195 = arith.constant 0 : index
    %461 = vector.load %arg12[%c3, %c0_194, %c0_195] : memref<4x6x32xf32, #tpu.memory_space<vmem>>, vector<1x6x32xf32>
    %462 = vector.shape_cast %461 : vector<1x6x32xf32> to vector<6x32xf32>
    %463 = vector.extract_strided_slice %462 {offsets = [0, 0], sizes = [1, 32], strides = [1, 1]} : vector<6x32xf32> to vector<1x32xf32>
    %464 = vector.extract_strided_slice %462 {offsets = [1, 0], sizes = [1, 32], strides = [1, 1]} : vector<6x32xf32> to vector<1x32xf32>
    %cst_196 = arith.constant dense<0.000000e+00> : vector<16xf32>
    %465 = vector.multi_reduction <add>, %460, %cst_196 [1] : vector<16x32xf32> to vector<16xf32>
    %466 = vector.shape_cast %465 : vector<16xf32> to vector<16x1xf32>
    %cst_197 = arith.constant 3.200000e+01 : f32
    %467 = vector.broadcast %cst_197 : f32 to vector<16x1xf32>
    %468 = arith.divf %466, %467 : vector<16x1xf32>
    %469 = vector.broadcast %468 : vector<16x1xf32> to vector<16x32xf32>
    %470 = arith.subf %460, %469 : vector<16x32xf32>
    %471 = arith.mulf %470, %470 : vector<16x32xf32>
    %cst_198 = arith.constant dense<0.000000e+00> : vector<16xf32>
    %472 = vector.multi_reduction <add>, %471, %cst_198 [1] : vector<16x32xf32> to vector<16xf32>
    %473 = vector.shape_cast %472 : vector<16xf32> to vector<16x1xf32>
    %cst_199 = arith.constant 3.200000e+01 : f32
    %474 = vector.broadcast %cst_199 : f32 to vector<16x1xf32>
    %475 = arith.divf %473, %474 : vector<16x1xf32>
    %476 = vector.broadcast %468 : vector<16x1xf32> to vector<16x32xf32>
    %477 = arith.subf %460, %476 : vector<16x32xf32>
    %cst_200 = arith.constant 9.99999974E-6 : f32
    %478 = vector.broadcast %cst_200 : f32 to vector<16x1xf32>
    %479 = arith.addf %475, %478 : vector<16x1xf32>
    %480 = math.rsqrt %479 : vector<16x1xf32>
    %481 = vector.broadcast %480 : vector<16x1xf32> to vector<16x32xf32>
    %482 = arith.mulf %477, %481 : vector<16x32xf32>
    %483 = vector.broadcast %463 : vector<1x32xf32> to vector<16x32xf32>
    %484 = arith.mulf %482, %483 : vector<16x32xf32>
    %485 = vector.broadcast %464 : vector<1x32xf32> to vector<16x32xf32>
    %486 = arith.addf %484, %485 : vector<16x32xf32>
    %487 = arith.truncf %486 : vector<16x32xf32> to vector<16x32xbf16>
    %488 = vector.shape_cast %487 : vector<16x32xbf16> to vector<1x16x32xbf16>
    %489 = vector.shape_cast %488 : vector<1x16x32xbf16> to vector<1x16x32xbf16>
    %490 = vector.broadcast %489 : vector<1x16x32xbf16> to vector<4x16x32xbf16>
    %c3_201 = arith.constant 3 : index
    %c0_202 = arith.constant 0 : index
    %c0_203 = arith.constant 0 : index
    %c0_204 = arith.constant 0 : index
    %491 = vector.load %arg8[%c3_201, %c0_202, %c0_203, %c0_204] : memref<4x4x32x4xbf16, #tpu.memory_space<vmem>>, vector<1x4x32x4xbf16>
    %492 = vector.shape_cast %491 : vector<1x4x32x4xbf16> to vector<4x32x4xbf16>
    "tpu.trace_start"() <{level = 10 : i32, message = "hnd,hde->hne"}> : () -> ()
    %cst_205 = arith.constant dense<0.000000e+00> : vector<4x16x4xf32>
    %493 = tpu.matmul %490, %492, %cst_205 {dimension_numbers = #tpu.dot_dimension_numbers<[2], [1], [1], [2], [0, 0, 0, 1, 1, 2], [0], [0]>} : vector<4x16x32xbf16>, vector<4x32x4xbf16>, vector<4x16x4xf32> -> vector<4x16x4xf32>
    "tpu.trace_stop"() : () -> ()
    %cst_206 = arith.constant 5.000000e-01 : f32
    %494 = vector.broadcast %cst_206 : f32 to vector<4x16x4xf32>
    %495 = arith.mulf %493, %494 : vector<4x16x4xf32>
    %c3_207 = arith.constant 3 : index
    %c0_208 = arith.constant 0 : index
    %c0_209 = arith.constant 0 : index
    %c0_210 = arith.constant 0 : index
    %496 = vector.load %arg9[%c3_207, %c0_208, %c0_209, %c0_210] : memref<4x4x32x4xbf16, #tpu.memory_space<vmem>>, vector<1x4x32x4xbf16>
    %497 = vector.shape_cast %496 : vector<1x4x32x4xbf16> to vector<4x32x4xbf16>
    "tpu.trace_start"() <{level = 10 : i32, message = "hnd,hde->hne"}> : () -> ()
    %cst_211 = arith.constant dense<0.000000e+00> : vector<4x16x4xf32>
    %498 = tpu.matmul %490, %497, %cst_211 {dimension_numbers = #tpu.dot_dimension_numbers<[2], [1], [1], [2], [0, 0, 0, 1, 1, 2], [0], [0]>} : vector<4x16x32xbf16>, vector<4x32x4xbf16>, vector<4x16x4xf32> -> vector<4x16x4xf32>
    "tpu.trace_stop"() : () -> ()
    %c3_212 = arith.constant 3 : index
    %c0_213 = arith.constant 0 : index
    %c0_214 = arith.constant 0 : index
    %c0_215 = arith.constant 0 : index
    %499 = vector.load %arg10[%c3_212, %c0_213, %c0_214, %c0_215] : memref<4x4x32x4xbf16, #tpu.memory_space<vmem>>, vector<1x4x32x4xbf16>
    %500 = vector.shape_cast %499 : vector<1x4x32x4xbf16> to vector<4x32x4xbf16>
    "tpu.trace_start"() <{level = 10 : i32, message = "hnd,hde->hne"}> : () -> ()
    %cst_216 = arith.constant dense<0.000000e+00> : vector<4x16x4xf32>
    %501 = tpu.matmul %490, %500, %cst_216 {dimension_numbers = #tpu.dot_dimension_numbers<[2], [1], [1], [2], [0, 0, 0, 1, 1, 2], [0], [0]>} : vector<4x16x32xbf16>, vector<4x32x4xbf16>, vector<4x16x4xf32> -> vector<4x16x4xf32>
    "tpu.trace_stop"() : () -> ()
    %502 = arith.truncf %495 : vector<4x16x4xf32> to vector<4x16x4xbf16>
    %503 = arith.truncf %498 : vector<4x16x4xf32> to vector<4x16x4xbf16>
    "tpu.trace_start"() <{level = 10 : i32, message = "hqe,hke->hqk"}> : () -> ()
    %cst_217 = arith.constant dense<0.000000e+00> : vector<4x16x16xf32>
    %504 = tpu.matmul %502, %503, %cst_217 {dimension_numbers = #tpu.dot_dimension_numbers<[2], [2], [1], [1], [0, 0, 0, 1, 1, 1], [0], [0]>} : vector<4x16x4xbf16>, vector<4x16x4xbf16>, vector<4x16x16xf32> -> vector<4x16x16xf32>
    "tpu.trace_stop"() : () -> ()
    %cst_218 = arith.constant dense<0xFF800000> : vector<4x16xf32>
    %505 = vector.multi_reduction <maximumf>, %504, %cst_218 [2] : vector<4x16x16xf32> to vector<4x16xf32>
    %506 = vector.shape_cast %505 : vector<4x16xf32> to vector<4x16x1xf32>
    %507 = vector.broadcast %506 : vector<4x16x1xf32> to vector<4x16x16xf32>
    %508 = arith.subf %504, %507 : vector<4x16x16xf32>
    %509 = math.exp %508 : vector<4x16x16xf32>
    %cst_219 = arith.constant dense<0.000000e+00> : vector<4x16xf32>
    %510 = vector.multi_reduction <add>, %509, %cst_219 [2] : vector<4x16x16xf32> to vector<4x16xf32>
    %511 = vector.shape_cast %510 : vector<4x16xf32> to vector<4x16x1xf32>
    %512 = tpu.reciprocal %511 {approx = true} : vector<4x16x1xf32> -> vector<4x16x1xf32>
    %513 = vector.broadcast %512 : vector<4x16x1xf32> to vector<4x16x16xf32>
    %514 = arith.mulf %509, %513 : vector<4x16x16xf32>
    %515 = arith.truncf %514 : vector<4x16x16xf32> to vector<4x16x16xbf16>
    %516 = arith.truncf %501 : vector<4x16x4xf32> to vector<4x16x4xbf16>
    "tpu.trace_start"() <{level = 10 : i32, message = "hqk,hke->hqe"}> : () -> ()
    %cst_220 = arith.constant dense<0.000000e+00> : vector<4x16x4xf32>
    %517 = tpu.matmul %515, %516, %cst_220 {dimension_numbers = #tpu.dot_dimension_numbers<[2], [1], [1], [2], [0, 0, 0, 1, 1, 2], [0], [0]>} : vector<4x16x16xbf16>, vector<4x16x4xbf16>, vector<4x16x4xf32> -> vector<4x16x4xf32>
    "tpu.trace_stop"() : () -> ()
    %518 = arith.truncf %517 : vector<4x16x4xf32> to vector<4x16x4xbf16>
    %c3_221 = arith.constant 3 : index
    %c0_222 = arith.constant 0 : index
    %c0_223 = arith.constant 0 : index
    %c0_224 = arith.constant 0 : index
    %519 = vector.load %arg11[%c3_221, %c0_222, %c0_223, %c0_224] : memref<4x4x4x32xbf16, #tpu.memory_space<vmem>>, vector<1x4x4x32xbf16>
    %520 = vector.shape_cast %519 : vector<1x4x4x32xbf16> to vector<4x4x32xbf16>
    "tpu.trace_start"() <{level = 10 : i32, message = "hqe,hed->hqd"}> : () -> ()
    %cst_225 = arith.constant dense<0.000000e+00> : vector<4x16x32xf32>
    %521 = tpu.matmul %518, %520, %cst_225 {dimension_numbers = #tpu.dot_dimension_numbers<[2], [1], [1], [2], [0, 0, 0, 1, 1, 2], [0], [0]>} : vector<4x16x4xbf16>, vector<4x4x32xbf16>, vector<4x16x32xf32> -> vector<4x16x32xf32>
    "tpu.trace_stop"() : () -> ()
    %cst_226 = arith.constant dense<0.000000e+00> : vector<16x32xf32>
    %522 = vector.multi_reduction <add>, %521, %cst_226 [0] : vector<4x16x32xf32> to vector<16x32xf32>
    %523 = arith.addf %460, %522 : vector<16x32xf32>
    %524 = vector.extract_strided_slice %462 {offsets = [2, 0], sizes = [1, 32], strides = [1, 1]} : vector<6x32xf32> to vector<1x32xf32>
    %525 = vector.broadcast %524 : vector<1x32xf32> to vector<16x32xf32>
    %526 = arith.addf %523, %525 : vector<16x32xf32>
    %527 = vector.extract_strided_slice %462 {offsets = [3, 0], sizes = [1, 32], strides = [1, 1]} : vector<6x32xf32> to vector<1x32xf32>
    %528 = vector.extract_strided_slice %462 {offsets = [4, 0], sizes = [1, 32], strides = [1, 1]} : vector<6x32xf32> to vector<1x32xf32>
    %cst_227 = arith.constant dense<0.000000e+00> : vector<16xf32>
    %529 = vector.multi_reduction <add>, %526, %cst_227 [1] : vector<16x32xf32> to vector<16xf32>
    %530 = vector.shape_cast %529 : vector<16xf32> to vector<16x1xf32>
    %cst_228 = arith.constant 3.200000e+01 : f32
    %531 = vector.broadcast %cst_228 : f32 to vector<16x1xf32>
    %532 = arith.divf %530, %531 : vector<16x1xf32>
    %533 = vector.broadcast %532 : vector<16x1xf32> to vector<16x32xf32>
    %534 = arith.subf %526, %533 : vector<16x32xf32>
    %535 = arith.mulf %534, %534 : vector<16x32xf32>
    %cst_229 = arith.constant dense<0.000000e+00> : vector<16xf32>
    %536 = vector.multi_reduction <add>, %535, %cst_229 [1] : vector<16x32xf32> to vector<16xf32>
    %537 = vector.shape_cast %536 : vector<16xf32> to vector<16x1xf32>
    %cst_230 = arith.constant 3.200000e+01 : f32
    %538 = vector.broadcast %cst_230 : f32 to vector<16x1xf32>
    %539 = arith.divf %537, %538 : vector<16x1xf32>
    %540 = vector.broadcast %532 : vector<16x1xf32> to vector<16x32xf32>
    %541 = arith.subf %526, %540 : vector<16x32xf32>
    %cst_231 = arith.constant 9.99999974E-6 : f32
    %542 = vector.broadcast %cst_231 : f32 to vector<16x1xf32>
    %543 = arith.addf %539, %542 : vector<16x1xf32>
    %544 = math.rsqrt %543 : vector<16x1xf32>
    %545 = vector.broadcast %544 : vector<16x1xf32> to vector<16x32xf32>
    %546 = arith.mulf %541, %545 : vector<16x32xf32>
    %547 = vector.broadcast %527 : vector<1x32xf32> to vector<16x32xf32>
    %548 = arith.mulf %546, %547 : vector<16x32xf32>
    %549 = vector.broadcast %528 : vector<1x32xf32> to vector<16x32xf32>
    %550 = arith.addf %548, %549 : vector<16x32xf32>
    %551 = arith.truncf %550 : vector<16x32xf32> to vector<16x32xbf16>
    %c3_232 = arith.constant 3 : index
    %c0_233 = arith.constant 0 : index
    %c0_234 = arith.constant 0 : index
    %552 = vector.load %arg13[%c3_232, %c0_233, %c0_234] : memref<4x32x64xbf16, #tpu.memory_space<vmem>>, vector<1x32x64xbf16>
    %553 = vector.shape_cast %552 : vector<1x32x64xbf16> to vector<32x64xbf16>
    %cst_235 = arith.constant dense<0.000000e+00> : vector<16x64xf32>
    %554 = tpu.matmul %551, %553, %cst_235 {dimension_numbers = #tpu.dot_dimension_numbers<[1], [0], [0], [1], [0, 0, 1, 1], [], []>} : vector<16x32xbf16>, vector<32x64xbf16>, vector<16x64xf32> -> vector<16x64xf32>
    %c3_236 = arith.constant 3 : index
    %c0_237 = arith.constant 0 : index
    %c0_238 = arith.constant 0 : index
    %555 = vector.load %arg14[%c3_236, %c0_237, %c0_238] : memref<4x1x64xf32, #tpu.memory_space<vmem>>, vector<1x1x64xf32>
    %556 = vector.shape_cast %555 : vector<1x1x64xf32> to vector<1x64xf32>
    %557 = vector.broadcast %556 : vector<1x64xf32> to vector<16x64xf32>
    %558 = arith.addf %554, %557 : vector<16x64xf32>
    %cst_239 = arith.constant 5.000000e-01 : f32
    %559 = vector.broadcast %cst_239 : f32 to vector<16x64xf32>
    %560 = arith.mulf %559, %558 : vector<16x64xf32>
    %cst_240 = arith.constant 4.471500e-02 : f32
    %561 = vector.broadcast %cst_240 : f32 to vector<16x64xf32>
    %562 = arith.mulf %561, %558 : vector<16x64xf32>
    %563 = arith.mulf %562, %558 : vector<16x64xf32>
    %564 = arith.mulf %563, %558 : vector<16x64xf32>
    %565 = arith.addf %558, %564 : vector<16x64xf32>
    %cst_241 = arith.constant 0.797884583 : f32
    %566 = vector.broadcast %cst_241 : f32 to vector<16x64xf32>
    %567 = arith.mulf %566, %565 : vector<16x64xf32>
    %568 = math.tanh %567 : vector<16x64xf32>
    %cst_242 = arith.constant 1.000000e+00 : f32
    %569 = vector.broadcast %cst_242 : f32 to vector<16x64xf32>
    %570 = arith.addf %569, %568 : vector<16x64xf32>
    %571 = arith.mulf %560, %570 : vector<16x64xf32>
    %572 = arith.truncf %571 : vector<16x64xf32> to vector<16x64xbf16>
    %c3_243 = arith.constant 3 : index
    %c0_244 = arith.constant 0 : index
    %c0_245 = arith.constant 0 : index
    %573 = vector.load %arg15[%c3_243, %c0_244, %c0_245] : memref<4x64x32xbf16, #tpu.memory_space<vmem>>, vector<1x64x32xbf16>
    %574 = vector.shape_cast %573 : vector<1x64x32xbf16> to vector<64x32xbf16>
    %cst_246 = arith.constant dense<0.000000e+00> : vector<16x32xf32>
    %575 = tpu.matmul %572, %574, %cst_246 {dimension_numbers = #tpu.dot_dimension_numbers<[1], [0], [0], [1], [0, 0, 1, 1], [], []>} : vector<16x64xbf16>, vector<64x32xbf16>, vector<16x32xf32> -> vector<16x32xf32>
    %576 = arith.addf %526, %575 : vector<16x32xf32>
    %577 = vector.extract_strided_slice %462 {offsets = [5, 0], sizes = [1, 32], strides = [1, 1]} : vector<6x32xf32> to vector<1x32xf32>
    %578 = vector.broadcast %577 : vector<1x32xf32> to vector<16x32xf32>
    %579 = arith.addf %576, %578 : vector<16x32xf32>
    %cst_247 = arith.constant dense<0.000000e+00> : vector<16xf32>
    %580 = vector.multi_reduction <add>, %579, %cst_247 [1] : vector<16x32xf32> to vector<16xf32>
    %581 = vector.shape_cast %580 : vector<16xf32> to vector<16x1xf32>
    %cst_248 = arith.constant 3.200000e+01 : f32
    %582 = vector.broadcast %cst_248 : f32 to vector<16x1xf32>
    %583 = arith.divf %581, %582 : vector<16x1xf32>
    %584 = vector.broadcast %583 : vector<16x1xf32> to vector<16x32xf32>
    %585 = arith.subf %579, %584 : vector<16x32xf32>
    %586 = arith.mulf %585, %585 : vector<16x32xf32>
    %cst_249 = arith.constant dense<0.000000e+00> : vector<16xf32>
    %587 = vector.multi_reduction <add>, %586, %cst_249 [1] : vector<16x32xf32> to vector<16xf32>
    %588 = vector.shape_cast %587 : vector<16xf32> to vector<16x1xf32>
    %cst_250 = arith.constant 3.200000e+01 : f32
    %589 = vector.broadcast %cst_250 : f32 to vector<16x1xf32>
    %590 = arith.divf %588, %589 : vector<16x1xf32>
    %591 = vector.broadcast %583 : vector<16x1xf32> to vector<16x32xf32>
    %592 = arith.subf %579, %591 : vector<16x32xf32>
    %cst_251 = arith.constant 9.99999974E-6 : f32
    %593 = vector.broadcast %cst_251 : f32 to vector<16x1xf32>
    %594 = arith.addf %590, %593 : vector<16x1xf32>
    %595 = math.rsqrt %594 : vector<16x1xf32>
    %596 = vector.broadcast %595 : vector<16x1xf32> to vector<16x32xf32>
    %597 = arith.mulf %592, %596 : vector<16x32xf32>
    %598 = vector.broadcast %6 : vector<1x32xf32> to vector<16x32xf32>
    %599 = arith.mulf %597, %598 : vector<16x32xf32>
    %600 = vector.broadcast %7 : vector<1x32xf32> to vector<16x32xf32>
    %601 = arith.addf %599, %600 : vector<16x32xf32>
    %602 = arith.truncf %601 : vector<16x32xf32> to vector<16x32xbf16>
    %c0_252 = arith.constant 0 : index
    %c0_253 = arith.constant 0 : index
    %603 = vector.load %arg16[%c0_252, %c0_253] : memref<32x128xbf16, #tpu.memory_space<vmem>>, vector<32x128xbf16>
    %cst_254 = arith.constant dense<0.000000e+00> : vector<16x128xf32>
    %604 = tpu.matmul %602, %603, %cst_254 {dimension_numbers = #tpu.dot_dimension_numbers<[1], [0], [0], [1], [0, 0, 1, 1], [], []>} : vector<16x32xbf16>, vector<32x128xbf16>, vector<16x128xf32> -> vector<16x128xf32>
    %c0_255 = arith.constant 0 : index
    %c0_256 = arith.constant 0 : index
    %605 = vector.load %arg17[%c0_255, %c0_256] : memref<1x128xf32, #tpu.memory_space<vmem>>, vector<1x128xf32>
    %606 = vector.broadcast %605 : vector<1x128xf32> to vector<16x128xf32>
    %607 = arith.addf %604, %606 : vector<16x128xf32>
    %c0_257 = arith.constant 0 : index
    %c0_258 = arith.constant 0 : index
    %c0_259 = arith.constant 0 : index
    %608 = vector.load %arg18[%c0_257, %c0_258, %c0_259] : memref<1x16x128xf32, #tpu.memory_space<vmem>>, vector<1x16x128xf32>
    %609 = vector.shape_cast %608 : vector<1x16x128xf32> to vector<16x128xf32>
    %610 = vector.shape_cast %607 : vector<16x128xf32> to vector<1x16x128xf32>
    tpu.vector_store %arg18[%c0_257, %c0_258, %c0_259], %610 {strides = array<i32>} : memref<1x16x128xf32, #tpu.memory_space<vmem>>, vector<1x16x128xf32>,
    return
  }
  func.func @transform_0(%arg0: i32) -> (i32, i32, i32) {
    %c0_i32 = arith.constant 0 : i32
    %c0_i32_0 = arith.constant 0 : i32
    %c0_i32_1 = arith.constant 0 : i32
    return %arg0, %c0_i32, %c0_i32_0 : i32, i32, i32
  }
  func.func @transform_1(%arg0: i32) -> (i32, i32, i32) {
    %c0_i32 = arith.constant 0 : i32
    %c0_i32_0 = arith.constant 0 : i32
    %c0_i32_1 = arith.constant 0 : i32
    return %arg0, %c0_i32, %c0_i32_0 : i32, i32, i32
  }
  func.func @transform_2(%arg0: i32) -> (i32, i32, i32) {
    %c0_i32 = arith.constant 0 : i32
    %c0_i32_0 = arith.constant 0 : i32
    %c0_i32_1 = arith.constant 0 : i32
    %c0_i32_2 = arith.constant 0 : i32
    return %c0_i32, %c0_i32_0, %c0_i32_1 : i32, i32, i32
  }
  func.func @transform_3(%arg0: i32) -> (i32, i32, i32) {
    %c0_i32 = arith.constant 0 : i32
    %c0_i32_0 = arith.constant 0 : i32
    %c0_i32_1 = arith.constant 0 : i32
    %c0_i32_2 = arith.constant 0 : i32
    return %c0_i32, %c0_i32_0, %c0_i32_1 : i32, i32, i32
  }
  func.func @transform_4(%arg0: i32) -> (i32, i32) {
    %c0_i32 = arith.constant 0 : i32
    %c0_i32_0 = arith.constant 0 : i32
    %c0_i32_1 = arith.constant 0 : i32
    return %c0_i32, %c0_i32_0 : i32, i32
  }
  func.func @transform_5(%arg0: i32) -> (i32, i32) {
    %c0_i32 = arith.constant 0 : i32
    %c0_i32_0 = arith.constant 0 : i32
    %c0_i32_1 = arith.constant 0 : i32
    return %c0_i32, %c0_i32_0 : i32, i32
  }
  func.func @transform_6(%arg0: i32) -> (i32, i32) {
    %c0_i32 = arith.constant 0 : i32
    %c0_i32_0 = arith.constant 0 : i32
    %c0_i32_1 = arith.constant 0 : i32
    return %c0_i32, %c0_i32_0 : i32, i32
  }
  func.func @transform_7(%arg0: i32) -> (i32, i32, i32, i32) {
    %c0_i32 = arith.constant 0 : i32
    %c0_i32_0 = arith.constant 0 : i32
    %c0_i32_1 = arith.constant 0 : i32
    %c0_i32_2 = arith.constant 0 : i32
    %c0_i32_3 = arith.constant 0 : i32
    return %c0_i32, %c0_i32_0, %c0_i32_1, %c0_i32_2 : i32, i32, i32, i32
  }
  func.func @transform_8(%arg0: i32) -> (i32, i32, i32, i32) {
    %c0_i32 = arith.constant 0 : i32
    %c0_i32_0 = arith.constant 0 : i32
    %c0_i32_1 = arith.constant 0 : i32
    %c0_i32_2 = arith.constant 0 : i32
    %c0_i32_3 = arith.constant 0 : i32
    return %c0_i32, %c0_i32_0, %c0_i32_1, %c0_i32_2 : i32, i32, i32, i32
  }
  func.func @transform_9(%arg0: i32) -> (i32, i32, i32, i32) {
    %c0_i32 = arith.constant 0 : i32
    %c0_i32_0 = arith.constant 0 : i32
    %c0_i32_1 = arith.constant 0 : i32
    %c0_i32_2 = arith.constant 0 : i32
    %c0_i32_3 = arith.constant 0 : i32
    return %c0_i32, %c0_i32_0, %c0_i32_1, %c0_i32_2 : i32, i32, i32, i32
  }
  func.func @transform_10(%arg0: i32) -> (i32, i32, i32, i32) {
    %c0_i32 = arith.constant 0 : i32
    %c0_i32_0 = arith.constant 0 : i32
    %c0_i32_1 = arith.constant 0 : i32
    %c0_i32_2 = arith.constant 0 : i32
    %c0_i32_3 = arith.constant 0 : i32
    return %c0_i32, %c0_i32_0, %c0_i32_1, %c0_i32_2 : i32, i32, i32, i32
  }
  func.func @transform_11(%arg0: i32) -> (i32, i32, i32) {
    %c0_i32 = arith.constant 0 : i32
    %c0_i32_0 = arith.constant 0 : i32
    %c0_i32_1 = arith.constant 0 : i32
    %c0_i32_2 = arith.constant 0 : i32
    return %c0_i32, %c0_i32_0, %c0_i32_1 : i32, i32, i32
  }
  func.func @transform_12(%arg0: i32) -> (i32, i32, i32) {
    %c0_i32 = arith.constant 0 : i32
    %c0_i32_0 = arith.constant 0 : i32
    %c0_i32_1 = arith.constant 0 : i32
    %c0_i32_2 = arith.constant 0 : i32
    return %c0_i32, %c0_i32_0, %c0_i32_1 : i32, i32, i32
  }
  func.func @transform_13(%arg0: i32) -> (i32, i32, i32) {
    %c0_i32 = arith.constant 0 : i32
    %c0_i32_0 = arith.constant 0 : i32
    %c0_i32_1 = arith.constant 0 : i32
    %c0_i32_2 = arith.constant 0 : i32
    return %c0_i32, %c0_i32_0, %c0_i32_1 : i32, i32, i32
  }
  func.func @transform_14(%arg0: i32) -> (i32, i32, i32) {
    %c0_i32 = arith.constant 0 : i32
    %c0_i32_0 = arith.constant 0 : i32
    %c0_i32_1 = arith.constant 0 : i32
    %c0_i32_2 = arith.constant 0 : i32
    return %c0_i32, %c0_i32_0, %c0_i32_1 : i32, i32, i32
  }
  func.func @transform_15(%arg0: i32) -> (i32, i32) {
    %c0_i32 = arith.constant 0 : i32
    %c0_i32_0 = arith.constant 0 : i32
    %c0_i32_1 = arith.constant 0 : i32
    return %c0_i32, %c0_i32_0 : i32, i32
  }
  func.func @transform_16(%arg0: i32) -> (i32, i32) {
    %c0_i32 = arith.constant 0 : i32
    %c0_i32_0 = arith.constant 0 : i32
    %c0_i32_1 = arith.constant 0 : i32
    return %c0_i32, %c0_i32_0 : i32, i32
  }
  func.func @transform_17(%arg0: i32) -> (i32, i32, i32) {
    %c0_i32 = arith.constant 0 : i32
    %c0_i32_0 = arith.constant 0 : i32
    %c0_i32_1 = arith.constant 0 : i32
    return %arg0, %c0_i32, %c0_i32_0 : i32, i32, i32
  }
}

</mosaic_0001>

<bundles_post_ra>
// kernel: simple_vit_ae_forward.1
= control target key start
LH: loop header
LB: loop body
LE: loop exit
PB: predicated region body
PF: predicated region fallthrough
CT: control target
= control target key end

     0   :  { %s9378_s24 = smov 0   ;;  %s10786_s0 = inlined_call_operand.vmem [shape: s32[2,8,1], index: 0, kind: input, shape index: {}]   ;;  %s10787_s1 = inlined_call_operand.vmem [shape: f32[2,16,64], index: 1, kind: input, shape index: {}]   ;;  %s10788_s2 = inlined_call_operand.vmem [shape: f32[1,16,32], index: 2, kind: input, shape index: {}]   ;;  %s10789_s3 = inlined_call_operand.vmem [shape: f32[1,16,32], index: 3, kind: input, shape index: {}]   ;;  %s10790_s4 = inlined_call_operand.vmem [shape: f32[2,64], index: 4, kind: input, shape index: {}]   ;;  %s10791_s5 = inlined_call_operand.vmem [shape: bf16[64,32], index: 5, kind: input, shape index: {}]   ;;  %s10792_s6 = inlined_call_operand.vmem [shape: f32[8,32], index: 6, kind: input, shape index: {}]   ;;  %s10793_s7 = inlined_call_operand.vmem [shape: bf16[4,4,32,4], index: 7, kind: input, shape index: {}]   ;;  %s10794_s8 = inlined_call_operand.vmem [shape: bf16[4,4,32,4], index: 8, kind: input, shape index: {}]   ;;  %s10795_s9 = inlined_call_operand.vmem [shape: bf16[4,4,32,4], index: 9, kind: input, shape index: {}]   ;;  %s10796_s10 = inlined_call_operand.vmem [shape: bf16[4,4,4,32], index: 10, kind: input, shape index: {}]   ;;  %s10797_s11 = inlined_call_operand.vmem [shape: f32[4,6,32], index: 11, kind: input, shape index: {}]   ;;  %s10798_s12 = inlined_call_operand.vmem [shape: bf16[4,32,64], index: 12, kind: input, shape index: {}]   ;;  %s10799_s13 = inlined_call_operand.vmem [shape: f32[4,1,64], index: 13, kind: input, shape index: {}]   ;;  %s10800_s14 = inlined_call_operand.vmem [shape: bf16[4,64,32], index: 14, kind: input, shape index: {}]   ;;  %s10801_s15 = inlined_call_operand.vmem [shape: bf16[32,128], index: 15, kind: input, shape index: {}]   ;;  %s10802_s16 = inlined_call_operand.vmem [shape: f32[1,128], index: 16, kind: input, shape index: {}]   ;;  %s10803_s17 = inlined_call_operand.vmem [shape: f32[2,16,128], index: 17, kind: output, shape index: {}]  }
   0x1   :  { %10804 = sst [smem:[#allocation2_spill]] %s10786_s0 }
   0x2   :  { %10805 = sst [smem:[#allocation3_spill]] %s10787_s1 }
   0x3 LB: > { %s7463_s25 = sadd.s32 4294967295, %s9282_s24   ;;  %p7467_p0 = scmp.ge.s32.totalorder %s9282_s24, 1  ;;  %s9282_s24 = sphi %s9378_s24, %s27_s24  }
   0x4   : > { %p496_p1 = scmp.lt.s32.totalorder %s9282_s24, 3 }
   0x6   : > { %p497_p2 = pnand %p7467_p0, %p496_p1 }
   0x7   : > { %p552_p3 = scmp.lt.s32.totalorder (!%p497_p2), %s7463_s25, 1  ;;  %vm571_vm0 = vcmask (!%p497_p2), 523264   ;;  %s10806_s29 = sld [smem:[#allocation3_spill]] (!%p497_p2)  ;;  %v9002_v14 = vld [vmem:[%s10791_s5] sm:$0xff] (!%p497_p2)   ;;  %v9284_v15 = vmov (!%p497_p2), 0.0   ;;  %vm9285_vm1 = vmmov (!%p497_p2), 0   ;;  %v599_v23 = vlaneseq (!%p497_p2) }
   0x8   : > { %500 = sbr.rel (%p497_p2) target bundleno = 11404 (0x2c8c), region = 88  ;;  %8202 = vmatprep.subr.bf16.mxu0 (!%p497_p2), %v9284_v15  ;;  %8210 = vmatprep.mubr.msk.bf16.mxu0 (!%p497_p2), %vm9285_vm1, %v9284_v15  ;;  %v9003_v16 = vld [vmem:[%s10791_s5 + $0x8] sm:$0xff] (!%p497_p2)   ;;  %v9004_v17 = vld [vmem:[%s10791_s5 + $0x10] sm:$0xff] (!%p497_p2)   ;;  %v9005_v18 = vld [vmem:[%s10791_s5 + $0x18] sm:$0xff] (!%p497_p2)   ;;  %vm692_vm2 = vcmask (!%p497_p2), 261120   ;;  %v9286_v51 = vmov (!%p497_p2), 0  }
   0x9   : > { %8203 = vmatpush3.bf16.msra.mxu0 (!%p497_p2), %v9002_v14  ;;  %8218 = vmatprep.mubr.msk.f32.mxu1 (!%p497_p2), %vm9285_vm1, %v9284_v15  ;;  %v9420_v26 = vshrl.u32 (!%p497_p2), %v599_v23, 7  ;;  %v568_v28 = vld [vmem:[%s10790_s4] sm:$0x3] (!%p497_p2)  ;;  %s10807_s1 = sld [smem:[#allocation2_spill]] (!%p497_p2)  ;;  %v9287_v63 = vmov (!%p497_p2), 0.0|0.0   ;;  %vm745_vm4 = vcmask (!%p497_p2), 130048  }
   0xa   : > { %8204 = vmatprep.subr.bf16.mxu0 (!%p497_p2), %v9284_v15  ;;  %v567_v41 = vld [vmem:[%s10792_s6] sm:$0xff] (!%p497_p2)  ;;  %9001 = vset.pattern.permute.xlu0 (!%p497_p2), %v9286_v51  ;;  %v9010_v51 = vld [vmem:[%s10793_s7 + $0x10] sm:$0xff] (!%p497_p2)   ;;  %vm1531_vm5 = vcmask (!%p497_p2), 31744   ;;  %vm1772_vm6 = vcmask (!%p497_p2), 1043456   ;;  %vm1716_vm7 = vcmask (!%p497_p2), 64512   ;;  %vm1965_vm8 = vcmask (!%p497_p2), 1041408  }
   0xb   : > { %v9423_v27 = vsub.s32 (!%p497_p2), 0, %v9420_v26  ;;  %v9430_v32 = vsub.s32 (!%p497_p2), 1, %v9420_v26  ;;  %8986 = vmatprep.subr.bf16.mxu1 (!%p497_p2), %v9287_v63  ;;  %v9021_v63 = vld [vmem:[%s10795_s9 + $0x8] sm:$0xff] (!%p497_p2)  }
   0xd   : > { %8205 = vmatpush3.bf16.msra.mxu0 (!%p497_p2), %v9003_v16  ;;  %v602_v31 = vrot.slane (!%p497_p2), %v568_v28, %v9423_v27  ;;  %v608_v36 = vrot.slane (!%p497_p2), %v568_v28, %v9430_v32  ;;  %v623_v42 = vrot.slane (!%p497_p2), %v567_v41, %v9423_v27 }
   0xe   : > { %8206 = vmatprep.subr.bf16.mxu0 (!%p497_p2), %v9284_v15 }
   0xf   : > { %s10809_s25 = smov (!%p552_p3, %s7463_s25), 1 }
  0x10   : > { %s7914_s26 = sshll.u32 %s10809_s25, 4  ;;  %s7468_s30 = sshll.u32 %s10809_s25, 3 }
  0x11   : > { %s560_s0 = scalar_lea.vmem %s10806_s29, %s7914_s26  ;;  %8207 = vmatpush3.bf16.msra.mxu0 %v9004_v17  ;;  %s555_s20 = scalar_lea.vmem %s10807_s1, %s7468_s30  ;;  %v732_v17 = vld [vmem:[%s10788_s2] sm:$0xff] }
  0x12   : > { %v569_v0 = vld [vmem:[%s560_s0] sm:$0xff]  ;;  %v570_v1 = vld [vmem:[%s560_s0 + $0x8] sm:$0xff]  ;;  %8208 = vmatprep.subr.bf16.mxu0 %v9284_v15  ;;  %s565_s18 = scalar_lea.vmem %s10803_s17, %s7914_s26 }
  0x13   : > { %v572_v2 = vsel %vm571_vm0, %v569_v0, 0.0  ;;  %v575_v3 = vsel %vm571_vm0, %v570_v1, 0.0  ;;  %v736_v62 = vld [vmem:[%s555_s20] sm:$0xff] }
  0x14   : > { %573 = vadd.xlane.f32.xlu0 %v572_v2 }
  0x15   : > { %8209 = vmatpush3.bf16.msra.mxu0 %v9005_v18  ;;  %v733_v18 = vld [vmem:[%s10788_s2 + $0x8] sm:$0xff] }
  0x16   : > { %8237 = vmatprep.subr.bf16.mxu0 %v9284_v15 }
  0x18   : > { %576 = vadd.xlane.f32.xlu0 %v575_v3 }
  0xa1   : > { %v574_v4 = vpop.xlane.xlu0 %573 }
  0xa2   : > { %v579_v5 = vmul.f32 0.015625, %v574_v4 }
  0xa4   : > { %v581_v6 = vsub.f32 %v569_v0, %v579_v5 }
  0xa5   : > { %v577_v7 = vpop.xlane.xlu0 %576 }
  0xa6   : > { %v580_v8 = vmul.f32 0.015625, %v577_v7  ;;  %v583_v9 = vmul.f32 %v581_v6, %v581_v6  ;;  %v723_v7 = vrot.slane %v567_v41, %v9430_v32 }
  0xa8   : > { %v582_v10 = vsub.f32 %v570_v1, %v580_v8  ;;  %v585_v11 = vsel %vm571_vm0, %v583_v9, 0.0 }
  0xa9   : > { %586 = vadd.xlane.f32.xlu1 %v585_v11 }
  0xaa   : > { %v584_v12 = vmul.f32 %v582_v10, %v582_v10 }
  0xac   : > { %v588_v13 = vsel %vm571_vm0, %v584_v12, 0.0 }
  0xad   : > { %589 = vadd.xlane.f32.xlu1 %v588_v13 }
 0x136   : > { %v587_v19 = vpop.xlane.xlu1 %586 }
 0x137   : > { %v591_v20 = vmul.f32 0.015625, %v587_v19  ;;  %v738_v19 = vand.u32 127, %v599_v23 }
 0x139   : > { %v593_v21 = vadd.f32 1e-05, %v591_v20 }
 0x13a   : > { %v590_v22 = vpop.xlane.xlu1 %589 }
 0x13b   : > { %9128 = vrsqrt.f32 %v593_v21  ;;  %v592_v24 = vmul.f32 0.015625, %v590_v22 }
 0x13d   : > { %v594_v25 = vadd.f32 1e-05, %v592_v24 }
 0x13f   : > { %9130 = vrsqrt.f32 %v594_v25 }
 0x145   : > { %v9129_v29 = vpop.eup %9128 }
 0x146   : > { %v597_v30 = vmul.f32 %v9129_v29, %v581_v6  ;;  %v9449_v6 = vsub.s32 2, %v9420_v26 }
 0x148   : > { %v603_v35 = vmul.f32 %v602_v31, %v597_v30 }
 0x149   : > { %v9131_v33 = vpop.eup %9130 }
 0x14a   : > { %v598_v34 = vmul.f32 %v9131_v33, %v582_v10  ;;  %v609_v38 = vadd.f32 %v608_v36, %v603_v35  ;;  %v729_v10 = vrot.slane %v567_v41, %v9449_v6 }
 0x14c   : > { %v604_v37 = vmul.f32 %v602_v31, %v598_v34 }
 0x14e   : > { %v610_v39 = vadd.f32 %v608_v36, %v604_v37  ;;  %v9006_v37 = vld [vmem:[%s10793_s7] sm:$0xff]  }
 0x150   : > { %v611_v40 = vpack.c.bf16 %v610_v39, %v609_v38  ;;  %v9007_v38 = vld [vmem:[%s10793_s7 + $0x20] sm:$0xff]   ;;  %v9008_v39 = vld [vmem:[%s10793_s7 + $0x8] sm:$0xff]  }
 0x152   : > { %8211 = vmatmul.mubr.msk.bf16.vlgmr.msra.gmra.mrb[0].mxu0 %vm571_vm0, %v611_v40  ;;  %v9009_v40 = vld [vmem:[%s10793_s7 + $0x28] sm:$0xff]  }
 0x153   : > { %8241 = vmatprep.mubr.msk.bf16.mxu0 %vm9285_vm1, %v9284_v15  ;;  %8238 = vmatpush3.bf16.msra.mxu0 %v9007_v38 }
 0x154   : > { %8239 = vmatprep.subr.bf16.mxu0 %v9284_v15 }
 0x157   : > { %8240 = vmatpush3.bf16.msra.mxu0 %v9009_v40 }
 0x158   : > { %8253 = vmatprep.subr.bf16.mxu0 %v9284_v15 }
 0x225   : > { %v685_v43 = vpop.f32.mrb[0].mxu0 }
 0x226   : > { %v686_v44 = vadd.f32 %v685_v43, %v623_v42  ;;  %v8212_v45 = vpop.f32.mrb[1].mxu0 }
 0x227   : > { %v688_v46 = vpop.f32.mrb[2].mxu0 }
 0x228   : > { %v689_v47 = vadd.f32 %v688_v46, %v623_v42  ;;  %v8213_v48 = vpop.f32.mrb[3].mxu0  ;;  %v693_v49 = vsel %vm692_vm2, %v686_v44, 0.0 }
 0x229   : > { %694 = vadd.xlane.f32.xlu0 %v693_v49 }
 0x22a   : > { %v696_v50 = vsel %vm692_vm2, %v689_v47, 0.0 }
 0x22b   : > { %697 = vadd.xlane.f32.xlu1 %v696_v50 }
 0x2b6   : > { %v695_v52 = vpop.xlane.xlu0 %694 }
 0x2b7   : > { %v700_v53 = vmul.f32 0.03125, %v695_v52  ;;  %v9011_v52 = vld [vmem:[%s10794_s8] sm:$0xff]  }
 0x2b8   : > { %v698_v54 = vpop.xlane.xlu1 %697 }
 0x2b9   : > { %v702_v55 = vsub.f32 %v686_v44, %v700_v53  ;;  %v701_v56 = vmul.f32 0.03125, %v698_v54  ;;  %v9493_v44 = vld [vmem:[%s10797_s11] sm:$0x3f]  ;;  %v9012_v54 = vld [vmem:[%s10793_s7 + $0x18] sm:$0xff]  }
 0x2ba   : > { %v836_v45 = vrot.slane %v9493_v44, %v9423_v27 }
 0x2bb   : > { %v703_v57 = vsub.f32 %v689_v47, %v701_v56  ;;  %v704_v58 = vmul.f32 %v702_v55, %v702_v55  ;;  %v841_v47 = vrot.slane %v9493_v44, %v9430_v32  ;;  %v9014_v56 = vld [vmem:[%s10793_s7 + $0x30] sm:$0xff]  }
 0x2bd   : > { %v706_v59 = vsel %vm692_vm2, %v704_v58, 0.0  ;;  %v705_v60 = vmul.f32 %v703_v57, %v703_v57  ;;  %v9016_v58 = vld [vmem:[%s10793_s7 + $0x38] sm:$0xff]  }
 0x2be   : > { %707 = vadd.xlane.f32.xlu0 %v706_v59  ;;  %v9017_v59 = vld [vmem:[%s10794_s8 + $0x28] sm:$0xff]  }
 0x2bf   : > { %v709_v61 = vsel %vm692_vm2, %v705_v60, 0.0  ;;  %v9018_v60 = vld [vmem:[%s10794_s8 + $0x10] sm:$0xff]  }
 0x2c0   : > { %710 = vadd.xlane.f32.xlu1 %v709_v61  ;;  %v9019_v61 = vld [vmem:[%s10795_s9] sm:$0xff]  }
 0x2d4   : > { %740 = vperm.xlu0 %9001, %v736_v62   ;;  %v9020_v62 = vld [vmem:[%s10794_s8 + $0x18] sm:$0xff]  }
 0x34b   : > { %v708_v0 = vpop.xlane.xlu0 %707 }
 0x34c   : > { %v712_v1 = vmul.f32 0.03125, %v708_v0  ;;  %v9022_v0 = vld [vmem:[%s10794_s8 + $0x30] sm:$0xff]  }
 0x34d   : > { %v711_v2 = vpop.xlane.xlu1 %710 }
 0x34e   : > { %v714_v3 = vadd.f32 1e-05, %v712_v1  ;;  %v713_v4 = vmul.f32 0.03125, %v711_v2  ;;  %v9023_v1 = vld [vmem:[%s10795_s9 + $0x20] sm:$0xff]   ;;  %v9024_v2 = vld [vmem:[%s10794_s8 + $0x38] sm:$0xff]  }
 0x350   : > { %9132 = vrsqrt.f32 %v714_v3  ;;  %v715_v5 = vadd.f32 1e-05, %v713_v4  ;;  %v9025_v3 = vld [vmem:[%s10795_s9 + $0x28] sm:$0xff]   ;;  %v9026_v4 = vld [vmem:[%s10795_s9 + $0x10] sm:$0xff]  }
 0x352   : > { %9134 = vrsqrt.f32 %v715_v5  ;;  %v9027_v5 = vld [vmem:[%s10795_s9 + $0x18] sm:$0xff]  }
 0x353   : > { %v741_v21 = vpop.permute.xlu0 %740 }
 0x354   : > { %vm742_vm3 = vcmp.eq.s32.totalorder %v738_v19, %v741_v21 }
 0x355   : > { %v9461_v28 = vsel %vm742_vm3, 1.0, %v9284_v15 }
 0x35a   : > { %v9133_v8 = vpop.eup %9132 }
 0x35b   : > { %v718_v9 = vmul.f32 %v9133_v8, %v702_v55  ;;  %v9013_v55 = vld [vmem:[%s10794_s8 + $0x8] sm:$0xff]   ;;  %v9029_v8 = vld [vmem:[%s10795_s9 + $0x38] sm:$0xff]  }
 0x35c   : > { %v9135_v11 = vpop.eup %9134 }
 0x35d   : > { %v719_v12 = vmul.f32 %v9135_v11, %v703_v57  ;;  %v724_v13 = vmul.f32 %v723_v7, %v718_v9  ;;  %v9015_v57 = vld [vmem:[%s10794_s8 + $0x20] sm:$0xff]  }
 0x35f   : > { %v725_v14 = vmul.f32 %v723_v7, %v719_v12  ;;  %v730_v16 = vadd.f32 %v729_v10, %v724_v13  ;;  %v9028_v7 = vld [vmem:[%s10795_s9 + $0x30] sm:$0xff]  }
 0x361   : > { %v731_v20 = vadd.f32 %v729_v10, %v725_v14  ;;  %v734_v22 = vadd.f32 %v732_v17, %v730_v16 }
 0x363   : > { %v735_v24 = vadd.f32 %v733_v18, %v731_v20 }
 0x365   : > { %v8987_v25 = vpack.c.bf16 %v735_v24, %v734_v22 }
 0x367   : > { %8988 = vmatpush3.bf16.msra.mxu1 %v8987_v25 }
 0x368   : > { %8221 = vmatprep.subr.bf16.mxu1 %v9284_v15 }
 0x36a   : > { %8219 = vmatmul.mubr.msk.f32.vlgmr.msra.gmra.mrb[0].mxu1 %vm745_vm4, %v9461_v28 }
 0x36b   : > { %8225 = vmatprep.mubr.msk.bf16.mxu1 %vm9285_vm1, %v9284_v15  ;;  %8222 = vmatpush3.bf16.msra.mxu1 %v9006_v37 }
 0x36c   : > { %8223 = vmatprep.subr.bf16.mxu1 %v9284_v15 }
 0x36f   : > { %8224 = vmatpush3.bf16.msra.mxu1 %v9008_v39 }
 0x370   : > { %8229 = vmatprep.subr.bf16.mxu1 %v9284_v15 }
 0x43d   : > { %v9468_v23 = vpop.f32.mrb[0].mxu1 }
 0x43e   : > { %v8220_v29 = vpop.f32.mrb[1].mxu1  ;;  %v820_v30 = vsel %vm692_vm2, %v9468_v23, 0.0 }
 0x43f   : > { %821 = vadd.xlane.f32.xlu1 %v820_v30 }
 0x4cc   : > { %v822_v31 = vpop.xlane.xlu1 %821 }
 0x4cd   : > { %v823_v33 = vmul.f32 0.03125, %v822_v31 }
 0x4cf   : > { %v824_v34 = vsub.f32 %v9468_v23, %v823_v33 }
 0x4d1   : > { %v825_v35 = vmul.f32 %v824_v34, %v824_v34 }
 0x4d3   : > { %v826_v36 = vsel %vm692_vm2, %v825_v35, 0.0 }
 0x4d4   : > { %827 = vadd.xlane.f32.xlu1 %v826_v36 }
 0x561   : > { %v828_v41 = vpop.xlane.xlu1 %827 }
 0x562   : > { %v829_v42 = vmul.f32 0.03125, %v828_v41 }
 0x564   : > { %v830_v43 = vadd.f32 1e-05, %v829_v42 }
 0x566   : > { %9136 = vrsqrt.f32 %v830_v43 }
 0x570   : > { %v9137_v46 = vpop.eup %9136 }
 0x571   : > { %v832_v48 = vmul.f32 %v9137_v46, %v824_v34 }
 0x573   : > { %v837_v49 = vmul.f32 %v836_v45, %v832_v48 }
 0x575   : > { %v842_v50 = vadd.f32 %v841_v47, %v837_v49 }
 0x577   : > { %v9505_v53 = vpack.c.bf16 %v842_v50, %v842_v50 }
 0x579   : > { %8226 = vmatmul.mubr.msk.bf16.vlgmr.msra.gmra.mrb[4].mxu1 %vm692_vm2, %v9505_v53  ;;  %8242 = vmatmul.mubr.msk.bf16.vlgmr.msra.gmra.mrb[4].mxu0 %vm692_vm2, %v9505_v53 }
 0x57a   : > { %8230 = vmatpush3.bf16.msra.mxu1 %v9010_v51  ;;  %8254 = vmatpush3.bf16.msra.mxu0 %v9011_v52 }
 0x57b   : > { %8231 = vmatprep.subr.bf16.mxu1 %v9284_v15  ;;  %8255 = vmatprep.subr.bf16.mxu0 %v9284_v15 }
 0x57c   : > { %8233 = vmatprep.mubr.msk.bf16.mxu1 %vm9285_vm1, %v9284_v15  ;;  %8257 = vmatprep.mubr.msk.bf16.mxu0 %vm9285_vm1, %v9284_v15 }
 0x57e   : > { %8232 = vmatpush3.bf16.msra.mxu1 %v9012_v54  ;;  %8256 = vmatpush3.bf16.msra.mxu0 %v9013_v55 }
 0x57f   : > { %8245 = vmatprep.subr.bf16.mxu1 %v9284_v15  ;;  %8269 = vmatprep.subr.bf16.mxu0 %v9284_v15 }
 0x581   : > { %8234 = vmatmul.mubr.msk.bf16.vlgmr.msra.gmra.mrb[8].mxu1 %vm692_vm2, %v9505_v53  ;;  %8258 = vmatmul.mubr.msk.bf16.vlgmr.msra.gmra.mrb[8].mxu0 %vm692_vm2, %v9505_v53 }
 0x582   : > { %8246 = vmatpush3.bf16.msra.mxu1 %v9014_v56  ;;  %8270 = vmatpush3.bf16.msra.mxu0 %v9015_v57 }
 0x583   : > { %8247 = vmatprep.subr.bf16.mxu1 %v9284_v15  ;;  %8271 = vmatprep.subr.bf16.mxu0 %v9284_v15 }
 0x584   : > { %8249 = vmatprep.mubr.msk.bf16.mxu1 %vm9285_vm1, %v9284_v15  ;;  %8273 = vmatprep.mubr.msk.bf16.mxu0 %vm9285_vm1, %v9284_v15 }
 0x586   : > { %8248 = vmatpush3.bf16.msra.mxu1 %v9016_v58  ;;  %8272 = vmatpush3.bf16.msra.mxu0 %v9017_v59 }
 0x587   : > { %8261 = vmatprep.subr.bf16.mxu1 %v9284_v15  ;;  %8285 = vmatprep.subr.bf16.mxu0 %v9284_v15 }
 0x589   : > { %8250 = vmatmul.mubr.msk.bf16.vlgmr.msra.gmra.mrb[12].mxu1 %vm692_vm2, %v9505_v53  ;;  %8274 = vmatmul.mubr.msk.bf16.vlgmr.msra.gmra.mrb[12].mxu0 %vm692_vm2, %v9505_v53 }
 0x58a   : > { %8262 = vmatpush3.bf16.msra.mxu1 %v9018_v60  ;;  %8286 = vmatpush3.bf16.msra.mxu0 %v9019_v61 }
 0x58b   : > { %8263 = vmatprep.subr.bf16.mxu1 %v9284_v15  ;;  %8287 = vmatprep.subr.bf16.mxu0 %v9284_v15 }
 0x58c   : > { %8265 = vmatprep.mubr.msk.bf16.mxu1 %vm9285_vm1, %v9284_v15  ;;  %8289 = vmatprep.mubr.msk.bf16.mxu0 %vm9285_vm1, %v9284_v15 }
 0x58e   : > { %8264 = vmatpush3.bf16.msra.mxu1 %v9020_v62  ;;  %8288 = vmatpush3.bf16.msra.mxu0 %v9021_v63 }
 0x58f   : > { %8277 = vmatprep.subr.bf16.mxu1 %v9284_v15  ;;  %8301 = vmatprep.subr.bf16.mxu0 %v9284_v15 }
 0x591   : > { %8266 = vmatmul.mubr.msk.bf16.vlgmr.msra.gmra.mrb[16].mxu1 %vm692_vm2, %v9505_v53  ;;  %8290 = vmatmul.mubr.msk.bf16.vlgmr.msra.gmra.mrb[16].mxu0 %vm692_vm2, %v9505_v53 }
 0x592   : > { %8278 = vmatpush3.bf16.msra.mxu1 %v9022_v0  ;;  %8302 = vmatpush3.bf16.msra.mxu0 %v9023_v1 }
 0x593   : > { %8279 = vmatprep.subr.bf16.mxu1 %v9284_v15  ;;  %8303 = vmatprep.subr.bf16.mxu0 %v9284_v15 }
 0x594   : > { %8281 = vmatprep.mubr.msk.bf16.mxu1 %vm9285_vm1, %v9284_v15  ;;  %8305 = vmatprep.mubr.msk.bf16.mxu0 %vm9285_vm1, %v9284_v15 }
 0x596   : > { %8280 = vmatpush3.bf16.msra.mxu1 %v9024_v2  ;;  %8304 = vmatpush3.bf16.msra.mxu0 %v9025_v3 }
 0x597   : > { %8293 = vmatprep.subr.bf16.mxu1 %v9284_v15  ;;  %8317 = vmatprep.subr.bf16.mxu0 %v9284_v15 }
 0x599   : > { %8282 = vmatmul.mubr.msk.bf16.vlgmr.msra.gmra.mrb[20].mxu1 %vm692_vm2, %v9505_v53  ;;  %8306 = vmatmul.mubr.msk.bf16.vlgmr.msra.gmra.mrb[20].mxu0 %vm692_vm2, %v9505_v53 }
 0x59a   : > { %8294 = vmatpush3.bf16.msra.mxu1 %v9026_v4  ;;  %8297 = vmatprep.mubr.msk.bf16.mxu1 %vm9285_vm1, %v9284_v15 }
 0x59b   : > { %8295 = vmatprep.subr.bf16.mxu1 %v9284_v15  ;;  %8319 = vmatprep.mubr.msk.bf16.mxu0 %vm9285_vm1, %v9284_v15 }
 0x59e   : > { %8296 = vmatpush3.bf16.msra.mxu1 %v9027_v5 }
 0x59f   : > { %8309 = vmatprep.subr.bf16.mxu1 %v9284_v15 }
 0x5a1   : > { %8298 = vmatmul.mubr.msk.bf16.vlgmr.msra.gmra.mrb[24].mxu1 %vm692_vm2, %v9505_v53 }
 0x5a2   : > { %8310 = vmatpush3.bf16.msra.mxu1 %v9028_v7  ;;  %8313 = vmatprep.mubr.msk.bf16.mxu1 %vm9285_vm1, %v9284_v15 }
 0x5a3   : > { %8311 = vmatprep.subr.bf16.mxu1 %v9284_v15 }
 0x5a6   : > { %8312 = vmatpush3.bf16.msra.mxu1 %v9029_v8 }
 0x5a7   : > { %8323 = vmatprep.subr.bf16.mxu1 %v9284_v15 }
 0x5a9   : > { %8314 = vmatmul.mubr.msk.bf16.vlgmr.msra.gmra.mrb[28].mxu1 %vm692_vm2, %v9505_v53 }
 0x5aa   : > { %8325 = vmatprep.mubr.msk.bf16.mxu1 %vm9285_vm1, %v9284_v15 }
 0x64c   : > { %v909_v9 = vpop.f32.mrb[4].mxu1  ;;  %v1013_v10 = vpop.f32.mrb[4].mxu0 }
 0x64d   : > { %v8227_v11 = vpop.f32.mrb[5].mxu1  ;;  %v8243_v12 = vpop.f32.mrb[5].mxu0  ;;  %v1071_v33 = vmul.f32 0.5, %v909_v9  ;;  %v1073_v46 = vmul.f32 0.5, %v1013_v10 }
 0x64e   : > { %v912_v13 = vpop.f32.mrb[6].mxu1  ;;  %v1016_v14 = vpop.f32.mrb[6].mxu0 }
 0x64f   : > { %v8228_v16 = vpop.f32.mrb[7].mxu1  ;;  %v8244_v17 = vpop.f32.mrb[7].mxu0  ;;  %v1523_v36 = vpack.c.bf16 %v1071_v33, %v1071_v33  ;;  %v1525_v49 = vpack.c.bf16 %v1073_v46, %v1073_v46 }
 0x654   : > { %v961_v18 = vpop.f32.mrb[8].mxu1  ;;  %v1137_v19 = vpop.f32.mrb[8].mxu0 }
 0x655   : > { %v1527_v20 = vpack.c.bf16 %v1137_v19, %v1137_v19  ;;  %v8235_v21 = vpop.f32.mrb[9].mxu1  ;;  %v8259_v22 = vpop.f32.mrb[9].mxu0  ;;  %v1072_v60 = vmul.f32 0.5, %v961_v18 }
 0x656   : > { %v964_v24 = vpop.f32.mrb[10].mxu1  ;;  %v1140_v25 = vpop.f32.mrb[10].mxu0 }
 0x657   : > { %v1536_v29 = vsel %vm1531_vm5, %v1527_v20, 0  ;;  %v8236_v30 = vpop.f32.mrb[11].mxu1  ;;  %v8260_v31 = vpop.f32.mrb[11].mxu0  ;;  %v1524_v63 = vpack.c.bf16 %v1072_v60, %v1072_v60 }
 0x658   : > { %8318 = vmatpush3.bf16.xpose.msra.mxu0 %v1536_v29 }
 0x659   : > { %8329 = vmatprep.subr.bf16.mxu0 %v9284_v15 }
 0x65c   : > { %v1065_v34 = vpop.f32.mrb[12].mxu1  ;;  %v1241_v35 = vpop.f32.mrb[12].mxu0 }
 0x65d   : > { %v1529_v37 = vpack.c.bf16 %v1241_v35, %v1241_v35  ;;  %v8251_v38 = vpop.f32.mrb[13].mxu1  ;;  %v8275_v39 = vpop.f32.mrb[13].mxu0  ;;  %v1074_v9 = vmul.f32 0.5, %v1065_v34 }
 0x65e   : > { %v1068_v40 = vpop.f32.mrb[14].mxu1  ;;  %v1244_v41 = vpop.f32.mrb[14].mxu0 }
 0x65f   : > { %v1628_v42 = vsel %vm1531_vm5, %v1529_v37, 0  ;;  %v8252_v43 = vpop.f32.mrb[15].mxu1  ;;  %v8276_v45 = vpop.f32.mrb[15].mxu0  ;;  %8320 = vmatmul.mubr.msk.bf16.vlgmr.msra.gmra.mrb[24].mxu0 %vm1531_vm5, %v1523_v36  ;;  %v1526_v11 = vpack.c.bf16 %v1074_v9, %v1074_v9 }
 0x660   : > { %8330 = vmatpush3.bf16.xpose.msra.mxu0 %v1628_v42  ;;  %8331 = vmatprep.mubr.msk.bf16.mxu0 %vm9285_vm1, %v9284_v15 }
 0x661   : > { %8341 = vmatprep.subr.bf16.mxu0 %v9284_v15 }
 0x664   : > { %v1189_v47 = vpop.f32.mrb[16].mxu1  ;;  %v1361_v48 = vpop.f32.mrb[16].mxu0 }
 0x665   : > { %v1528_v50 = vpack.c.bf16 %v1189_v47, %v1189_v47  ;;  %v1765_v51 = vpack.c.bf16 %v1361_v48, %v1361_v48  ;;  %v8267_v52 = vpop.f32.mrb[17].mxu1  ;;  %v8291_v53 = vpop.f32.mrb[17].mxu0 }
 0x666   : > { %v1192_v54 = vpop.f32.mrb[18].mxu1  ;;  %v1364_v55 = vpop.f32.mrb[18].mxu0 }
 0x667   : > { %v1582_v56 = vsel %vm1531_vm5, %v1528_v50, 0  ;;  %v1774_v57 = vsel %vm1772_vm6, %v1765_v51, 0  ;;  %v8268_v58 = vpop.f32.mrb[19].mxu1  ;;  %v8292_v59 = vpop.f32.mrb[19].mxu0  ;;  %8332 = vmatmul.mubr.msk.bf16.vlgmr.msra.gmra.mrb[28].mxu0 %vm1531_vm5, %v1525_v49 }
 0x668   : > { %8324 = vmatpush3.bf16.xpose.msra.mxu1 %v1582_v56  ;;  %8342 = vmatpush3.bf16.msra.mxu0 %v1774_v57 }
 0x669   : > { %8335 = vmatprep.subr.bf16.mxu1 %v9284_v15  ;;  %8343 = vmatprep.mubr.msk.bf16.mxu0 %vm9285_vm1, %v9284_v15 }
 0x66a   : > { %8353 = vmatprep.subr.bf16.mxu0 %v9284_v15 }
 0x66c   : > { %v1293_v61 = vpop.f32.mrb[20].mxu1  ;;  %v9643_v62 = vpop.f32.mrb[20].mxu0 }
 0x66d   : > { %v1530_v0 = vpack.c.bf16 %v1293_v61, %v1293_v61  ;;  %v8283_v1 = vpop.f32.mrb[21].mxu1  ;;  %v8307_v2 = vpop.f32.mrb[21].mxu0 }
 0x66e   : > { %v1296_v3 = vpop.f32.mrb[22].mxu1  ;;  %v1468_v4 = vpop.f32.mrb[22].mxu0 }
 0x66f   : > { %v1674_v5 = vsel %vm1531_vm5, %v1530_v0, 0  ;;  %v8284_v7 = vpop.f32.mrb[23].mxu1  ;;  %v8308_v8 = vpop.f32.mrb[23].mxu0  ;;  %8326 = vmatmul.mubr.msk.bf16.vlgmr.msra.gmra.mrb[32].mxu1 %vm1531_vm5, %v1524_v63 }
 0x670   : > { %8336 = vmatpush3.bf16.xpose.msra.mxu1 %v1674_v5  ;;  %8337 = vmatprep.mubr.msk.bf16.mxu1 %vm9285_vm1, %v9284_v15  ;;  %v1767_v8 = vpack.c.bf16 %v9643_v62, %v9643_v62 }
 0x671   : > { %8347 = vmatprep.subr.bf16.mxu1 %v9284_v15 }
 0x674   : > { %v1413_v10 = vpop.f32.mrb[24].mxu1 }
 0x675   : > { %v1766_v12 = vpack.c.bf16 %v1413_v10, %v1413_v10  ;;  %v8299_v13 = vpop.f32.mrb[25].mxu1 }
 0x676   : > { %v1416_v14 = vpop.f32.mrb[26].mxu1 }
 0x677   : > { %v1820_v16 = vsel %vm1772_vm6, %v1766_v12, 0  ;;  %v8300_v17 = vpop.f32.mrb[27].mxu1  ;;  %8338 = vmatmul.mubr.msk.bf16.vlgmr.msra.gmra.mrb[36].mxu1 %vm1531_vm5, %v1526_v11  ;;  %v1866_v11 = vsel %vm1772_vm6, %v1767_v8, 0 }
 0x678   : > { %8348 = vmatpush3.bf16.msra.mxu1 %v1820_v16  ;;  %8349 = vmatprep.mubr.msk.bf16.mxu1 %vm9285_vm1, %v9284_v15 }
 0x679   : > { %8359 = vmatprep.subr.bf16.mxu1 %v9284_v15 }
 0x67c   : > { %v9655_v18 = vpop.f32.mrb[28].mxu1 }
 0x67d   : > { %v8315_v19 = vpop.f32.mrb[29].mxu1  ;;  %v1768_v62 = vpack.c.bf16 %v9655_v18, %v9655_v18 }
 0x67e   : > { %v1520_v20 = vpop.f32.mrb[30].mxu1 }
 0x67f   : > { %v8316_v21 = vpop.f32.mrb[31].mxu1 }
 0x680   : > { %v1912_v21 = vsel %vm1772_vm6, %v1768_v62, 0 }
 0x732   : > { %v1572_v22 = vpop.f32.mrb[24].mxu0 }
 0x733   : > { %v8321_v24 = vpop.f32.mrb[25].mxu0  ;;  %v1717_v25 = vsel %vm1716_vm7, %v1572_v22, -inf }
 0x734   : > { %1718 = vmax.xlane.f32.xlu1 %v1717_v25  ;;  %v1575_v29 = vpop.f32.mrb[26].mxu0 }
 0x735   : > { %v8322_v30 = vpop.f32.mrb[27].mxu0 }
 0x736   : > { %v1958_v30 = vld [vmem:[%s10796_s10] sm:$0x3] }
 0x73a   : > { %v1664_v31 = vpop.f32.mrb[28].mxu0 }
 0x73b   : > { %v8333_v33 = vpop.f32.mrb[29].mxu0  ;;  %v1723_v41 = vsel %vm1716_vm7, %v1664_v31, -inf }
 0x73c   : > { %v1667_v34 = vpop.f32.mrb[30].mxu0  ;;  %v1959_v33 = vld [vmem:[%s10796_s10 + $0x2] sm:$0x3] }
 0x73d   : > { %v8334_v35 = vpop.f32.mrb[31].mxu0  ;;  %v2013_v34 = vsel %vm1965_vm8, %v1959_v33, 0 }
 0x73e   : > { %v1960_v35 = vld [vmem:[%s10796_s10 + $0x4] sm:$0x3] }
 0x742   : > { %v1618_v36 = vpop.f32.mrb[32].mxu1 }
 0x743   : > { %v8327_v37 = vpop.f32.mrb[33].mxu1  ;;  %v1720_v38 = vsel %vm1716_vm7, %v1618_v36, -inf }
 0x744   : > { %1721 = vmax.xlane.f32.xlu1 %v1720_v38  ;;  %v1621_v39 = vpop.f32.mrb[34].mxu1 }
 0x745   : > { %v8328_v40 = vpop.f32.mrb[35].mxu1  ;;  %v2059_v39 = vsel %vm1965_vm8, %v1960_v35, 0  ;;  %v9030_v35 = vld [vmem:[%s10798_s12] sm:$0xff]  }
 0x748   : > { %1724 = vmax.xlane.f32.xlu1 %v1723_v41 }
 0x74a   : > { %v1710_v42 = vpop.f32.mrb[36].mxu1 }
 0x74b   : > { %v8339_v43 = vpop.f32.mrb[37].mxu1  ;;  %v1726_v45 = vsel %vm1716_vm7, %v1710_v42, -inf }
 0x74c   : > { %1727 = vmax.xlane.f32.xlu1 %v1726_v45  ;;  %v1713_v46 = vpop.f32.mrb[38].mxu1 }
 0x74d   : > { %v8340_v47 = vpop.f32.mrb[39].mxu1 }
 0x7c1   : > { %v1719_v48 = vpop.xlane.xlu1 %1718 }
 0x7c2   : > { %v1729_v49 = vsub.f32 %v1572_v22, %v1719_v48 }
 0x7c4   : > { %v1733_v50 = vmul.f32 1.442695, %v1729_v49 }
 0x7c6   : > { %9138 = vpow2.f32 %v1733_v50 }
 0x7d0   : > { %v9139_v51 = vpop.eup %9138 }
 0x7d1   : > { %v1722_v52 = vpop.xlane.xlu1 %1721  ;;  %v1741_v53 = vsel %vm1716_vm7, %v9139_v51, 0.0 }
 0x7d2   : > { %v1730_v54 = vsub.f32 %v1618_v36, %v1722_v52  ;;  %1742 = vadd.xlane.f32.xlu1 %v1741_v53 }
 0x7d4   : > { %v1735_v55 = vmul.f32 1.442695, %v1730_v54 }
 0x7d5   : > { %v1725_v56 = vpop.xlane.xlu1 %1724 }
 0x7d6   : > { %9140 = vpow2.f32 %v1735_v55  ;;  %v1731_v57 = vsub.f32 %v1664_v31, %v1725_v56  ;;  %v1967_v31 = vsel %vm1965_vm8, %v1958_v30, 0 }
 0x7d8   : > { %v1737_v58 = vmul.f32 1.442695, %v1731_v57 }
 0x7d9   : > { %v1728_v59 = vpop.xlane.xlu1 %1727 }
 0x7da   : > { %9142 = vpow2.f32 %v1737_v58  ;;  %v1732_v60 = vsub.f32 %v1710_v42, %v1728_v59  ;;  %v1961_v42 = vld [vmem:[%s10796_s10 + $0x6] sm:$0x3] }
 0x7db   : > { %v2105_v47 = vsel %vm1965_vm8, %v1961_v42, 0 }
 0x7dc   : > { %v1739_v61 = vmul.f32 1.442695, %v1732_v60 }
 0x7de   : > { %9144 = vpow2.f32 %v1739_v61 }
 0x7e0   : > { %v9141_v63 = vpop.eup %9140 }
 0x7e1   : > { %v1744_v0 = vsel %vm1716_vm7, %v9141_v63, 0.0 }
 0x7e2   : > { %1745 = vadd.xlane.f32.xlu1 %v1744_v0 }
 0x7e4   : > { %v9143_v1 = vpop.eup %9142 }
 0x7e5   : > { %v1747_v2 = vsel %vm1716_vm7, %v9143_v1, 0.0 }
 0x7e6   : > { %1748 = vadd.xlane.f32.xlu1 %v1747_v2 }
 0x7e8   : > { %v9145_v3 = vpop.eup %9144 }
 0x7e9   : > { %v1750_v4 = vsel %vm1716_vm7, %v9145_v3, 0.0 }
 0x7ea   : > { %1751 = vadd.xlane.f32.xlu1 %v1750_v4 }
 0x85f   : > { %v1743_v5 = vpop.xlane.xlu1 %1742 }
 0x860   : > { %9146 = vrcp.f32 %v1743_v5 }
 0x86a   : > { %v9147_v7 = vpop.eup %9146 }
 0x86b   : > { %v1757_v9 = vmul.f32 %v9147_v7, %v9139_v51 }
 0x86d   : > { %v1761_v10 = vpack.c.bf16 %v1757_v9, %v1757_v9 }
 0x86f   : > { %8344 = vmatmul.mubr.msk.bf16.vlgmr.msra.gmra.mrb[32].mxu0 %vm1716_vm7, %v1761_v10  ;;  %v1746_v12 = vpop.xlane.xlu1 %1745 }
 0x870   : > { %8354 = vmatpush3.bf16.msra.mxu0 %v1866_v11  ;;  %9148 = vrcp.f32 %v1746_v12  ;;  %8355 = vmatprep.mubr.msk.bf16.mxu0 %vm9285_vm1, %v9284_v15 }
 0x871   : > { %8365 = vmatprep.subr.bf16.mxu0 %v9284_v15 }
 0x873   : > { %v1749_v13 = vpop.xlane.xlu1 %1748 }
 0x874   : > { %9150 = vrcp.f32 %v1749_v13 }
 0x877   : > { %v1752_v14 = vpop.xlane.xlu1 %1751 }
 0x878   : > { %9152 = vrcp.f32 %v1752_v14 }
 0x87a   : > { %v9149_v16 = vpop.eup %9148 }
 0x87b   : > { %v1758_v17 = vmul.f32 %v9149_v16, %v9141_v63 }
 0x87d   : > { %v1762_v19 = vpack.c.bf16 %v1758_v17, %v1758_v17 }
 0x87e   : > { %v9151_v20 = vpop.eup %9150 }
 0x87f   : > { %8350 = vmatmul.mubr.msk.bf16.vlgmr.msra.gmra.mrb[40].mxu1 %vm1716_vm7, %v1762_v19  ;;  %v1759_v22 = vmul.f32 %v9151_v20, %v9143_v1 }
 0x880   : > { %8360 = vmatpush3.bf16.msra.mxu1 %v1912_v21  ;;  %8361 = vmatprep.mubr.msk.bf16.mxu1 %vm9285_vm1, %v9284_v15  ;;  %v2158_v21 = vrot.slane %v9493_v44, %v9449_v6 }
 0x881   : > { %v1763_v24 = vpack.c.bf16 %v1759_v22, %v1759_v22  ;;  %8371 = vmatprep.subr.bf16.mxu1 %v9284_v15 }
 0x882   : > { %v9153_v25 = vpop.eup %9152 }
 0x883   : > { %8356 = vmatmul.mubr.msk.bf16.vlgmr.msra.gmra.mrb[36].mxu0 %vm1716_vm7, %v1763_v24  ;;  %v1760_v29 = vmul.f32 %v9153_v25, %v9145_v3 }
 0x884   : > { %8367 = vmatprep.mubr.msk.bf16.mxu0 %vm9285_vm1, %v9284_v15  ;;  %8366 = vmatpush3.bf16.msra.mxu0 %v1967_v31 }
 0x885   : > { %v1764_v18 = vpack.c.bf16 %v1760_v29, %v1760_v29  ;;  %8377 = vmatprep.subr.bf16.mxu0 %v9284_v15 }
 0x887   : > { %8362 = vmatmul.mubr.msk.bf16.vlgmr.msra.gmra.mrb[44].mxu1 %vm1716_vm7, %v1764_v18 }
 0x888   : > { %8373 = vmatprep.mubr.msk.bf16.mxu1 %vm9285_vm1, %v9284_v15  ;;  %8372 = vmatpush3.bf16.msra.mxu1 %v2013_v34 }
 0x889   : > { %8383 = vmatprep.subr.bf16.mxu1 %v9284_v15 }
 0x942   : > { %v1810_v36 = vpop.f32.mrb[32].mxu0 }
 0x943   : > { %v1954_v37 = vpack.c.bf16 %v1810_v36, %v1810_v36  ;;  %v8345_v38 = vpop.f32.mrb[33].mxu0 }
 0x944   : > { %v1813_v40 = vpop.f32.mrb[34].mxu0 }
 0x945   : > { %v8346_v41 = vpop.f32.mrb[35].mxu0  ;;  %8368 = vmatmul.mubr.msk.bf16.vlgmr.msra.gmra.mrb[40].mxu0 %vm1531_vm5, %v1954_v37  ;;  %v9742_v40 = vsub.s32 4, %v9420_v26 }
 0x946   : > { %8378 = vmatpush3.bf16.msra.mxu0 %v2059_v39  ;;  %8379 = vmatprep.mubr.msk.bf16.mxu0 %vm9285_vm1, %v9284_v15  ;;  %v9739_v39 = vsub.s32 3, %v9420_v26 }
 0x947   : > { %8389 = vmatprep.subr.bf16.mxu0 %v9284_v15 }
 0x948   : > { %v2176_v41 = vrot.slane %v9493_v44, %v9739_v39 }
 0x952   : > { %v1856_v43 = vpop.f32.mrb[40].mxu1 }
 0x953   : > { %v1955_v45 = vpack.c.bf16 %v1856_v43, %v1856_v43  ;;  %v8351_v46 = vpop.f32.mrb[41].mxu1 }
 0x954   : > { %v1859_v48 = vpop.f32.mrb[42].mxu1 }
 0x955   : > { %v8352_v49 = vpop.f32.mrb[43].mxu1  ;;  %8374 = vmatmul.mubr.msk.bf16.vlgmr.msra.gmra.mrb[48].mxu1 %vm1531_vm5, %v1955_v45  ;;  %v2181_v45 = vrot.slane %v9493_v44, %v9742_v40 }
 0x956   : > { %v1902_v50 = vpop.f32.mrb[36].mxu0  ;;  %8384 = vmatpush3.bf16.msra.mxu1 %v2105_v47  ;;  %8385 = vmatprep.mubr.msk.bf16.mxu1 %vm9285_vm1, %v9284_v15  ;;  %v9032_v49 = vld [vmem:[%s10800_s14] sm:$0xff]  }
 0x957   : > { %v1956_v51 = vpack.c.bf16 %v1902_v50, %v1902_v50  ;;  %v8357_v52 = vpop.f32.mrb[37].mxu0  ;;  %8397 = vmatprep.subr.bf16.mxu1 %v9284_v15  ;;  %v9033_v50 = vld [vmem:[%s10800_s14 + $0x8] sm:$0xff]  }
 0x958   : > { %v1905_v53 = vpop.f32.mrb[38].mxu0  ;;  %v9035_v52 = vld [vmem:[%s10800_s14 + $0x18] sm:$0xff]  }
 0x959   : > { %v8358_v54 = vpop.f32.mrb[39].mxu0  ;;  %8380 = vmatmul.mubr.msk.bf16.vlgmr.msra.gmra.mrb[44].mxu0 %vm1531_vm5, %v1956_v51  ;;  %v9034_v51 = vld [vmem:[%s10800_s14 + $0x10] sm:$0xff]   ;;  %v7528_v53 = vld [vmem:[%s10799_s13] ss:$0 sm:$0xff] }
 0x95a   : > { %v1948_v55 = vpop.f32.mrb[44].mxu1  ;;  %8393 = vmatprep.mubr.msk.bf16.mxu0 %vm9285_vm1, %v9284_v15  ;;  %8390 = vmatpush3.bf16.msra.mxu0 %v9030_v35 }
 0x95b   : > { %v1957_v56 = vpack.c.bf16 %v1948_v55, %v1948_v55  ;;  %v8363_v57 = vpop.f32.mrb[45].mxu1  ;;  %8391 = vmatprep.subr.bf16.mxu0 %v9284_v15 }
 0x95c   : > { %v1951_v58 = vpop.f32.mrb[46].mxu1 }
 0x95d   : > { %v8364_v59 = vpop.f32.mrb[47].mxu1  ;;  %8386 = vmatmul.mubr.msk.bf16.vlgmr.msra.gmra.mrb[52].mxu1 %vm1531_vm5, %v1957_v56 }
 0x95e   : > { %8405 = vmatprep.mubr.msk.bf16.mxu1 %vm9285_vm1, %v9284_v15  ;;  %8398 = vmatpush3.bf16.msra.mxu1 %v9032_v49  ;;  %v9047_v49 = vld [vmem:[%s10794_s8 + $0x68] sm:$0xff]  }
 0x95f   : > { %8399 = vmatprep.subr.bf16.mxu1 %v9284_v15 }
 0x962   : > { %8400 = vmatpush3.bf16.msra.mxu1 %v9033_v50  ;;  %v9048_v50 = vld [vmem:[%s10794_s8 + $0x50] sm:$0xff]  }
 0x963   : > { %8401 = vmatprep.subr.bf16.mxu1 %v9284_v15 }
 0x966   : > { %8402 = vmatpush3.bf16.msra.mxu1 %v9034_v51  ;;  %v9049_v51 = vld [vmem:[%s10795_s9 + $0x40] sm:$0xff]  }
 0x967   : > { %8403 = vmatprep.subr.bf16.mxu1 %v9284_v15 }
 0x96a   : > { %8404 = vmatpush3.bf16.msra.mxu1 %v9035_v52  ;;  %v9050_v52 = vld [vmem:[%s10794_s8 + $0x58] sm:$0xff]  }
 0x96b   : > { %8425 = vmatprep.subr.bf16.mxu1 %v9284_v15 }
 0xa18   : > { %v2003_v60 = vpop.f32.mrb[40].mxu0 }
 0xa19   : > { %v8369_v61 = vpop.f32.mrb[41].mxu0  ;;  %v2147_v2 = vsel %vm692_vm2, %v2003_v60, 0.0 }
 0xa1a   : > { %v2006_v63 = vpop.f32.mrb[42].mxu0 }
 0xa1b   : > { %v8370_v0 = vpop.f32.mrb[43].mxu0 }
 0xa28   : > { %v2049_v1 = vpop.f32.mrb[48].mxu1 }
 0xa29   : > { %v2148_v3 = vsel %vm692_vm2, %v2049_v1, 0.0  ;;  %v8375_v4 = vpop.f32.mrb[49].mxu1 }
 0xa2a   : > { %v2149_v5 = vadd.f32 %v2148_v3, %v2147_v2  ;;  %v2052_v7 = vpop.f32.mrb[50].mxu1 }
 0xa2b   : > { %v8376_v8 = vpop.f32.mrb[51].mxu1  ;;  %v9774_v7 = vsub.s32 5, %v9420_v26 }
 0xa2c   : > { %v2095_v9 = vpop.f32.mrb[44].mxu0 }
 0xa2d   : > { %v2150_v10 = vsel %vm692_vm2, %v2095_v9, 0.0  ;;  %v8381_v11 = vpop.f32.mrb[45].mxu0  ;;  %v2339_v8 = vrot.slane %v9493_v44, %v9774_v7  ;;  %v9036_v44 = vld [vmem:[%s10793_s7 + $0x40] sm:$0xff]  }
 0xa2e   : > { %v2151_v12 = vadd.f32 %v2150_v10, %v2149_v5  ;;  %v2098_v13 = vpop.f32.mrb[46].mxu0 }
 0xa2f   : > { %v8382_v14 = vpop.f32.mrb[47].mxu0 }
 0xa30   : > { %v2141_v16 = vpop.f32.mrb[52].mxu1 }
 0xa31   : > { %v2152_v62 = vsel %vm692_vm2, %v2141_v16, 0.0  ;;  %v8387_v17 = vpop.f32.mrb[53].mxu1 }
 0xa32   : > { %v2153_v19 = vadd.f32 %v2152_v62, %v2151_v12  ;;  %v2144_v20 = vpop.f32.mrb[54].mxu1 }
 0xa33   : > { %v8388_v22 = vpop.f32.mrb[55].mxu1 }
 0xa34   : > { %v2154_v24 = vadd.f32 %v2153_v19, %v9468_v23  ;;  %v9031_v23 = vld [vmem:[%s10798_s12 + $0x8] sm:$0xff]   ;;  %v9037_v22 = vld [vmem:[%s10793_s7 + $0x60] sm:$0xff]  }
 0xa35   : > { %8392 = vmatpush3.bf16.msra.mxu0 %v9031_v23 }
 0xa36   : > { %v9724_v25 = vadd.f32 %v2158_v21, %v2154_v24  ;;  %8409 = vmatprep.subr.bf16.mxu0 %v9284_v15  ;;  %v9038_v24 = vld [vmem:[%s10793_s7 + $0x48] sm:$0xff]  }
 0xa38   : > { %v2160_v29 = vsel %vm692_vm2, %v9724_v25, 0.0 }
 0xa39   : > { %2161 = vadd.xlane.f32.xlu1 %v2160_v29 }
 0xac6   : > { %v2162_v18 = vpop.xlane.xlu1 %2161 }
 0xac7   : > { %v2163_v30 = vmul.f32 0.03125, %v2162_v18 }
 0xac9   : > { %v2164_v31 = vsub.f32 %v9724_v25, %v2163_v30 }
 0xacb   : > { %v2165_v33 = vmul.f32 %v2164_v31, %v2164_v31 }
 0xacd   : > { %v2166_v34 = vsel %vm692_vm2, %v2165_v33, 0.0 }
 0xace   : > { %2167 = vadd.xlane.f32.xlu0 %v2166_v34 }
 0xb5b   : > { %v2168_v36 = vpop.xlane.xlu0 %2167 }
 0xb5c   : > { %v2169_v37 = vmul.f32 0.03125, %v2168_v36 }
 0xb5e   : > { %v2170_v38 = vadd.f32 1e-05, %v2169_v37 }
 0xb60   : > { %9154 = vrsqrt.f32 %v2170_v38  ;;  %v9040_v38 = vld [vmem:[%s10793_s7 + $0x50] sm:$0xff]  }
 0xb6a   : > { %v9155_v42 = vpop.eup %9154 }
 0xb6b   : > { %v2172_v43 = vmul.f32 %v9155_v42, %v2164_v31  ;;  %v9804_v31 = vld [vmem:[%s10797_s11 + $0x8] sm:$0x3f] }
 0xb6c   : > { %v2359_v33 = vrot.slane %v9804_v31, %v9423_v27  ;;  %v2364_v35 = vrot.slane %v9804_v31, %v9430_v32 }
 0xb6d   : > { %v2177_v46 = vmul.f32 %v2176_v41, %v2172_v43  ;;  %v9041_v41 = vld [vmem:[%s10794_s8 + $0x40] sm:$0xff]   ;;  %v9042_v43 = vld [vmem:[%s10793_s7 + $0x58] sm:$0xff]  }
 0xb6f   : > { %v2182_v47 = vadd.f32 %v2181_v45, %v2177_v46  ;;  %v9043_v45 = vld [vmem:[%s10794_s8 + $0x48] sm:$0xff]   ;;  %v9044_v46 = vld [vmem:[%s10793_s7 + $0x70] sm:$0xff]  }
 0xb71   : > { %v2183_v48 = vpack.c.bf16 %v2182_v47, %v2182_v47  ;;  %v9045_v47 = vld [vmem:[%s10794_s8 + $0x60] sm:$0xff]  }
 0xb73   : > { %8394 = vmatmul.mubr.msk.bf16.vlgmr.msra.gmra.mrb[48].mxu0 %vm692_vm2, %v2183_v48  ;;  %v9046_v48 = vld [vmem:[%s10793_s7 + $0x78] sm:$0xff]  }
 0xb74   : > { %8413 = vmatprep.mubr.msk.bf16.mxu0 %vm9285_vm1, %v9284_v15  ;;  %8410 = vmatpush3.bf16.msra.mxu0 %v9036_v44 }
 0xb75   : > { %8411 = vmatprep.subr.bf16.mxu0 %v9284_v15 }
 0xb78   : > { %8412 = vmatpush3.bf16.msra.mxu0 %v9038_v24 }
 0xb79   : > { %8417 = vmatprep.subr.bf16.mxu0 %v9284_v15 }
 0xc46   : > { %v2244_v54 = vpop.f32.mrb[48].mxu0 }
 0xc47   : > { %v2245_v55 = vadd.f32 %v7528_v53, %v2244_v54  ;;  %v8395_v56 = vpop.f32.mrb[49].mxu0  ;;  %v9051_v53 = vld [vmem:[%s10795_s9 + $0x48] sm:$0xff]   ;;  %v9052_v54 = vld [vmem:[%s10794_s8 + $0x70] sm:$0xff]  }
 0xc48   : > { %v2247_v57 = vpop.f32.mrb[50].mxu0  ;;  %v9054_v56 = vld [vmem:[%s10794_s8 + $0x78] sm:$0xff]  }
 0xc49   : > { %v2251_v58 = vmul.f32 0.044715, %v2245_v55  ;;  %v8396_v59 = vpop.f32.mrb[51].mxu0  ;;  %v2250_v2 = vmul.f32 0.5, %v2245_v55  ;;  %v9055_v57 = vld [vmem:[%s10795_s9 + $0x68] sm:$0xff]  }
 0xc4a   : > { %v9057_v59 = vld [vmem:[%s10795_s9 + $0x58] sm:$0xff]  }
 0xc4b   : > { %v2252_v60 = vmul.f32 %v2251_v58, %v2245_v55  ;;  %v9056_v58 = vld [vmem:[%s10795_s9 + $0x50] sm:$0xff]  }
 0xc4d   : > { %v2253_v61 = vmul.f32 %v2252_v60, %v2245_v55  ;;  %v9058_v60 = vld [vmem:[%s10795_s9 + $0x70] sm:$0xff]  }
 0xc4f   : > { %v2254_v63 = vadd.f32 %v2253_v61, %v2245_v55  ;;  %v9053_v55 = vld [vmem:[%s10795_s9 + $0x60] sm:$0xff]   ;;  %v9059_v61 = vld [vmem:[%s10795_s9 + $0x78] sm:$0xff]  }
 0xc51   : > { %v2255_v0 = vmul.f32 0.7978846, %v2254_v63 }
 0xc53   : > { %9156 = vtanh.f32 %v2255_v0 }
 0xc5d   : > { %v9157_v1 = vpop.eup %9156 }
 0xc5e   : > { %v2257_v3 = vadd.f32 1.0, %v9157_v1 }
 0xc60   : > { %v2258_v4 = vmul.f32 %v2257_v3, %v2250_v2 }
 0xc62   : > { %v2259_v5 = vpack.c.bf16 %v2258_v4, %v2258_v4 }
 0xc64   : > { %8406 = vmatmul.mubr.msk.bf16.vlgmr.msra.gmra.mrb[56].mxu1 %vm571_vm0, %v2259_v5 }
 0xc65   : > { %8429 = vmatprep.mubr.msk.bf16.mxu1 %vm9285_vm1, %v9284_v15  ;;  %8426 = vmatpush3.bf16.msra.mxu1 %v9037_v22 }
 0xc66   : > { %8427 = vmatprep.subr.bf16.mxu1 %v9284_v15 }
 0xd37   : > { %v2329_v9 = vpop.f32.mrb[56].mxu1 }
 0xd38   : > { %v2335_v10 = vadd.f32 %v2329_v9, %v9724_v25  ;;  %v8407_v11 = vpop.f32.mrb[57].mxu1  ;;  %v9039_v25 = vld [vmem:[%s10793_s7 + $0x68] sm:$0xff]  }
 0xd39   : > { %v2332_v12 = vpop.f32.mrb[58].mxu1  ;;  %8428 = vmatpush3.bf16.msra.mxu1 %v9039_v25 }
 0xd3a   : > { %v9779_v13 = vadd.f32 %v2339_v8, %v2335_v10  ;;  %v8408_v14 = vpop.f32.mrb[59].mxu1  ;;  %8441 = vmatprep.subr.bf16.mxu1 %v9284_v15 }
 0xd3c   : > { %v2343_v16 = vsel %vm692_vm2, %v9779_v13, 0.0 }
 0xd3d   : > { %2344 = vadd.xlane.f32.xlu1 %v2343_v16 }
 0xdca   : > { %v2345_v62 = vpop.xlane.xlu1 %2344 }
 0xdcb   : > { %v2346_v17 = vmul.f32 0.03125, %v2345_v62 }
 0xdcd   : > { %v2347_v19 = vsub.f32 %v9779_v13, %v2346_v17 }
 0xdcf   : > { %v2348_v20 = vmul.f32 %v2347_v19, %v2347_v19 }
 0xdd1   : > { %v2349_v21 = vsel %vm692_vm2, %v2348_v20, 0.0 }
 0xdd2   : > { %2350 = vadd.xlane.f32.xlu1 %v2349_v21 }
 0xe5f   : > { %v2351_v29 = vpop.xlane.xlu1 %2350 }
 0xe60   : > { %v2352_v18 = vmul.f32 0.03125, %v2351_v29 }
 0xe62   : > { %v2353_v30 = vadd.f32 1e-05, %v2352_v18 }
 0xe64   : > { %9158 = vrsqrt.f32 %v2353_v30 }
 0xe6e   : > { %v9159_v34 = vpop.eup %9158 }
 0xe6f   : > { %v2355_v23 = vmul.f32 %v9159_v34, %v2347_v19 }
 0xe71   : > { %v2360_v36 = vmul.f32 %v2359_v33, %v2355_v23 }
 0xe73   : > { %v2365_v37 = vadd.f32 %v2364_v35, %v2360_v36 }
 0xe75   : > { %v9816_v42 = vpack.c.bf16 %v2365_v37, %v2365_v37 }
 0xe77   : > { %8414 = vmatmul.mubr.msk.bf16.vlgmr.msra.gmra.mrb[52].mxu0 %vm692_vm2, %v9816_v42  ;;  %8430 = vmatmul.mubr.msk.bf16.vlgmr.msra.gmra.mrb[60].mxu1 %vm692_vm2, %v9816_v42 }
 0xe78   : > { %8418 = vmatpush3.bf16.msra.mxu0 %v9040_v38  ;;  %8442 = vmatpush3.bf16.msra.mxu1 %v9041_v41 }
 0xe79   : > { %8419 = vmatprep.subr.bf16.mxu0 %v9284_v15  ;;  %8443 = vmatprep.subr.bf16.mxu1 %v9284_v15 }
 0xe7a   : > { %8421 = vmatprep.mubr.msk.bf16.mxu0 %vm9285_vm1, %v9284_v15  ;;  %8445 = vmatprep.mubr.msk.bf16.mxu1 %vm9285_vm1, %v9284_v15 }
 0xe7c   : > { %8420 = vmatpush3.bf16.msra.mxu0 %v9042_v43  ;;  %8444 = vmatpush3.bf16.msra.mxu1 %v9043_v45 }
 0xe7d   : > { %8433 = vmatprep.subr.bf16.mxu0 %v9284_v15  ;;  %8457 = vmatprep.subr.bf16.mxu1 %v9284_v15 }
 0xe7f   : > { %8422 = vmatmul.mubr.msk.bf16.vlgmr.msra.gmra.mrb[56].mxu0 %vm692_vm2, %v9816_v42  ;;  %8446 = vmatmul.mubr.msk.bf16.vlgmr.msra.gmra.mrb[64].mxu1 %vm692_vm2, %v9816_v42 }
 0xe80   : > { %8434 = vmatpush3.bf16.msra.mxu0 %v9044_v46  ;;  %8458 = vmatpush3.bf16.msra.mxu1 %v9045_v47 }
 0xe81   : > { %8435 = vmatprep.subr.bf16.mxu0 %v9284_v15  ;;  %8459 = vmatprep.subr.bf16.mxu1 %v9284_v15 }
 0xe82   : > { %8437 = vmatprep.mubr.msk.bf16.mxu0 %vm9285_vm1, %v9284_v15  ;;  %8461 = vmatprep.mubr.msk.bf16.mxu1 %vm9285_vm1, %v9284_v15 }
 0xe84   : > { %8436 = vmatpush3.bf16.msra.mxu0 %v9046_v48  ;;  %8460 = vmatpush3.bf16.msra.mxu1 %v9047_v49 }
 0xe85   : > { %8449 = vmatprep.subr.bf16.mxu0 %v9284_v15  ;;  %8473 = vmatprep.subr.bf16.mxu1 %v9284_v15 }
 0xe87   : > { %8438 = vmatmul.mubr.msk.bf16.vlgmr.msra.gmra.mrb[60].mxu0 %vm692_vm2, %v9816_v42  ;;  %8462 = vmatmul.mubr.msk.bf16.vlgmr.msra.gmra.mrb[68].mxu1 %vm692_vm2, %v9816_v42 }
 0xe88   : > { %8450 = vmatpush3.bf16.msra.mxu0 %v9048_v50  ;;  %8474 = vmatpush3.bf16.msra.mxu1 %v9049_v51 }
 0xe89   : > { %8451 = vmatprep.subr.bf16.mxu0 %v9284_v15  ;;  %8475 = vmatprep.subr.bf16.mxu1 %v9284_v15 }
 0xe8a   : > { %8453 = vmatprep.mubr.msk.bf16.mxu0 %vm9285_vm1, %v9284_v15  ;;  %8477 = vmatprep.mubr.msk.bf16.mxu1 %vm9285_vm1, %v9284_v15 }
 0xe8c   : > { %8452 = vmatpush3.bf16.msra.mxu0 %v9050_v52  ;;  %8476 = vmatpush3.bf16.msra.mxu1 %v9051_v53 }
 0xe8d   : > { %8465 = vmatprep.subr.bf16.mxu0 %v9284_v15  ;;  %8489 = vmatprep.subr.bf16.mxu1 %v9284_v15 }
 0xe8f   : > { %8454 = vmatmul.mubr.msk.bf16.vlgmr.msra.gmra.mrb[64].mxu0 %vm692_vm2, %v9816_v42  ;;  %8478 = vmatmul.mubr.msk.bf16.vlgmr.msra.gmra.mrb[72].mxu1 %vm692_vm2, %v9816_v42 }
 0xe90   : > { %8466 = vmatpush3.bf16.msra.mxu0 %v9052_v54  ;;  %8490 = vmatpush3.bf16.msra.mxu1 %v9053_v55 }
 0xe91   : > { %8467 = vmatprep.subr.bf16.mxu0 %v9284_v15  ;;  %8491 = vmatprep.subr.bf16.mxu1 %v9284_v15 }
 0xe92   : > { %8469 = vmatprep.mubr.msk.bf16.mxu0 %vm9285_vm1, %v9284_v15  ;;  %8493 = vmatprep.mubr.msk.bf16.mxu1 %vm9285_vm1, %v9284_v15 }
 0xe94   : > { %8468 = vmatpush3.bf16.msra.mxu0 %v9054_v56  ;;  %8492 = vmatpush3.bf16.msra.mxu1 %v9055_v57 }
 0xe95   : > { %8481 = vmatprep.subr.bf16.mxu0 %v9284_v15  ;;  %8505 = vmatprep.subr.bf16.mxu1 %v9284_v15 }
 0xe97   : > { %8470 = vmatmul.mubr.msk.bf16.vlgmr.msra.gmra.mrb[68].mxu0 %vm692_vm2, %v9816_v42  ;;  %8494 = vmatmul.mubr.msk.bf16.vlgmr.msra.gmra.mrb[76].mxu1 %vm692_vm2, %v9816_v42 }
 0xe98   : > { %8482 = vmatpush3.bf16.msra.mxu0 %v9056_v58  ;;  %8485 = vmatprep.mubr.msk.bf16.mxu0 %vm9285_vm1, %v9284_v15 }
 0xe99   : > { %8483 = vmatprep.subr.bf16.mxu0 %v9284_v15  ;;  %8507 = vmatprep.mubr.msk.bf16.mxu1 %vm9285_vm1, %v9284_v15 }
 0xe9c   : > { %8484 = vmatpush3.bf16.msra.mxu0 %v9057_v59 }
 0xe9d   : > { %8497 = vmatprep.subr.bf16.mxu0 %v9284_v15 }
 0xe9f   : > { %8486 = vmatmul.mubr.msk.bf16.vlgmr.msra.gmra.mrb[72].mxu0 %vm692_vm2, %v9816_v42 }
 0xea0   : > { %8498 = vmatpush3.bf16.msra.mxu0 %v9058_v60  ;;  %8501 = vmatprep.mubr.msk.bf16.mxu0 %vm9285_vm1, %v9284_v15 }
 0xea1   : > { %8499 = vmatprep.subr.bf16.mxu0 %v9284_v15 }
 0xea4   : > { %8500 = vmatpush3.bf16.msra.mxu0 %v9059_v61 }
 0xea5   : > { %8511 = vmatprep.subr.bf16.mxu0 %v9284_v15 }
 0xea7   : > { %8502 = vmatmul.mubr.msk.bf16.vlgmr.msra.gmra.mrb[76].mxu0 %vm692_vm2, %v9816_v42 }
 0xea8   : > { %8513 = vmatprep.mubr.msk.bf16.mxu0 %vm9285_vm1, %v9284_v15 }
 0xf4a   : > { %v2433_v63 = vpop.f32.mrb[52].mxu0  ;;  %v2537_v0 = vpop.f32.mrb[60].mxu1 }
 0xf4b   : > { %v8415_v1 = vpop.f32.mrb[53].mxu0  ;;  %v8431_v2 = vpop.f32.mrb[61].mxu1  ;;  %v2595_v21 = vmul.f32 0.5, %v2433_v63  ;;  %v2597_v36 = vmul.f32 0.5, %v2537_v0 }
 0xf4c   : > { %v2436_v3 = vpop.f32.mrb[54].mxu0  ;;  %v2540_v4 = vpop.f32.mrb[62].mxu1 }
 0xf4d   : > { %v8416_v5 = vpop.f32.mrb[55].mxu0  ;;  %v8432_v8 = vpop.f32.mrb[63].mxu1  ;;  %v3049_v24 = vpack.c.bf16 %v2595_v21, %v2595_v21  ;;  %v3051_v41 = vpack.c.bf16 %v2597_v36, %v2597_v36 }
 0xf52   : > { %v2485_v9 = vpop.f32.mrb[56].mxu0  ;;  %v2662_v10 = vpop.f32.mrb[64].mxu1 }
 0xf53   : > { %v3053_v11 = vpack.c.bf16 %v2662_v10, %v2662_v10  ;;  %v8423_v12 = vpop.f32.mrb[57].mxu0  ;;  %v8447_v14 = vpop.f32.mrb[65].mxu1  ;;  %v2596_v53 = vmul.f32 0.5, %v2485_v9 }
 0xf54   : > { %v2488_v16 = vpop.f32.mrb[58].mxu0  ;;  %v2665_v62 = vpop.f32.mrb[66].mxu1 }
 0xf55   : > { %v3061_v17 = vsel %vm1531_vm5, %v3053_v11, 0  ;;  %v8424_v19 = vpop.f32.mrb[59].mxu0  ;;  %v8448_v20 = vpop.f32.mrb[67].mxu1  ;;  %v3050_v56 = vpack.c.bf16 %v2596_v53, %v2596_v53 }
 0xf56   : > { %8506 = vmatpush3.bf16.xpose.msra.mxu1 %v3061_v17 }
 0xf57   : > { %8517 = vmatprep.subr.bf16.mxu1 %v9284_v15 }
 0xf5a   : > { %v2589_v44 = vpop.f32.mrb[60].mxu0  ;;  %v2766_v22 = vpop.f32.mrb[68].mxu1 }
 0xf5b   : > { %v3055_v25 = vpack.c.bf16 %v2766_v22, %v2766_v22  ;;  %v8439_v29 = vpop.f32.mrb[61].mxu0  ;;  %v8463_v18 = vpop.f32.mrb[69].mxu1  ;;  %v2598_v2 = vmul.f32 0.5, %v2589_v44 }
 0xf5c   : > { %v2592_v30 = vpop.f32.mrb[62].mxu0  ;;  %v2769_v33 = vpop.f32.mrb[70].mxu1 }
 0xf5d   : > { %v3153_v34 = vsel %vm1531_vm5, %v3055_v25, 0  ;;  %v8440_v35 = vpop.f32.mrb[63].mxu0  ;;  %v8464_v23 = vpop.f32.mrb[71].mxu1  ;;  %8508 = vmatmul.mubr.msk.bf16.vlgmr.msra.gmra.mrb[80].mxu1 %vm1531_vm5, %v3049_v24  ;;  %v3052_v4 = vpack.c.bf16 %v2598_v2, %v2598_v2 }
 0xf5e   : > { %8518 = vmatpush3.bf16.xpose.msra.mxu1 %v3153_v34  ;;  %8519 = vmatprep.mubr.msk.bf16.mxu1 %vm9285_vm1, %v9284_v15 }
 0xf5f   : > { %8529 = vmatprep.subr.bf16.mxu1 %v9284_v15 }
 0xf62   : > { %v2714_v37 = vpop.f32.mrb[64].mxu0  ;;  %v2887_v38 = vpop.f32.mrb[72].mxu1 }
 0xf63   : > { %v3054_v42 = vpack.c.bf16 %v2714_v37, %v2714_v37  ;;  %v3289_v43 = vpack.c.bf16 %v2887_v38, %v2887_v38  ;;  %v8455_v45 = vpop.f32.mrb[65].mxu0  ;;  %v8479_v46 = vpop.f32.mrb[73].mxu1 }
 0xf64   : > { %v2717_v47 = vpop.f32.mrb[66].mxu0  ;;  %v2890_v48 = vpop.f32.mrb[74].mxu1 }
 0xf65   : > { %v3107_v49 = vsel %vm1531_vm5, %v3054_v42, 0  ;;  %v3297_v50 = vsel %vm1772_vm6, %v3289_v43, 0  ;;  %v8456_v51 = vpop.f32.mrb[67].mxu0  ;;  %v8480_v52 = vpop.f32.mrb[75].mxu1  ;;  %8520 = vmatmul.mubr.msk.bf16.vlgmr.msra.gmra.mrb[84].mxu1 %vm1531_vm5, %v3051_v41 }
 0xf66   : > { %8512 = vmatpush3.bf16.xpose.msra.mxu0 %v3107_v49  ;;  %8530 = vmatpush3.bf16.msra.mxu1 %v3297_v50 }
 0xf67   : > { %8523 = vmatprep.subr.bf16.mxu0 %v9284_v15  ;;  %8531 = vmatprep.mubr.msk.bf16.mxu1 %vm9285_vm1, %v9284_v15 }
 0xf68   : > { %8541 = vmatprep.subr.bf16.mxu1 %v9284_v15 }
 0xf6a   : > { %v2818_v54 = vpop.f32.mrb[68].mxu0  ;;  %v9954_v55 = vpop.f32.mrb[76].mxu1 }
 0xf6b   : > { %v3056_v57 = vpack.c.bf16 %v2818_v54, %v2818_v54  ;;  %v8471_v58 = vpop.f32.mrb[69].mxu0  ;;  %v8495_v59 = vpop.f32.mrb[77].mxu1 }
 0xf6c   : > { %v2821_v60 = vpop.f32.mrb[70].mxu0  ;;  %v2994_v61 = vpop.f32.mrb[78].mxu1 }
 0xf6d   : > { %v3199_v63 = vsel %vm1531_vm5, %v3056_v57, 0  ;;  %v8472_v0 = vpop.f32.mrb[71].mxu0  ;;  %v8496_v1 = vpop.f32.mrb[79].mxu1  ;;  %8514 = vmatmul.mubr.msk.bf16.vlgmr.msra.gmra.mrb[80].mxu0 %vm1531_vm5, %v3050_v56 }
 0xf6e   : > { %8524 = vmatpush3.bf16.xpose.msra.mxu0 %v3199_v63  ;;  %8525 = vmatprep.mubr.msk.bf16.mxu0 %vm9285_vm1, %v9284_v15 }
 0xf6f   : > { %8535 = vmatprep.subr.bf16.mxu0 %v9284_v15 }
 0xf72   : > { %v2939_v3 = vpop.f32.mrb[72].mxu0 }
 0xf73   : > { %v3290_v5 = vpack.c.bf16 %v2939_v3, %v2939_v3  ;;  %v8487_v8 = vpop.f32.mrb[73].mxu0 }
 0xf74   : > { %v2942_v9 = vpop.f32.mrb[74].mxu0 }
 0xf75   : > { %v3343_v10 = vsel %vm1772_vm6, %v3290_v5, 0  ;;  %v8488_v11 = vpop.f32.mrb[75].mxu0  ;;  %8526 = vmatmul.mubr.msk.bf16.vlgmr.msra.gmra.mrb[84].mxu0 %vm1531_vm5, %v3052_v4  ;;  %v3291_v4 = vpack.c.bf16 %v9954_v55, %v9954_v55 }
 0xf76   : > { %8536 = vmatpush3.bf16.msra.mxu0 %v3343_v10  ;;  %8537 = vmatprep.mubr.msk.bf16.mxu0 %vm9285_vm1, %v9284_v15 }
 0xf77   : > { %8547 = vmatprep.subr.bf16.mxu0 %v9284_v15  ;;  %v3389_v9 = vsel %vm1772_vm6, %v3291_v4, 0 }
 0xf7a   : > { %v9966_v12 = vpop.f32.mrb[76].mxu0 }
 0xf7b   : > { %v8503_v14 = vpop.f32.mrb[77].mxu0  ;;  %v3292_v55 = vpack.c.bf16 %v9966_v12, %v9966_v12 }
 0xf7c   : > { %v3046_v16 = vpop.f32.mrb[78].mxu0 }
 0xf7d   : > { %v8504_v62 = vpop.f32.mrb[79].mxu0 }
0x1030   : > { %v3097_v17 = vpop.f32.mrb[80].mxu1 }
0x1031   : > { %v8509_v19 = vpop.f32.mrb[81].mxu1  ;;  %v3241_v20 = vsel %vm1716_vm7, %v3097_v17, -inf }
0x1032   : > { %3242 = vmax.xlane.f32.xlu1 %v3241_v20  ;;  %v3100_v21 = vpop.f32.mrb[82].mxu1  ;;  %v3435_v20 = vsel %vm1772_vm6, %v3292_v55, 0 }
0x1033   : > { %v8510_v44 = vpop.f32.mrb[83].mxu1 }
0x1038   : > { %v3189_v22 = vpop.f32.mrb[84].mxu1 }
0x1039   : > { %v8521_v24 = vpop.f32.mrb[85].mxu1  ;;  %v3247_v23 = vsel %vm1716_vm7, %v3189_v22, -inf }
0x103a   : > { %v3192_v25 = vpop.f32.mrb[86].mxu1 }
0x103b   : > { %v8522_v29 = vpop.f32.mrb[87].mxu1  ;;  %v7630_v25 = vld [vmem:[%s10796_s10 + $0x8] sm:$0x3] }
0x103c   : > { %v3490_v29 = vsel %vm1965_vm8, %v7630_v25, 0 }
0x1040   : > { %v3143_v18 = vpop.f32.mrb[80].mxu0 }
0x1041   : > { %v8515_v30 = vpop.f32.mrb[81].mxu0  ;;  %v3244_v33 = vsel %vm1716_vm7, %v3143_v18, -inf }
0x1042   : > { %v3146_v34 = vpop.f32.mrb[82].mxu0  ;;  %3245 = vmax.xlane.f32.xlu1 %v3244_v33  ;;  %v7632_v33 = vld [vmem:[%s10796_s10 + $0xc] sm:$0x3] }
0x1043   : > { %v8516_v35 = vpop.f32.mrb[83].mxu0 }
0x1046   : > { %3248 = vmax.xlane.f32.xlu1 %v3247_v23 }
0x1048   : > { %v3235_v36 = vpop.f32.mrb[84].mxu0 }
0x1049   : > { %v8527_v37 = vpop.f32.mrb[85].mxu0  ;;  %v3250_v38 = vsel %vm1716_vm7, %v3235_v36, -inf }
0x104a   : > { %v3238_v41 = vpop.f32.mrb[86].mxu0  ;;  %3251 = vmax.xlane.f32.xlu1 %v3250_v38 }
0x104b   : > { %v8528_v42 = vpop.f32.mrb[87].mxu0  ;;  %v7633_v41 = vld [vmem:[%s10796_s10 + $0xe] sm:$0x3] }
0x10bf   : > { %v3243_v43 = vpop.xlane.xlu1 %3242 }
0x10c0   : > { %v3253_v45 = vsub.f32 %v3097_v17, %v3243_v43 }
0x10c2   : > { %v3257_v46 = vmul.f32 1.442695, %v3253_v45 }
0x10c4   : > { %9160 = vpow2.f32 %v3257_v46  ;;  %v3628_v46 = vsel %vm1965_vm8, %v7633_v41, 0  ;;  %v3699_v41 = vrot.slane %v9804_v31, %v9739_v39 }
0x10ce   : > { %v9161_v47 = vpop.eup %9160 }
0x10cf   : > { %v3246_v48 = vpop.xlane.xlu1 %3245  ;;  %v3265_v49 = vsel %vm1716_vm7, %v9161_v47, 0.0 }
0x10d0   : > { %v3254_v50 = vsub.f32 %v3143_v18, %v3246_v48  ;;  %3266 = vadd.xlane.f32.xlu1 %v3265_v49  ;;  %v7631_v18 = vld [vmem:[%s10796_s10 + $0xa] sm:$0x3] }
0x10d1   : > { %v3536_v30 = vsel %vm1965_vm8, %v7631_v18, 0 }
0x10d2   : > { %v3259_v51 = vmul.f32 1.442695, %v3254_v50 }
0x10d3   : > { %v3249_v52 = vpop.xlane.xlu1 %3248 }
0x10d4   : > { %9162 = vpow2.f32 %v3259_v51  ;;  %v3255_v53 = vsub.f32 %v3189_v22, %v3249_v52 }
0x10d6   : > { %v3261_v54 = vmul.f32 1.442695, %v3255_v53 }
0x10d7   : > { %v3252_v56 = vpop.xlane.xlu1 %3251 }
0x10d8   : > { %9164 = vpow2.f32 %v3261_v54  ;;  %v3256_v57 = vsub.f32 %v3235_v36, %v3252_v56  ;;  %v3582_v36 = vsel %vm1965_vm8, %v7632_v33, 0 }
0x10da   : > { %v3263_v58 = vmul.f32 1.442695, %v3256_v57 }
0x10dc   : > { %9166 = vpow2.f32 %v3263_v58 }
0x10de   : > { %v9163_v59 = vpop.eup %9162 }
0x10df   : > { %v3268_v60 = vsel %vm1716_vm7, %v9163_v59, 0.0 }
0x10e0   : > { %3269 = vadd.xlane.f32.xlu1 %v3268_v60 }
0x10e2   : > { %v9165_v61 = vpop.eup %9164 }
0x10e3   : > { %v3271_v63 = vsel %vm1716_vm7, %v9165_v61, 0.0 }
0x10e4   : > { %3272 = vadd.xlane.f32.xlu0 %v3271_v63 }
0x10e6   : > { %v9167_v0 = vpop.eup %9166 }
0x10e7   : > { %v3274_v1 = vsel %vm1716_vm7, %v9167_v0, 0.0 }
0x10e8   : > { %3275 = vadd.xlane.f32.xlu1 %v3274_v1 }
0x115d   : > { %v3267_v2 = vpop.xlane.xlu1 %3266 }
0x115e   : > { %9168 = vrcp.f32 %v3267_v2 }
0x1168   : > { %v9169_v3 = vpop.eup %9168 }
0x1169   : > { %v3281_v5 = vmul.f32 %v9169_v3, %v9161_v47 }
0x116b   : > { %v3285_v8 = vpack.c.bf16 %v3281_v5, %v3281_v5 }
0x116d   : > { %8532 = vmatmul.mubr.msk.bf16.vlgmr.msra.gmra.mrb[88].mxu1 %vm1716_vm7, %v3285_v8  ;;  %v3270_v10 = vpop.xlane.xlu1 %3269 }
0x116e   : > { %8542 = vmatpush3.bf16.msra.mxu1 %v3389_v9  ;;  %9170 = vrcp.f32 %v3270_v10  ;;  %8543 = vmatprep.mubr.msk.bf16.mxu1 %vm9285_vm1, %v9284_v15 }
0x116f   : > { %8553 = vmatprep.subr.bf16.mxu1 %v9284_v15 }
0x1171   : > { %v3273_v11 = vpop.xlane.xlu0 %3272 }
0x1172   : > { %9172 = vrcp.f32 %v3273_v11 }
0x1175   : > { %v3276_v14 = vpop.xlane.xlu1 %3275 }
0x1176   : > { %9174 = vrcp.f32 %v3276_v14 }
0x1178   : > { %v9171_v16 = vpop.eup %9170 }
0x1179   : > { %v3282_v62 = vmul.f32 %v9171_v16, %v9163_v59 }
0x117b   : > { %v3286_v17 = vpack.c.bf16 %v3282_v62, %v3282_v62 }
0x117c   : > { %v9173_v19 = vpop.eup %9172 }
0x117d   : > { %v3283_v21 = vmul.f32 %v9173_v19, %v9165_v61  ;;  %8538 = vmatmul.mubr.msk.bf16.vlgmr.msra.gmra.mrb[88].mxu0 %vm1716_vm7, %v3286_v17 }
0x117e   : > { %8548 = vmatpush3.bf16.msra.mxu0 %v3435_v20  ;;  %8549 = vmatprep.mubr.msk.bf16.mxu0 %vm9285_vm1, %v9284_v15 }
0x117f   : > { %v3287_v44 = vpack.c.bf16 %v3283_v21, %v3283_v21  ;;  %8559 = vmatprep.subr.bf16.mxu0 %v9284_v15 }
0x1180   : > { %v9175_v22 = vpop.eup %9174 }
0x1181   : > { %v3284_v24 = vmul.f32 %v9175_v22, %v9167_v0  ;;  %8544 = vmatmul.mubr.msk.bf16.vlgmr.msra.gmra.mrb[92].mxu1 %vm1716_vm7, %v3287_v44  ;;  %v3681_v22 = vrot.slane %v9804_v31, %v9449_v6 }
0x1182   : > { %8555 = vmatprep.mubr.msk.bf16.mxu1 %vm9285_vm1, %v9284_v15  ;;  %8554 = vmatpush3.bf16.msra.mxu1 %v3490_v29 }
0x1183   : > { %v3288_v12 = vpack.c.bf16 %v3284_v24, %v3284_v24  ;;  %8565 = vmatprep.subr.bf16.mxu1 %v9284_v15 }
0x1185   : > { %8550 = vmatmul.mubr.msk.bf16.vlgmr.msra.gmra.mrb[92].mxu0 %vm1716_vm7, %v3288_v12 }
0x1186   : > { %8561 = vmatprep.mubr.msk.bf16.mxu0 %vm9285_vm1, %v9284_v15  ;;  %8560 = vmatpush3.bf16.msra.mxu0 %v3536_v30 }
0x1187   : > { %8571 = vmatprep.subr.bf16.mxu0 %v9284_v15 }
0x1240   : > { %v3333_v34 = vpop.f32.mrb[88].mxu1 }
0x1241   : > { %v3477_v35 = vpack.c.bf16 %v3333_v34, %v3333_v34  ;;  %v8533_v23 = vpop.f32.mrb[89].mxu1 }
0x1242   : > { %v3336_v37 = vpop.f32.mrb[90].mxu1  ;;  %v9060_v23 = vld [vmem:[%s10798_s12 + $0x10] sm:$0xff]  }
0x1243   : > { %v8534_v38 = vpop.f32.mrb[91].mxu1  ;;  %8556 = vmatmul.mubr.msk.bf16.vlgmr.msra.gmra.mrb[96].mxu1 %vm1531_vm5, %v3477_v35 }
0x1244   : > { %8566 = vmatpush3.bf16.msra.mxu1 %v3582_v36  ;;  %8567 = vmatprep.mubr.msk.bf16.mxu1 %vm9285_vm1, %v9284_v15 }
0x1245   : > { %8577 = vmatprep.subr.bf16.mxu1 %v9284_v15 }
0x1250   : > { %v3379_v42 = vpop.f32.mrb[88].mxu0 }
0x1251   : > { %v3478_v43 = vpack.c.bf16 %v3379_v42, %v3379_v42  ;;  %v8539_v45 = vpop.f32.mrb[89].mxu0 }
0x1252   : > { %v3382_v47 = vpop.f32.mrb[90].mxu0  ;;  %v3704_v45 = vrot.slane %v9804_v31, %v9742_v40 }
0x1253   : > { %v8540_v48 = vpop.f32.mrb[91].mxu0  ;;  %8562 = vmatmul.mubr.msk.bf16.vlgmr.msra.gmra.mrb[96].mxu0 %vm1531_vm5, %v3478_v43 }
0x1254   : > { %v3425_v49 = vpop.f32.mrb[92].mxu1  ;;  %8572 = vmatpush3.bf16.msra.mxu0 %v3628_v46  ;;  %8573 = vmatprep.mubr.msk.bf16.mxu0 %vm9285_vm1, %v9284_v15 }
0x1255   : > { %v3479_v50 = vpack.c.bf16 %v3425_v49, %v3425_v49  ;;  %v8545_v51 = vpop.f32.mrb[93].mxu1  ;;  %8585 = vmatprep.subr.bf16.mxu0 %v9284_v15  ;;  %v9062_v49 = vld [vmem:[%s10800_s14 + $0x20] sm:$0xff]  }
0x1256   : > { %v3428_v52 = vpop.f32.mrb[94].mxu1  ;;  %v9064_v51 = vld [vmem:[%s10800_s14 + $0x30] sm:$0xff]  }
0x1257   : > { %v8546_v53 = vpop.f32.mrb[95].mxu1  ;;  %8568 = vmatmul.mubr.msk.bf16.vlgmr.msra.gmra.mrb[100].mxu1 %vm1531_vm5, %v3479_v50  ;;  %v9063_v50 = vld [vmem:[%s10800_s14 + $0x28] sm:$0xff]   ;;  %v9065_v52 = vld [vmem:[%s10800_s14 + $0x38] sm:$0xff]  }
0x1258   : > { %v3471_v54 = vpop.f32.mrb[92].mxu0  ;;  %8581 = vmatprep.mubr.msk.bf16.mxu1 %vm9285_vm1, %v9284_v15  ;;  %8578 = vmatpush3.bf16.msra.mxu1 %v9060_v23  ;;  %v7643_v53 = vld [vmem:[%s10799_s13 + $0x1] ss:$0 sm:$0xff] }
0x1259   : > { %v3480_v56 = vpack.c.bf16 %v3471_v54, %v3471_v54  ;;  %v8551_v57 = vpop.f32.mrb[93].mxu0  ;;  %8579 = vmatprep.subr.bf16.mxu1 %v9284_v15 }
0x125a   : > { %v3474_v58 = vpop.f32.mrb[94].mxu0 }
0x125b   : > { %v8552_v59 = vpop.f32.mrb[95].mxu0  ;;  %8574 = vmatmul.mubr.msk.bf16.vlgmr.msra.gmra.mrb[100].mxu0 %vm1531_vm5, %v3480_v56 }
0x125c   : > { %8593 = vmatprep.mubr.msk.bf16.mxu0 %vm9285_vm1, %v9284_v15  ;;  %8586 = vmatpush3.bf16.msra.mxu0 %v9062_v49 }
0x125d   : > { %8587 = vmatprep.subr.bf16.mxu0 %v9284_v15 }
0x1260   : > { %8588 = vmatpush3.bf16.msra.mxu0 %v9063_v50 }
0x1261   : > { %8589 = vmatprep.subr.bf16.mxu0 %v9284_v15 }
0x1264   : > { %8590 = vmatpush3.bf16.msra.mxu0 %v9064_v51 }
0x1265   : > { %8591 = vmatprep.subr.bf16.mxu0 %v9284_v15 }
0x1268   : > { %8592 = vmatpush3.bf16.msra.mxu0 %v9065_v52 }
0x1269   : > { %8610 = vmatprep.subr.bf16.mxu0 %v9284_v15 }
0x1316   : > { %v3526_v60 = vpop.f32.mrb[96].mxu1 }
0x1317   : > { %v8557_v61 = vpop.f32.mrb[97].mxu1  ;;  %v3670_v2 = vsel %vm692_vm2, %v3526_v60, 0.0 }
0x1318   : > { %v3529_v63 = vpop.f32.mrb[98].mxu1 }
0x1319   : > { %v8558_v0 = vpop.f32.mrb[99].mxu1 }
0x1326   : > { %v3572_v1 = vpop.f32.mrb[96].mxu0 }
0x1327   : > { %v3671_v3 = vsel %vm692_vm2, %v3572_v1, 0.0  ;;  %v8563_v4 = vpop.f32.mrb[97].mxu0 }
0x1328   : > { %v3672_v5 = vadd.f32 %v3671_v3, %v3670_v2  ;;  %v3575_v8 = vpop.f32.mrb[98].mxu0 }
0x1329   : > { %v8564_v9 = vpop.f32.mrb[99].mxu0 }
0x132a   : > { %v3618_v10 = vpop.f32.mrb[100].mxu1  ;;  %v3865_v9 = vrot.slane %v9804_v31, %v9774_v7 }
0x132b   : > { %v3673_v11 = vsel %vm692_vm2, %v3618_v10, 0.0  ;;  %v8569_v14 = vpop.f32.mrb[101].mxu1 }
0x132c   : > { %v3674_v16 = vadd.f32 %v3673_v11, %v3672_v5  ;;  %v3621_v55 = vpop.f32.mrb[102].mxu1 }
0x132d   : > { %v8570_v62 = vpop.f32.mrb[103].mxu1 }
0x132e   : > { %v3664_v17 = vpop.f32.mrb[100].mxu0 }
0x132f   : > { %v3675_v19 = vsel %vm692_vm2, %v3664_v17, 0.0  ;;  %v8575_v20 = vpop.f32.mrb[101].mxu0 }
0x1330   : > { %v3676_v21 = vadd.f32 %v3675_v19, %v3674_v16  ;;  %v3667_v44 = vpop.f32.mrb[102].mxu0 }
0x1331   : > { %v8576_v24 = vpop.f32.mrb[103].mxu0 }
0x1332   : > { %v3677_v12 = vadd.f32 %v3676_v21, %v9779_v13  ;;  %v9061_v13 = vld [vmem:[%s10798_s12 + $0x18] sm:$0xff]  }
0x1333   : > { %8580 = vmatpush3.bf16.msra.mxu1 %v9061_v13 }
0x1334   : > { %v3682_v25 = vadd.f32 %v3681_v22, %v3677_v12 }
0x1336   : > { %v3683_v29 = vsel %vm692_vm2, %v3682_v25, 0.0 }
0x1337   : > { %3684 = vadd.xlane.f32.xlu0 %v3683_v29  ;;  %v9274_v29 = vld [vmem:[%s10792_s6] sm:$0xff] }
0x13c4   : > { %v3685_v18 = vpop.xlane.xlu0 %3684 }
0x13c5   : > { %v3686_v30 = vmul.f32 0.03125, %v3685_v18  ;;  %v3892_v18 = vsub.s32 7, %v9420_v26 }
0x13c7   : > { %v3687_v33 = vsub.f32 %v3682_v25, %v3686_v30  ;;  %v3893_v23 = vrot.slane %v9274_v29, %v3892_v18  ;;  %v9075_v18 = vld [vmem:[%s10794_s8 + $0x90] sm:$0xff]  }
0x13c9   : > { %v3688_v34 = vmul.f32 %v3687_v33, %v3687_v33 }
0x13cb   : > { %v3689_v35 = vsel %vm692_vm2, %v3688_v34, 0.0  ;;  %v3888_v34 = vrot.slane %v9274_v29, %v9742_v40 }
0x13cc   : > { %3690 = vadd.xlane.f32.xlu1 %v3689_v35 }
0x1459   : > { %v3691_v36 = vpop.xlane.xlu1 %3690 }
0x145a   : > { %v3692_v37 = vmul.f32 0.03125, %v3691_v36 }
0x145c   : > { %v3693_v38 = vadd.f32 1e-05, %v3692_v37 }
0x145e   : > { %9176 = vrsqrt.f32 %v3693_v38 }
0x1468   : > { %v9177_v42 = vpop.eup %9176 }
0x1469   : > { %v3695_v43 = vmul.f32 %v9177_v42, %v3687_v33  ;;  %v4008_v42 = vld [vmem:[%s10789_s3] sm:$0xff] }
0x146b   : > { %v3700_v46 = vmul.f32 %v3699_v41, %v3695_v43 }
0x146d   : > { %v3705_v47 = vadd.f32 %v3704_v45, %v3700_v46  ;;  %v4009_v46 = vld [vmem:[%s10789_s3 + $0x8] sm:$0xff] }
0x146f   : > { %v3706_v48 = vpack.c.bf16 %v3705_v47, %v3705_v47 }
0x1471   : > { %8582 = vmatmul.mubr.msk.bf16.vlgmr.msra.gmra.mrb[104].mxu1 %vm692_vm2, %v3706_v48 }
0x1544   : > { %v3769_v54 = vpop.f32.mrb[104].mxu1 }
0x1545   : > { %v3770_v56 = vadd.f32 %v7643_v53, %v3769_v54  ;;  %v8583_v57 = vpop.f32.mrb[105].mxu1 }
0x1546   : > { %v3772_v58 = vpop.f32.mrb[106].mxu1 }
0x1547   : > { %v3776_v59 = vmul.f32 0.044715, %v3770_v56  ;;  %v8584_v60 = vpop.f32.mrb[107].mxu1  ;;  %v3775_v3 = vmul.f32 0.5, %v3770_v56 }
0x1549   : > { %v3777_v61 = vmul.f32 %v3776_v59, %v3770_v56 }
0x154b   : > { %v3778_v63 = vmul.f32 %v3777_v61, %v3770_v56 }
0x154d   : > { %v3779_v0 = vadd.f32 %v3778_v63, %v3770_v56  ;;  %v9066_v63 = vld [vmem:[%s10793_s7 + $0x80] sm:$0xff]  }
0x154f   : > { %v3780_v1 = vmul.f32 0.7978846, %v3779_v0  ;;  %v9067_v0 = vld [vmem:[%s10793_s7 + $0x90] sm:$0xff]  }
0x1551   : > { %9178 = vtanh.f32 %v3780_v1  ;;  %v9068_v1 = vld [vmem:[%s10793_s7 + $0x88] sm:$0xff]  }
0x155b   : > { %v9179_v2 = vpop.eup %9178 }
0x155c   : > { %v3782_v4 = vadd.f32 1.0, %v9179_v2  ;;  %v9069_v2 = vld [vmem:[%s10793_s7 + $0x98] sm:$0xff]  }
0x155e   : > { %v3783_v5 = vmul.f32 %v3782_v4, %v3775_v3 }
0x1560   : > { %v3784_v8 = vpack.c.bf16 %v3783_v5, %v3783_v5 }
0x1562   : > { %8594 = vmatmul.mubr.msk.bf16.vlgmr.msra.gmra.mrb[104].mxu0 %vm571_vm0, %v3784_v8 }
0x1563   : > { %8614 = vmatprep.mubr.msk.bf16.mxu0 %vm9285_vm1, %v9284_v15  ;;  %8611 = vmatpush3.bf16.msra.mxu0 %v9067_v0 }
0x1564   : > { %8612 = vmatprep.subr.bf16.mxu0 %v9284_v15 }
0x1567   : > { %8613 = vmatpush3.bf16.msra.mxu0 %v9069_v2 }
0x1568   : > { %8626 = vmatprep.subr.bf16.mxu0 %v9284_v15 }
0x1635   : > { %v3855_v10 = vpop.f32.mrb[104].mxu0 }
0x1636   : > { %v3861_v11 = vadd.f32 %v3855_v10, %v3682_v25  ;;  %v8595_v14 = vpop.f32.mrb[105].mxu0 }
0x1637   : > { %v3858_v16 = vpop.f32.mrb[106].mxu0 }
0x1638   : > { %v8596_v55 = vpop.f32.mrb[107].mxu0  ;;  %v3866_v62 = vadd.f32 %v3865_v9, %v3861_v11  ;;  %v10124_v11 = vld [vmem:[%s10797_s11 + $0x10] sm:$0x3f] }
0x1639   : > { %v4043_v16 = vrot.slane %v10124_v11, %v9423_v27 }
0x163a   : > { %v3867_v17 = vsel %vm692_vm2, %v3866_v62, 0.0 }
0x163b   : > { %3868 = vadd.xlane.f32.xlu0 %v3867_v17  ;;  %v4049_v17 = vrot.slane %v10124_v11, %v9430_v32 }
0x1668   : > { %3895 = vxpose.xlu0.b32.start.end [1/1] (short) (narrow) %v9461_v28, 16  ;;  %v3883_v28 = vrot.slane %v9274_v29, %v9739_v39  ;;  %v9073_v29 = vld [vmem:[%s10793_s7 + $0xb8] sm:$0xff]  }
0x16c8   : > { %v3869_v19 = vpop.xlane.xlu0 %3868 }
0x16c9   : > { %v3870_v20 = vmul.f32 0.03125, %v3869_v19 }
0x16cb   : > { %v3871_v21 = vsub.f32 %v3866_v62, %v3870_v20 }
0x16cd   : > { %v3872_v44 = vmul.f32 %v3871_v21, %v3871_v21 }
0x16cf   : > { %v3873_v22 = vsel %vm692_vm2, %v3872_v44, 0.0 }
0x16d0   : > { %3874 = vadd.xlane.f32.xlu1 %v3873_v22 }
0x16e8   : > { %v3911_v24 = vpop.trf.xlu0 }
0x16e9   : > { %8599 = vmatprep.mubr.msk.f32.mxu1 %vm1716_vm7, %v3911_v24  ;;  %v9070_v24 = vld [vmem:[%s10793_s7 + $0xa0] sm:$0xff]  }
0x16ec   : > { %v3912_v37 = vpop.trf.xlu0 }
0x175d   : > { %v3875_v31 = vpop.xlane.xlu1 %3874 }
0x175e   : > { %v3876_v12 = vmul.f32 0.03125, %v3875_v31  ;;  %v9071_v31 = vld [vmem:[%s10793_s7 + $0xb0] sm:$0xff]  }
0x1760   : > { %v3877_v25 = vadd.f32 1e-05, %v3876_v12 }
0x1762   : > { %9180 = vrsqrt.f32 %v3877_v25  ;;  %v9072_v25 = vld [vmem:[%s10793_s7 + $0xa8] sm:$0xff]  }
0x176c   : > { %v9181_v30 = vpop.eup %9180 }
0x176d   : > { %v3879_v33 = vmul.f32 %v9181_v30, %v3871_v21  ;;  %v9076_v30 = vld [vmem:[%s10794_s8 + $0x88] sm:$0xff]  }
0x176f   : > { %v3884_v35 = vmul.f32 %v3883_v28, %v3879_v33  ;;  %v9074_v28 = vld [vmem:[%s10794_s8 + $0x80] sm:$0xff]   ;;  %v9077_v33 = vld [vmem:[%s10794_s8 + $0x98] sm:$0xff]  }
0x1771   : > { %v3889_v13 = vadd.f32 %v3888_v34, %v3884_v35  ;;  %v9078_v34 = vld [vmem:[%s10794_s8 + $0xa0] sm:$0xff]   ;;  %v9079_v35 = vld [vmem:[%s10794_s8 + $0xb0] sm:$0xff]  }
0x1773   : > { %v3894_v36 = vsub.f32 %v3889_v13, %v3893_v23  ;;  %v9081_v13 = vld [vmem:[%s10794_s8 + $0xb8] sm:$0xff]  }
0x1775   : > { %8597 = vmatprep.subr.mxu1 %v3894_v36 }
0x1776   : > { %8598 = vmatpush3.msra.mxu1 %v3894_v36  ;;  %v9082_v36 = vld [vmem:[%s10795_s9 + $0x80] sm:$0xff]  }
0x1777   : > { %8600 = vmatmul.mubr.msk.f32.vlgmr.msra.gmra.mrb[2].mxu1 %vm1716_vm7, %v3912_v37  ;;  %8602 = vmatprep.subr.bf16.mxu1 %v9284_v15  ;;  %v9083_v37 = vld [vmem:[%s10795_s9 + $0x90] sm:$0xff]  }
0x1778   : > { %8606 = vmatprep.mubr.msk.bf16.mxu1 %vm9285_vm1, %v9284_v15  ;;  %8603 = vmatpush3.bf16.msra.mxu1 %v9066_v63 }
0x1779   : > { %8604 = vmatprep.subr.bf16.mxu1 %v9284_v15 }
0x177c   : > { %8605 = vmatpush3.bf16.msra.mxu1 %v9068_v1 }
0x177d   : > { %8618 = vmatprep.subr.bf16.mxu1 %v9284_v15 }
0x184a   : > { %v8601_v38 = vpop.f32.mrb[2].mxu1 }
0x184b   : > { %v3999_v41 = vpop.f32.mrb[3].mxu1  ;;  %v4005_v43 = vadd.f32 %v8601_v38, %v3893_v23  ;;  %v9084_v38 = vld [vmem:[%s10795_s9 + $0x88] sm:$0xff]  }
0x184c   : > { %v4000_v45 = vadd.f32 %v3999_v41, %v3893_v23  ;;  %v9080_v23 = vld [vmem:[%s10794_s8 + $0xa8] sm:$0xff]   ;;  %v9085_v41 = vld [vmem:[%s10795_s9 + $0x98] sm:$0xff]  }
0x184d   : > { %v10095_v48 = vadd.f32 %v4009_v46, %v4005_v43  ;;  %v9087_v43 = vld [vmem:[%s10795_s9 + $0xb0] sm:$0xff]   ;;  %v9089_v46 = vld [vmem:[%s10795_s9 + $0xb8] sm:$0xff]  }
0x184e   : > { %v10093_v47 = vadd.f32 %v4008_v42, %v4000_v45  ;;  %v9086_v42 = vld [vmem:[%s10795_s9 + $0xa0] sm:$0xff]   ;;  %v9088_v45 = vld [vmem:[%s10795_s9 + $0xa8] sm:$0xff]  }
0x184f   : > { %v4017_v50 = vsel %vm692_vm2, %v10095_v48, 0.0 }
0x1850   : > { %v4014_v49 = vsel %vm692_vm2, %v10093_v47, 0.0 }
0x1851   : > { %4015 = vadd.xlane.f32.xlu1 %v4014_v49 }
0x1855   : > { %4018 = vadd.xlane.f32.xlu1 %v4017_v50 }
0x18de   : > { %v4016_v51 = vpop.xlane.xlu1 %4015 }
0x18df   : > { %v4020_v52 = vmul.f32 0.03125, %v4016_v51 }
0x18e1   : > { %v4022_v53 = vsub.f32 %v10093_v47, %v4020_v52 }
0x18e2   : > { %v4019_v54 = vpop.xlane.xlu1 %4018 }
0x18e3   : > { %v4021_v56 = vmul.f32 0.03125, %v4019_v54  ;;  %v4024_v57 = vmul.f32 %v4022_v53, %v4022_v53 }
0x18e5   : > { %v4023_v58 = vsub.f32 %v10095_v48, %v4021_v56  ;;  %v4026_v59 = vsel %vm692_vm2, %v4024_v57, 0.0 }
0x18e6   : > { %4027 = vadd.xlane.f32.xlu1 %v4026_v59 }
0x18e7   : > { %v4025_v60 = vmul.f32 %v4023_v58, %v4023_v58 }
0x18e9   : > { %v4029_v61 = vsel %vm692_vm2, %v4025_v60, 0.0 }
0x18ea   : > { %4030 = vadd.xlane.f32.xlu1 %v4029_v61 }
0x1973   : > { %v4028_v3 = vpop.xlane.xlu1 %4027 }
0x1974   : > { %v4032_v4 = vmul.f32 0.03125, %v4028_v3 }
0x1976   : > { %v4034_v5 = vadd.f32 1e-05, %v4032_v4 }
0x1977   : > { %v4031_v8 = vpop.xlane.xlu1 %4030 }
0x1978   : > { %9182 = vrsqrt.f32 %v4034_v5  ;;  %v4033_v9 = vmul.f32 0.03125, %v4031_v8 }
0x197a   : > { %v4035_v10 = vadd.f32 1e-05, %v4033_v9 }
0x197c   : > { %9184 = vrsqrt.f32 %v4035_v10 }
0x1982   : > { %v9183_v14 = vpop.eup %9182 }
0x1983   : > { %v4038_v55 = vmul.f32 %v9183_v14, %v4022_v53 }
0x1985   : > { %v4044_v19 = vmul.f32 %v4043_v16, %v4038_v55 }
0x1986   : > { %v9185_v62 = vpop.eup %9184 }
0x1987   : > { %v4039_v20 = vmul.f32 %v9185_v62, %v4023_v58  ;;  %v4050_v44 = vadd.f32 %v4049_v17, %v4044_v19 }
0x1989   : > { %v4045_v21 = vmul.f32 %v4043_v16, %v4039_v20 }
0x198b   : > { %v4051_v22 = vadd.f32 %v4049_v17, %v4045_v21 }
0x198d   : > { %v10136_v12 = vpack.c.bf16 %v4051_v22, %v4050_v44 }
0x198f   : > { %8607 = vmatmul.mubr.msk.bf16.vlgmr.msra.gmra.mrb[108].mxu1 %vm692_vm2, %v10136_v12  ;;  %8615 = vmatmul.mubr.msk.bf16.vlgmr.msra.gmra.mrb[108].mxu0 %vm692_vm2, %v10136_v12 }
0x1990   : > { %8619 = vmatpush3.bf16.msra.mxu1 %v9070_v24  ;;  %8627 = vmatpush3.bf16.msra.mxu0 %v9071_v31 }
0x1991   : > { %8620 = vmatprep.subr.bf16.mxu1 %v9284_v15  ;;  %8628 = vmatprep.subr.bf16.mxu0 %v9284_v15 }
0x1992   : > { %8622 = vmatprep.mubr.msk.bf16.mxu1 %vm9285_vm1, %v9284_v15  ;;  %8630 = vmatprep.mubr.msk.bf16.mxu0 %vm9285_vm1, %v9284_v15 }
0x1994   : > { %8621 = vmatpush3.bf16.msra.mxu1 %v9072_v25  ;;  %8629 = vmatpush3.bf16.msra.mxu0 %v9073_v29 }
0x1995   : > { %8634 = vmatprep.subr.bf16.mxu1 %v9284_v15  ;;  %8642 = vmatprep.subr.bf16.mxu0 %v9284_v15 }
0x1997   : > { %8623 = vmatmul.mubr.msk.bf16.vlgmr.msra.gmra.mrb[112].mxu1 %vm692_vm2, %v10136_v12  ;;  %8631 = vmatmul.mubr.msk.bf16.vlgmr.msra.gmra.mrb[112].mxu0 %vm692_vm2, %v10136_v12 }
0x1998   : > { %8635 = vmatpush3.bf16.msra.mxu1 %v9074_v28  ;;  %8643 = vmatpush3.bf16.msra.mxu0 %v9075_v18 }
0x1999   : > { %8636 = vmatprep.subr.bf16.mxu1 %v9284_v15  ;;  %8644 = vmatprep.subr.bf16.mxu0 %v9284_v15 }
0x199a   : > { %8638 = vmatprep.mubr.msk.bf16.mxu1 %vm9285_vm1, %v9284_v15  ;;  %8646 = vmatprep.mubr.msk.bf16.mxu0 %vm9285_vm1, %v9284_v15 }
0x199c   : > { %8637 = vmatpush3.bf16.msra.mxu1 %v9076_v30  ;;  %8645 = vmatpush3.bf16.msra.mxu0 %v9077_v33 }
0x199d   : > { %8650 = vmatprep.subr.bf16.mxu1 %v9284_v15  ;;  %8658 = vmatprep.subr.bf16.mxu0 %v9284_v15 }
0x199f   : > { %8639 = vmatmul.mubr.msk.bf16.vlgmr.msra.gmra.mrb[116].mxu1 %vm692_vm2, %v10136_v12  ;;  %8647 = vmatmul.mubr.msk.bf16.vlgmr.msra.gmra.mrb[116].mxu0 %vm692_vm2, %v10136_v12 }
0x19a0   : > { %8651 = vmatpush3.bf16.msra.mxu1 %v9078_v34  ;;  %8659 = vmatpush3.bf16.msra.mxu0 %v9079_v35 }
0x19a1   : > { %8652 = vmatprep.subr.bf16.mxu1 %v9284_v15  ;;  %8660 = vmatprep.subr.bf16.mxu0 %v9284_v15 }
0x19a2   : > { %8654 = vmatprep.mubr.msk.bf16.mxu1 %vm9285_vm1, %v9284_v15  ;;  %8662 = vmatprep.mubr.msk.bf16.mxu0 %vm9285_vm1, %v9284_v15 }
0x19a4   : > { %8653 = vmatpush3.bf16.msra.mxu1 %v9080_v23  ;;  %8661 = vmatpush3.bf16.msra.mxu0 %v9081_v13 }
0x19a5   : > { %8666 = vmatprep.subr.bf16.mxu1 %v9284_v15  ;;  %8674 = vmatprep.subr.bf16.mxu0 %v9284_v15 }
0x19a7   : > { %8655 = vmatmul.mubr.msk.bf16.vlgmr.msra.gmra.mrb[120].mxu1 %vm692_vm2, %v10136_v12  ;;  %8663 = vmatmul.mubr.msk.bf16.vlgmr.msra.gmra.mrb[120].mxu0 %vm692_vm2, %v10136_v12 }
0x19a8   : > { %8667 = vmatpush3.bf16.msra.mxu1 %v9082_v36  ;;  %8675 = vmatpush3.bf16.msra.mxu0 %v9083_v37 }
0x19a9   : > { %8668 = vmatprep.subr.bf16.mxu1 %v9284_v15  ;;  %8676 = vmatprep.subr.bf16.mxu0 %v9284_v15 }
0x19aa   : > { %8670 = vmatprep.mubr.msk.bf16.mxu1 %vm9285_vm1, %v9284_v15  ;;  %8678 = vmatprep.mubr.msk.bf16.mxu0 %vm9285_vm1, %v9284_v15 }
0x19ac   : > { %8669 = vmatpush3.bf16.msra.mxu1 %v9084_v38  ;;  %8677 = vmatpush3.bf16.msra.mxu0 %v9085_v41 }
0x19ad   : > { %8682 = vmatprep.subr.bf16.mxu1 %v9284_v15  ;;  %8690 = vmatprep.subr.bf16.mxu0 %v9284_v15 }
0x19af   : > { %8671 = vmatmul.mubr.msk.bf16.vlgmr.msra.gmra.mrb[124].mxu1 %vm692_vm2, %v10136_v12  ;;  %8679 = vmatmul.mubr.msk.bf16.vlgmr.msra.gmra.mrb[124].mxu0 %vm692_vm2, %v10136_v12 }
0x19b0   : > { %8683 = vmatpush3.bf16.msra.mxu1 %v9086_v42  ;;  %8691 = vmatpush3.bf16.msra.mxu0 %v9087_v43 }
0x19b1   : > { %8684 = vmatprep.subr.bf16.mxu1 %v9284_v15  ;;  %8692 = vmatprep.subr.bf16.mxu0 %v9284_v15 }
0x19b2   : > { %8686 = vmatprep.mubr.msk.bf16.mxu1 %vm9285_vm1, %v9284_v15  ;;  %8694 = vmatprep.mubr.msk.bf16.mxu0 %vm9285_vm1, %v9284_v15 }
0x19b4   : > { %8685 = vmatpush3.bf16.msra.mxu1 %v9088_v45  ;;  %8693 = vmatpush3.bf16.msra.mxu0 %v9089_v46 }
0x19b5   : > { %8698 = vmatprep.subr.bf16.mxu1 %v9284_v15  ;;  %8704 = vmatprep.subr.bf16.mxu0 %v9284_v15 }
0x19b7   : > { %8687 = vmatmul.mubr.msk.bf16.vlgmr.msra.gmra.mrb[128].mxu1 %vm692_vm2, %v10136_v12  ;;  %8695 = vmatmul.mubr.msk.bf16.vlgmr.msra.gmra.mrb[128].mxu0 %vm692_vm2, %v10136_v12 }
0x19b8   : > { %8700 = vmatprep.mubr.msk.bf16.mxu1 %vm9285_vm1, %v9284_v15  ;;  %8706 = vmatprep.mubr.msk.bf16.mxu0 %vm9285_vm1, %v9284_v15 }
0x1a62   : > { %v4119_v49 = vpop.f32.mrb[108].mxu1  ;;  %v4172_v50 = vpop.f32.mrb[108].mxu0 }
0x1a63   : > { %v8608_v51 = vpop.f32.mrb[109].mxu1  ;;  %v8616_v52 = vpop.f32.mrb[109].mxu0  ;;  %v4285_v56 = vmul.f32 0.5, %v4119_v49  ;;  %v4287_v57 = vmul.f32 0.5, %v4172_v50 }
0x1a64   : > { %v4122_v53 = vpop.f32.mrb[110].mxu1  ;;  %v4175_v54 = vpop.f32.mrb[110].mxu0 }
0x1a65   : > { %v4286_v58 = vmul.f32 0.5, %v4122_v53  ;;  %v4288_v59 = vmul.f32 0.5, %v4175_v54  ;;  %v8609_v60 = vpop.f32.mrb[111].mxu1  ;;  %v8617_v61 = vpop.f32.mrb[111].mxu0 }
0x1a67   : > { %v4751_v63 = vpack.c.bf16 %v4286_v58, %v4285_v56  ;;  %v4752_v0 = vpack.c.bf16 %v4288_v59, %v4287_v57 }
0x1a6a   : > { %v4225_v1 = vpop.f32.mrb[112].mxu1  ;;  %v4278_v2 = vpop.f32.mrb[112].mxu0 }
0x1a6b   : > { %v8624_v3 = vpop.f32.mrb[113].mxu1  ;;  %v8632_v4 = vpop.f32.mrb[113].mxu0  ;;  %v4289_v9 = vmul.f32 0.5, %v4225_v1  ;;  %v4291_v10 = vmul.f32 0.5, %v4278_v2 }
0x1a6c   : > { %v4228_v5 = vpop.f32.mrb[114].mxu1  ;;  %v4281_v8 = vpop.f32.mrb[114].mxu0 }
0x1a6d   : > { %v4290_v14 = vmul.f32 0.5, %v4228_v5  ;;  %v4292_v16 = vmul.f32 0.5, %v4281_v8  ;;  %v8625_v55 = vpop.f32.mrb[115].mxu1  ;;  %v8633_v62 = vpop.f32.mrb[115].mxu0 }
0x1a6f   : > { %v4753_v17 = vpack.c.bf16 %v4290_v14, %v4289_v9  ;;  %v4754_v19 = vpack.c.bf16 %v4292_v16, %v4291_v10 }
0x1a72   : > { %v4356_v20 = vpop.f32.mrb[116].mxu1  ;;  %v4409_v21 = vpop.f32.mrb[116].mxu0 }
0x1a73   : > { %v8640_v44 = vpop.f32.mrb[117].mxu1  ;;  %v8648_v22 = vpop.f32.mrb[117].mxu0 }
0x1a74   : > { %v4359_v24 = vpop.f32.mrb[118].mxu1  ;;  %v4412_v31 = vpop.f32.mrb[118].mxu0 }
0x1a75   : > { %v4755_v12 = vpack.c.bf16 %v4359_v24, %v4356_v20  ;;  %v4756_v25 = vpack.c.bf16 %v4412_v31, %v4409_v21  ;;  %v8641_v29 = vpop.f32.mrb[119].mxu1  ;;  %v8649_v28 = vpop.f32.mrb[119].mxu0 }
0x1a77   : > { %v4763_v18 = vsel %vm1531_vm5, %v4755_v12, 0  ;;  %v4810_v30 = vsel %vm1531_vm5, %v4756_v25, 0 }
0x1a78   : > { %8699 = vmatpush3.bf16.xpose.msra.mxu1 %v4763_v18  ;;  %8705 = vmatpush3.bf16.xpose.msra.mxu0 %v4810_v30 }
0x1a79   : > { %8710 = vmatprep.subr.bf16.mxu1 %v9284_v15  ;;  %8716 = vmatprep.subr.bf16.mxu0 %v9284_v15 }
0x1a7a   : > { %v4462_v33 = vpop.f32.mrb[120].mxu1  ;;  %v4515_v34 = vpop.f32.mrb[120].mxu0 }
0x1a7b   : > { %v8656_v35 = vpop.f32.mrb[121].mxu1  ;;  %v8664_v23 = vpop.f32.mrb[121].mxu0 }
0x1a7c   : > { %v4465_v13 = vpop.f32.mrb[122].mxu1  ;;  %v4518_v36 = vpop.f32.mrb[122].mxu0 }
0x1a7d   : > { %v4757_v37 = vpack.c.bf16 %v4465_v13, %v4462_v33  ;;  %v4758_v38 = vpack.c.bf16 %v4518_v36, %v4515_v34  ;;  %v8657_v41 = vpop.f32.mrb[123].mxu1  ;;  %v8665_v42 = vpop.f32.mrb[123].mxu0 }
0x1a7f   : > { %v4857_v43 = vsel %vm1531_vm5, %v4757_v37, 0  ;;  %v4904_v45 = vsel %vm1531_vm5, %v4758_v38, 0  ;;  %8701 = vmatmul.mubr.msk.bf16.vlgmr.msra.gmra.mrb[132].mxu1 %vm1531_vm5, %v4751_v63  ;;  %8707 = vmatmul.mubr.msk.bf16.vlgmr.msra.gmra.mrb[132].mxu0 %vm1531_vm5, %v4752_v0 }
0x1a80   : > { %8711 = vmatpush3.bf16.xpose.msra.mxu1 %v4857_v43  ;;  %8717 = vmatpush3.bf16.xpose.msra.mxu0 %v4904_v45 }
0x1a81   : > { %8712 = vmatprep.mubr.msk.bf16.mxu1 %vm9285_vm1, %v9284_v15  ;;  %8718 = vmatprep.mubr.msk.bf16.mxu0 %vm9285_vm1, %v9284_v15 }
0x1a82   : > { %v4585_v46 = vpop.f32.mrb[124].mxu1  ;;  %v4638_v49 = vpop.f32.mrb[124].mxu0  ;;  %8722 = vmatprep.subr.bf16.mxu1 %v9284_v15  ;;  %8728 = vmatprep.subr.bf16.mxu0 %v9284_v15 }
0x1a83   : > { %v8672_v50 = vpop.f32.mrb[125].mxu1  ;;  %v8680_v51 = vpop.f32.mrb[125].mxu0 }
0x1a84   : > { %v4588_v52 = vpop.f32.mrb[126].mxu1  ;;  %v4641_v53 = vpop.f32.mrb[126].mxu0 }
0x1a85   : > { %v5039_v54 = vpack.c.bf16 %v4588_v52, %v4585_v46  ;;  %v5040_v56 = vpack.c.bf16 %v4641_v53, %v4638_v49  ;;  %v8673_v57 = vpop.f32.mrb[127].mxu1  ;;  %v8681_v58 = vpop.f32.mrb[127].mxu0 }
0x1a87   : > { %8713 = vmatmul.mubr.msk.bf16.vlgmr.msra.gmra.mrb[136].mxu1 %vm1531_vm5, %v4753_v17  ;;  %8719 = vmatmul.mubr.msk.bf16.vlgmr.msra.gmra.mrb[136].mxu0 %vm1531_vm5, %v4754_v19 }
0x1a88   : > { %8723 = vmatpush3.bf16.msra.mxu1 %v5039_v54  ;;  %8729 = vmatpush3.bf16.msra.mxu0 %v5040_v56 }
0x1a89   : > { %8724 = vmatprep.mubr.msk.bf16.mxu1 %vm9285_vm1, %v9284_v15  ;;  %8734 = vmatprep.subr.bf16.mxu1 %v9284_v15 }
0x1a8a   : > { %v10279_v59 = vpop.f32.mrb[128].mxu1  ;;  %v10281_v60 = vpop.f32.mrb[128].mxu0  ;;  %8730 = vmatprep.mubr.msk.bf16.mxu0 %vm9285_vm1, %v9284_v15  ;;  %8740 = vmatprep.subr.bf16.mxu0 %v9284_v15 }
0x1a8b   : > { %v8688_v61 = vpop.f32.mrb[129].mxu1  ;;  %v8696_v63 = vpop.f32.mrb[129].mxu0 }
0x1a8c   : > { %v10286_v0 = vpop.f32.mrb[130].mxu1  ;;  %v10288_v1 = vpop.f32.mrb[130].mxu0 }
0x1a8d   : > { %v5041_v2 = vpack.c.bf16 %v10286_v0, %v10279_v59  ;;  %v5042_v3 = vpack.c.bf16 %v10288_v1, %v10281_v60  ;;  %v8689_v4 = vpop.f32.mrb[131].mxu1  ;;  %v8697_v5 = vpop.f32.mrb[131].mxu0  ;;  %v7755_v1 = vld [vmem:[%s10796_s10 + $0x10] sm:$0x3] }
0x1b52   : > { %v4799_v8 = vpop.f32.mrb[132].mxu1  ;;  %v4846_v9 = vpop.f32.mrb[132].mxu0 }
0x1b53   : > { %v8702_v10 = vpop.f32.mrb[133].mxu1  ;;  %v8708_v14 = vpop.f32.mrb[133].mxu0  ;;  %v4947_v16 = vsel %vm745_vm4, %v4799_v8, -inf  ;;  %v4953_v20 = vsel %vm745_vm4, %v4846_v9, -inf }
0x1b54   : > { %v4849_v55 = vpop.f32.mrb[134].mxu0  ;;  %4948 = vmax.xlane.f32.xlu1 %v4947_v16  ;;  %v4802_v62 = vpop.f32.mrb[134].mxu1 }
0x1b55   : > { %v8703_v17 = vpop.f32.mrb[135].mxu1  ;;  %v8709_v19 = vpop.f32.mrb[135].mxu0  ;;  %v4950_v31 = vsel %vm745_vm4, %v4802_v62, -inf  ;;  %v4956_v30 = vsel %vm745_vm4, %v4849_v55, -inf }
0x1b58   : > { %4954 = vmax.xlane.f32.xlu1 %v4953_v20 }
0x1b5a   : > { %v4893_v21 = vpop.f32.mrb[136].mxu1  ;;  %v4940_v44 = vpop.f32.mrb[136].mxu0 }
0x1b5b   : > { %v8714_v22 = vpop.f32.mrb[137].mxu1  ;;  %v8720_v24 = vpop.f32.mrb[137].mxu0  ;;  %v4959_v33 = vsel %vm745_vm4, %v4893_v21, -inf  ;;  %v4965_v35 = vsel %vm745_vm4, %v4940_v44, -inf }
0x1b5c   : > { %v4943_v12 = vpop.f32.mrb[138].mxu0  ;;  %4951 = vmax.xlane.f32.xlu1 %v4950_v31  ;;  %v4896_v25 = vpop.f32.mrb[138].mxu1 }
0x1b5d   : > { %v8715_v29 = vpop.f32.mrb[139].mxu1  ;;  %v8721_v28 = vpop.f32.mrb[139].mxu0  ;;  %v4968_v18 = vsel %vm745_vm4, %v4943_v12, -inf  ;;  %v4962_v34 = vsel %vm745_vm4, %v4896_v25, -inf }
0x1b5e   : > { %4969 = vmax.xlane.f32.xlu0 %v4968_v18 }
0x1b60   : > { %4957 = vmax.xlane.f32.xlu1 %v4956_v30 }
0x1b64   : > { %4960 = vmax.xlane.f32.xlu1 %v4959_v33 }
0x1b68   : > { %4963 = vmax.xlane.f32.xlu1 %v4962_v34 }
0x1b6c   : > { %4966 = vmax.xlane.f32.xlu1 %v4965_v35 }
0x1be1   : > { %v4949_v23 = vpop.xlane.xlu1 %4948 }
0x1be2   : > { %v4971_v13 = vsub.f32 %v4799_v8, %v4949_v23 }
0x1be4   : > { %v4979_v36 = vmul.f32 1.442695, %v4971_v13 }
0x1be5   : > { %v4955_v37 = vpop.xlane.xlu1 %4954 }
0x1be6   : > { %9186 = vpow2.f32 %v4979_v36  ;;  %v4973_v38 = vsub.f32 %v4846_v9, %v4955_v37 }
0x1be8   : > { %v4983_v41 = vmul.f32 1.442695, %v4973_v38 }
0x1be9   : > { %v4952_v42 = vpop.xlane.xlu1 %4951 }
0x1bea   : > { %9188 = vpow2.f32 %v4983_v41  ;;  %v4972_v43 = vsub.f32 %v4802_v62, %v4952_v42 }
0x1beb   : > { %v4970_v5 = vpop.xlane.xlu0 %4969 }
0x1bec   : > { %v4981_v45 = vmul.f32 1.442695, %v4972_v43  ;;  %v4978_v16 = vsub.f32 %v4943_v12, %v4970_v5 }
0x1bed   : > { %v4958_v46 = vpop.xlane.xlu1 %4957 }
0x1bee   : > { %9190 = vpow2.f32 %v4981_v45  ;;  %v4974_v49 = vsub.f32 %v4849_v55, %v4958_v46  ;;  %v4993_v20 = vmul.f32 1.442695, %v4978_v16  ;;  %v7758_v16 = vld [vmem:[%s10796_s10 + $0x16] sm:$0x3] }
0x1bf0   : > { %v9187_v50 = vpop.eup %9186  ;;  %v4985_v51 = vmul.f32 1.442695, %v4974_v49 }
0x1bf1   : > { %v4961_v52 = vpop.xlane.xlu1 %4960  ;;  %v4995_v53 = vsel %vm745_vm4, %v9187_v50, 0.0 }
0x1bf2   : > { %9192 = vpow2.f32 %v4985_v51  ;;  %v4975_v54 = vsub.f32 %v4893_v21, %v4961_v52  ;;  %4996 = vadd.xlane.f32.xlu1 %v4995_v53 }
0x1bf4   : > { %v9189_v56 = vpop.eup %9188  ;;  %v4987_v57 = vmul.f32 1.442695, %v4975_v54 }
0x1bf5   : > { %v4964_v58 = vpop.xlane.xlu1 %4963  ;;  %v5001_v61 = vsel %vm745_vm4, %v9189_v56, 0.0 }
0x1bf6   : > { %9194 = vpow2.f32 %v4987_v57  ;;  %5002 = vadd.xlane.f32.xlu1 %v5001_v61  ;;  %v4976_v4 = vsub.f32 %v4896_v25, %v4964_v58  ;;  %v7756_v57 = vld [vmem:[%s10796_s10 + $0x12] sm:$0x3] }
0x1bf7   : > { %v5279_v58 = vsel %vm1965_vm8, %v7756_v57, 0  ;;  %v5435_v57 = vrot.slane %v10124_v11, %v9449_v6 }
0x1bf8   : > { %v9191_v63 = vpop.eup %9190  ;;  %v4989_v55 = vmul.f32 1.442695, %v4976_v4 }
0x1bf9   : > { %v4967_v8 = vpop.xlane.xlu1 %4966  ;;  %v4998_v9 = vsel %vm745_vm4, %v9191_v63, 0.0 }
0x1bfa   : > { %v4977_v10 = vsub.f32 %v4940_v44, %v4967_v8  ;;  %4999 = vadd.xlane.f32.xlu1 %v4998_v9 }
0x1bfc   : > { %v9193_v14 = vpop.eup %9192  ;;  %v4991_v62 = vmul.f32 1.442695, %v4977_v10 }
0x1bfd   : > { %v5004_v17 = vsel %vm745_vm4, %v9193_v14, 0.0 }
0x1bfe   : > { %9196 = vpow2.f32 %v4991_v62  ;;  %5005 = vadd.xlane.f32.xlu1 %v5004_v17 }
0x1bff   : > { %9198 = vpow2.f32 %v4989_v55 }
0x1c00   : > { %v9195_v19 = vpop.eup %9194  ;;  %9200 = vpow2.f32 %v4993_v20  ;;  %v5373_v20 = vsel %vm1965_vm8, %v7758_v16, 0 }
0x1c01   : > { %v5007_v21 = vsel %vm745_vm4, %v9195_v19, 0.0 }
0x1c02   : > { %5008 = vadd.xlane.f32.xlu1 %v5007_v21 }
0x1c08   : > { %v9197_v22 = vpop.eup %9196 }
0x1c09   : > { %v5013_v24 = vsel %vm745_vm4, %v9197_v22, 0.0  ;;  %v9199_v44 = vpop.eup %9198 }
0x1c0a   : > { %5014 = vadd.xlane.f32.xlu1 %v5013_v24  ;;  %v5010_v31 = vsel %vm745_vm4, %v9199_v44, 0.0  ;;  %v9201_v12 = vpop.eup %9200 }
0x1c0b   : > { %v5016_v25 = vsel %vm745_vm4, %v9201_v12, 0.0 }
0x1c0e   : > { %5011 = vadd.xlane.f32.xlu1 %v5010_v31 }
0x1c12   : > { %5017 = vadd.xlane.f32.xlu1 %v5016_v25 }
0x1c7f   : > { %v4997_v29 = vpop.xlane.xlu1 %4996 }
0x1c80   : > { %9202 = vrcp.f32 %v4997_v29 }
0x1c83   : > { %v5003_v28 = vpop.xlane.xlu1 %5002 }
0x1c87   : > { %v5000_v18 = vpop.xlane.xlu1 %4999 }
0x1c88   : > { %9204 = vrcp.f32 %v5000_v18 }
0x1c89   : > { %9206 = vrcp.f32 %v5003_v28 }
0x1c8a   : > { %v9203_v33 = vpop.eup %9202 }
0x1c8b   : > { %v5006_v30 = vpop.xlane.xlu1 %5005  ;;  %v5027_v35 = vmul.f32 %v9203_v33, %v9187_v50 }
0x1c8c   : > { %9208 = vrcp.f32 %v5006_v30 }
0x1c8f   : > { %v5009_v13 = vpop.xlane.xlu1 %5008 }
0x1c90   : > { %9210 = vrcp.f32 %v5009_v13 }
0x1c92   : > { %v9205_v34 = vpop.eup %9204 }
0x1c93   : > { %v5028_v23 = vmul.f32 %v9205_v34, %v9191_v63  ;;  %v9207_v36 = vpop.eup %9206  ;;  %v7757_v63 = vld [vmem:[%s10796_s10 + $0x14] sm:$0x3] }
0x1c94   : > { %v5029_v41 = vmul.f32 %v9207_v36, %v9189_v56  ;;  %v5326_v10 = vsel %vm1965_vm8, %v7757_v63, 0 }
0x1c95   : > { %v5035_v37 = vpack.c.bf16 %v5028_v23, %v5027_v35 }
0x1c96   : > { %v9209_v38 = vpop.eup %9208 }
0x1c97   : > { %v5030_v42 = vmul.f32 %v9209_v38, %v9193_v14  ;;  %8725 = vmatmul.mubr.msk.bf16.vlgmr.msra.gmra.mrb[140].mxu1 %vm745_vm4, %v5035_v37  ;;  %v5015_v43 = vpop.xlane.xlu1 %5014 }
0x1c98   : > { %8735 = vmatpush3.bf16.msra.mxu1 %v5041_v2  ;;  %8736 = vmatprep.mubr.msk.bf16.mxu1 %vm9285_vm1, %v9284_v15 }
0x1c99   : > { %v5036_v45 = vpack.c.bf16 %v5030_v42, %v5029_v41  ;;  %8746 = vmatprep.subr.bf16.mxu1 %v9284_v15 }
0x1c9a   : > { %v9211_v0 = vpop.eup %9210 }
0x1c9b   : > { %8731 = vmatmul.mubr.msk.bf16.vlgmr.msra.gmra.mrb[140].mxu0 %vm745_vm4, %v5036_v45  ;;  %v5012_v46 = vpop.xlane.xlu1 %5011  ;;  %v5031_v49 = vmul.f32 %v9211_v0, %v9195_v19 }
0x1c9c   : > { %8741 = vmatpush3.bf16.msra.mxu0 %v5042_v3  ;;  %9212 = vrcp.f32 %v5012_v46  ;;  %8742 = vmatprep.mubr.msk.bf16.mxu0 %vm9285_vm1, %v9284_v15  ;;  %v5232_v3 = vsel %vm1965_vm8, %v7755_v1, 0 }
0x1c9d   : > { %8752 = vmatprep.subr.bf16.mxu0 %v9284_v15  ;;  %9214 = vrcp.f32 %v5015_v43 }
0x1c9f   : > { %v5018_v59 = vpop.xlane.xlu1 %5017 }
0x1ca0   : > { %9216 = vrcp.f32 %v5018_v59 }
0x1ca6   : > { %v9213_v2 = vpop.eup %9212 }
0x1ca7   : > { %v5032_v50 = vmul.f32 %v9213_v2, %v9199_v44  ;;  %v9215_v51 = vpop.eup %9214 }
0x1ca8   : > { %v5033_v54 = vmul.f32 %v9215_v51, %v9197_v22 }
0x1ca9   : > { %v5037_v52 = vpack.c.bf16 %v5032_v50, %v5031_v49 }
0x1caa   : > { %v9217_v53 = vpop.eup %9216 }
0x1cab   : > { %v5034_v56 = vmul.f32 %v9217_v53, %v9201_v12  ;;  %8737 = vmatmul.mubr.msk.bf16.vlgmr.msra.gmra.mrb[144].mxu1 %vm745_vm4, %v5037_v52 }
0x1cac   : > { %8748 = vmatprep.mubr.msk.bf16.mxu1 %vm9285_vm1, %v9284_v15  ;;  %8747 = vmatpush3.bf16.msra.mxu1 %v5232_v3 }
0x1cad   : > { %v5038_v60 = vpack.c.bf16 %v5034_v56, %v5033_v54  ;;  %8758 = vmatprep.subr.bf16.mxu1 %v9284_v15 }
0x1caf   : > { %8743 = vmatmul.mubr.msk.bf16.vlgmr.msra.gmra.mrb[144].mxu0 %vm745_vm4, %v5038_v60 }
0x1cb0   : > { %8754 = vmatprep.mubr.msk.bf16.mxu0 %vm9285_vm1, %v9284_v15  ;;  %8753 = vmatpush3.bf16.msra.mxu0 %v5279_v58 }
0x1cb1   : > { %8764 = vmatprep.subr.bf16.mxu0 %v9284_v15 }
0x1d6a   : > { %v5080_v61 = vpop.f32.mrb[140].mxu1 }
0x1d6b   : > { %v8726_v4 = vpop.f32.mrb[141].mxu1 }
0x1d6c   : > { %v5083_v5 = vpop.f32.mrb[142].mxu1 }
0x1d6d   : > { %v5219_v8 = vpack.c.bf16 %v5083_v5, %v5080_v61  ;;  %v8727_v9 = vpop.f32.mrb[143].mxu1 }
0x1d6e   : > { %v5124_v14 = vpop.f32.mrb[140].mxu0 }
0x1d6f   : > { %v8732_v55 = vpop.f32.mrb[141].mxu0  ;;  %8749 = vmatmul.mubr.msk.bf16.vlgmr.msra.gmra.mrb[148].mxu1 %vm1531_vm5, %v5219_v8 }
0x1d70   : > { %v5127_v62 = vpop.f32.mrb[142].mxu0  ;;  %8759 = vmatpush3.bf16.msra.mxu1 %v5326_v10  ;;  %8760 = vmatprep.mubr.msk.bf16.mxu1 %vm9285_vm1, %v9284_v15 }
0x1d71   : > { %v5220_v17 = vpack.c.bf16 %v5127_v62, %v5124_v14  ;;  %v8733_v19 = vpop.f32.mrb[143].mxu0  ;;  %8770 = vmatprep.subr.bf16.mxu1 %v9284_v15 }
0x1d73   : > { %8755 = vmatmul.mubr.msk.bf16.vlgmr.msra.gmra.mrb[148].mxu0 %vm1531_vm5, %v5220_v17 }
0x1d74   : > { %8765 = vmatpush3.bf16.msra.mxu0 %v5373_v20  ;;  %8766 = vmatprep.mubr.msk.bf16.mxu0 %vm9285_vm1, %v9284_v15 }
0x1d75   : > { %8778 = vmatprep.subr.bf16.mxu0 %v9284_v15 }
0x1d7e   : > { %v5168_v21 = vpop.f32.mrb[144].mxu1 }
0x1d7f   : > { %v8738_v22 = vpop.f32.mrb[145].mxu1 }
0x1d80   : > { %v5171_v24 = vpop.f32.mrb[146].mxu1 }
0x1d81   : > { %v5221_v44 = vpack.c.bf16 %v5171_v24, %v5168_v21  ;;  %v8739_v31 = vpop.f32.mrb[147].mxu1  ;;  %v9090_v24 = vld [vmem:[%s10798_s12 + $0x20] sm:$0xff]  }
0x1d82   : > { %v5212_v12 = vpop.f32.mrb[144].mxu0 }
0x1d83   : > { %v8744_v25 = vpop.f32.mrb[145].mxu0  ;;  %8761 = vmatmul.mubr.msk.bf16.vlgmr.msra.gmra.mrb[152].mxu1 %vm1531_vm5, %v5221_v44  ;;  %v9091_v44 = vld [vmem:[%s10798_s12 + $0x28] sm:$0xff]  }
0x1d84   : > { %v5215_v29 = vpop.f32.mrb[146].mxu0  ;;  %8774 = vmatprep.mubr.msk.bf16.mxu1 %vm9285_vm1, %v9284_v15  ;;  %8771 = vmatpush3.bf16.msra.mxu1 %v9090_v24 }
0x1d85   : > { %v5222_v28 = vpack.c.bf16 %v5215_v29, %v5212_v12  ;;  %v8745_v18 = vpop.f32.mrb[147].mxu0  ;;  %8772 = vmatprep.subr.bf16.mxu1 %v9284_v15 }
0x1d87   : > { %8767 = vmatmul.mubr.msk.bf16.vlgmr.msra.gmra.mrb[152].mxu0 %vm1531_vm5, %v5222_v28 }
0x1d88   : > { %8786 = vmatprep.mubr.msk.bf16.mxu0 %vm9285_vm1, %v9284_v15  ;;  %8773 = vmatpush3.bf16.msra.mxu1 %v9091_v44 }
0x1d89   : > { %8790 = vmatprep.subr.bf16.mxu1 %v9284_v15 }
0x1e42   : > { %v5268_v30 = vpop.f32.mrb[148].mxu1 }
0x1e43   : > { %v8750_v33 = vpop.f32.mrb[149].mxu1  ;;  %v5416_v13 = vsel %vm692_vm2, %v5268_v30, 0.0 }
0x1e44   : > { %v5271_v34 = vpop.f32.mrb[150].mxu1  ;;  %v5467_v33 = vrot.slane %v10124_v11, %v9739_v39 }
0x1e45   : > { %v8751_v35 = vpop.f32.mrb[151].mxu1  ;;  %v5423_v42 = vsel %vm692_vm2, %v5271_v34, 0.0 }
0x1e46   : > { %v5315_v23 = vpop.f32.mrb[148].mxu0 }
0x1e47   : > { %v5417_v36 = vsel %vm692_vm2, %v5315_v23, 0.0  ;;  %v8756_v37 = vpop.f32.mrb[149].mxu0 }
0x1e48   : > { %v5418_v38 = vadd.f32 %v5417_v36, %v5416_v13  ;;  %v5318_v41 = vpop.f32.mrb[150].mxu0  ;;  %v5473_v36 = vrot.slane %v10124_v11, %v9742_v40 }
0x1e49   : > { %v5424_v43 = vsel %vm692_vm2, %v5318_v41, 0.0  ;;  %v8757_v45 = vpop.f32.mrb[151].mxu0 }
0x1e4a   : > { %v5425_v46 = vadd.f32 %v5424_v43, %v5423_v42  ;;  %v9092_v43 = vld [vmem:[%s10800_s14 + $0x40] sm:$0xff]   ;;  %v9093_v45 = vld [vmem:[%s10800_s14 + $0x48] sm:$0xff]  }
0x1e4b   : > { %8779 = vmatpush3.bf16.msra.mxu0 %v9092_v43 }
0x1e4c   : > { %8780 = vmatprep.subr.bf16.mxu0 %v9284_v15 }
0x1e4f   : > { %8781 = vmatpush3.bf16.msra.mxu0 %v9093_v45 }
0x1e50   : > { %8782 = vmatprep.subr.bf16.mxu0 %v9284_v15 }
0x1e56   : > { %v5362_v59 = vpop.f32.mrb[152].mxu1 }
0x1e57   : > { %v5419_v0 = vsel %vm692_vm2, %v5362_v59, 0.0  ;;  %v8762_v2 = vpop.f32.mrb[153].mxu1  ;;  %v9095_v59 = vld [vmem:[%s10800_s14 + $0x58] sm:$0xff]  }
0x1e58   : > { %v5420_v49 = vadd.f32 %v5419_v0, %v5418_v38  ;;  %v5365_v50 = vpop.f32.mrb[154].mxu1  ;;  %v7768_v0 = vld [vmem:[%s10799_s13 + $0x2] ss:$0 sm:$0xff] }
0x1e59   : > { %v5426_v51 = vsel %vm692_vm2, %v5365_v50, 0.0  ;;  %v8763_v52 = vpop.f32.mrb[155].mxu1 }
0x1e5a   : > { %v5427_v53 = vadd.f32 %v5426_v51, %v5425_v46  ;;  %v5409_v54 = vpop.f32.mrb[152].mxu0  ;;  %v9094_v46 = vld [vmem:[%s10800_s14 + $0x50] sm:$0xff]  }
0x1e5b   : > { %v5421_v56 = vsel %vm692_vm2, %v5409_v54, 0.0  ;;  %v8768_v60 = vpop.f32.mrb[153].mxu0  ;;  %8783 = vmatpush3.bf16.msra.mxu0 %v9094_v46 }
0x1e5c   : > { %v5422_v1 = vadd.f32 %v5421_v56, %v5420_v49  ;;  %v5412_v3 = vpop.f32.mrb[154].mxu0  ;;  %8784 = vmatprep.subr.bf16.mxu0 %v9284_v15 }
0x1e5d   : > { %v5428_v58 = vsel %vm692_vm2, %v5412_v3, 0.0  ;;  %v8769_v61 = vpop.f32.mrb[155].mxu0 }
0x1e5e   : > { %v5430_v63 = vadd.f32 %v5422_v1, %v10093_v47  ;;  %v5429_v4 = vadd.f32 %v5428_v58, %v5427_v53 }
0x1e5f   : > { %8785 = vmatpush3.bf16.msra.mxu0 %v9095_v59 }
0x1e60   : > { %v5431_v5 = vadd.f32 %v5429_v4, %v10095_v48  ;;  %v10374_v8 = vadd.f32 %v5435_v57, %v5430_v63  ;;  %8806 = vmatprep.subr.bf16.mxu0 %v9284_v15 }
0x1e62   : > { %v5438_v9 = vsel %vm692_vm2, %v10374_v8, 0.0  ;;  %v10378_v10 = vadd.f32 %v5435_v57, %v5431_v5 }
0x1e63   : > { %5439 = vadd.xlane.f32.xlu1 %v5438_v9 }
0x1e64   : > { %v5441_v14 = vsel %vm692_vm2, %v10378_v10, 0.0 }
0x1e67   : > { %5442 = vadd.xlane.f32.xlu1 %v5441_v14 }
0x1ef0   : > { %v5440_v16 = vpop.xlane.xlu1 %5439 }
0x1ef1   : > { %v5444_v55 = vmul.f32 0.03125, %v5440_v16 }
0x1ef3   : > { %v5446_v62 = vsub.f32 %v10374_v8, %v5444_v55 }
0x1ef4   : > { %v5443_v47 = vpop.xlane.xlu1 %5442 }
0x1ef5   : > { %v5445_v17 = vmul.f32 0.03125, %v5443_v47  ;;  %v5448_v19 = vmul.f32 %v5446_v62, %v5446_v62 }
0x1ef7   : > { %v5447_v48 = vsub.f32 %v10378_v10, %v5445_v17  ;;  %v5450_v20 = vsel %vm692_vm2, %v5448_v19, 0.0 }
0x1ef8   : > { %5451 = vadd.xlane.f32.xlu1 %v5450_v20 }
0x1ef9   : > { %v5449_v21 = vmul.f32 %v5447_v48, %v5447_v48 }
0x1efb   : > { %v5453_v22 = vsel %vm692_vm2, %v5449_v21, 0.0 }
0x1efc   : > { %5454 = vadd.xlane.f32.xlu1 %v5453_v22 }
0x1f85   : > { %v5452_v31 = vpop.xlane.xlu1 %5451 }
0x1f86   : > { %v5456_v12 = vmul.f32 0.03125, %v5452_v31 }
0x1f88   : > { %v5458_v25 = vadd.f32 1e-05, %v5456_v12 }
0x1f89   : > { %v5455_v29 = vpop.xlane.xlu1 %5454 }
0x1f8a   : > { %9218 = vrsqrt.f32 %v5458_v25  ;;  %v5457_v28 = vmul.f32 0.03125, %v5455_v29 }
0x1f8c   : > { %v5459_v18 = vadd.f32 1e-05, %v5457_v28 }
0x1f8e   : > { %9220 = vrsqrt.f32 %v5459_v18 }
0x1f94   : > { %v9219_v30 = vpop.eup %9218 }
0x1f95   : > { %v5462_v34 = vmul.f32 %v9219_v30, %v5446_v62 }
0x1f97   : > { %v5468_v23 = vmul.f32 %v5467_v33, %v5462_v34 }
0x1f98   : > { %v9221_v35 = vpop.eup %9220 }
0x1f99   : > { %v5463_v13 = vmul.f32 %v9221_v35, %v5447_v48  ;;  %v5474_v38 = vadd.f32 %v5473_v36, %v5468_v23  ;;  %v5647_v48 = vrot.slane %v10124_v11, %v9774_v7 }
0x1f9b   : > { %v5469_v37 = vmul.f32 %v5467_v33, %v5463_v13 }
0x1f9d   : > { %v5475_v41 = vadd.f32 %v5473_v36, %v5469_v37  ;;  %v9096_v36 = vld [vmem:[%s10793_s7 + $0xc0] sm:$0xff]  }
0x1f9e   : > { %v9097_v37 = vld [vmem:[%s10793_s7 + $0xe0] sm:$0xff]  }
0x1f9f   : > { %v5476_v42 = vpack.c.bf16 %v5475_v41, %v5474_v38  ;;  %v9098_v38 = vld [vmem:[%s10793_s7 + $0xc8] sm:$0xff]  }
0x1fa0   : > { %v9099_v41 = vld [vmem:[%s10793_s7 + $0xe8] sm:$0xff]  }
0x1fa1   : > { %8775 = vmatmul.mubr.msk.bf16.vlgmr.msra.gmra.mrb[156].mxu1 %vm692_vm2, %v5476_v42 }
0x1fa2   : > { %8794 = vmatprep.mubr.msk.bf16.mxu1 %vm9285_vm1, %v9284_v15  ;;  %8791 = vmatpush3.bf16.msra.mxu1 %v9096_v36 }
0x1fa3   : > { %8792 = vmatprep.subr.bf16.mxu1 %v9284_v15 }
0x1fa6   : > { %8793 = vmatpush3.bf16.msra.mxu1 %v9098_v38 }
0x1fa7   : > { %8798 = vmatprep.subr.bf16.mxu1 %v9284_v15 }
0x2074   : > { %v5539_v2 = vpop.f32.mrb[156].mxu1 }
0x2075   : > { %v5540_v49 = vadd.f32 %v7768_v0, %v5539_v2  ;;  %v8776_v50 = vpop.f32.mrb[157].mxu1  ;;  %v10458_v2 = vld [vmem:[%s10797_s11 + $0x18] sm:$0x3f] }
0x2076   : > { %v5542_v51 = vpop.f32.mrb[158].mxu1 }
0x2077   : > { %v5548_v52 = vmul.f32 0.044715, %v5540_v49  ;;  %v5543_v53 = vadd.f32 %v7768_v0, %v5542_v51  ;;  %v8777_v54 = vpop.f32.mrb[159].mxu1  ;;  %v5546_v16 = vmul.f32 0.5, %v5540_v49 }
0x2079   : > { %v5550_v56 = vmul.f32 %v5548_v52, %v5540_v49  ;;  %v5549_v60 = vmul.f32 0.044715, %v5543_v53  ;;  %v5547_v55 = vmul.f32 0.5, %v5543_v53 }
0x207b   : > { %v5552_v1 = vmul.f32 %v5550_v56, %v5540_v49  ;;  %v5551_v3 = vmul.f32 %v5549_v60, %v5543_v53 }
0x207d   : > { %v5554_v57 = vadd.f32 %v5552_v1, %v5540_v49  ;;  %v5553_v58 = vmul.f32 %v5551_v3, %v5543_v53  ;;  %v5681_v49 = vrot.slane %v10458_v2, %v9423_v27 }
0x207f   : > { %v5556_v61 = vmul.f32 0.7978846, %v5554_v57  ;;  %v5555_v63 = vadd.f32 %v5553_v58, %v5543_v53  ;;  %v5687_v53 = vrot.slane %v10458_v2, %v9430_v32  ;;  %v9100_v57 = vld [vmem:[%s10793_s7 + $0xd0] sm:$0xff]   ;;  %v9101_v58 = vld [vmem:[%s10794_s8 + $0xc0] sm:$0xff]   ;;  %v9102_v32 = vld [vmem:[%s10793_s7 + $0xd8] sm:$0xff]  }
0x2081   : > { %9222 = vtanh.f32 %v5556_v61  ;;  %v5557_v4 = vmul.f32 0.7978846, %v5555_v63  ;;  %v9103_v61 = vld [vmem:[%s10794_s8 + $0xc8] sm:$0xff]   ;;  %v9104_v63 = vld [vmem:[%s10793_s7 + $0xf0] sm:$0xff]  }
0x2083   : > { %9224 = vtanh.f32 %v5557_v4  ;;  %v9105_v4 = vld [vmem:[%s10794_s8 + $0xe0] sm:$0xff]  }
0x208b   : > { %v9223_v5 = vpop.eup %9222 }
0x208c   : > { %v5560_v9 = vadd.f32 1.0, %v9223_v5  ;;  %v9106_v5 = vld [vmem:[%s10793_s7 + $0xf8] sm:$0xff]  }
0x208d   : > { %v9225_v14 = vpop.eup %9224 }
0x208e   : > { %v5561_v62 = vadd.f32 1.0, %v9225_v14  ;;  %v5562_v47 = vmul.f32 %v5560_v9, %v5546_v16  ;;  %v9107_v9 = vld [vmem:[%s10794_s8 + $0xe8] sm:$0xff]   ;;  %v9108_v14 = vld [vmem:[%s10794_s8 + $0xd0] sm:$0xff]   ;;  %v9109_v16 = vld [vmem:[%s10795_s9 + $0xc0] sm:$0xff]  }
0x2090   : > { %v5563_v17 = vmul.f32 %v5561_v62, %v5547_v55  ;;  %v9110_v55 = vld [vmem:[%s10794_s8 + $0xd8] sm:$0xff]   ;;  %v9111_v62 = vld [vmem:[%s10795_s9 + $0xc8] sm:$0xff]  }
0x2092   : > { %v5564_v19 = vpack.c.bf16 %v5563_v17, %v5562_v47  ;;  %v9112_v47 = vld [vmem:[%s10794_s8 + $0xf0] sm:$0xff]   ;;  %v9113_v17 = vld [vmem:[%s10795_s9 + $0xe0] sm:$0xff]  }
0x2094   : > { %8787 = vmatmul.mubr.msk.bf16.vlgmr.msra.gmra.mrb[156].mxu0 %vm571_vm0, %v5564_v19  ;;  %v9114_v19 = vld [vmem:[%s10794_s8 + $0xf8] sm:$0xff]  }
0x2095   : > { %8810 = vmatprep.mubr.msk.bf16.mxu0 %vm9285_vm1, %v9284_v15  ;;  %8807 = vmatpush3.bf16.msra.mxu0 %v9097_v37 }
0x2096   : > { %8808 = vmatprep.subr.bf16.mxu0 %v9284_v15 }
0x2099   : > { %8809 = vmatpush3.bf16.msra.mxu0 %v9099_v41 }
0x209a   : > { %8822 = vmatprep.subr.bf16.mxu0 %v9284_v15 }
0x2167   : > { %v5635_v20 = vpop.f32.mrb[156].mxu0 }
0x2168   : > { %v5642_v21 = vadd.f32 %v5635_v20, %v10374_v8  ;;  %v8788_v22 = vpop.f32.mrb[157].mxu0  ;;  %v9116_v20 = vld [vmem:[%s10795_s9 + $0xd0] sm:$0xff]  }
0x2169   : > { %v5638_v24 = vpop.f32.mrb[158].mxu0  ;;  %v9118_v22 = vld [vmem:[%s10795_s9 + $0xf0] sm:$0xff]  }
0x216a   : > { %v10426_v44 = vadd.f32 %v5647_v48, %v5642_v21  ;;  %v5643_v31 = vadd.f32 %v5638_v24, %v10378_v10  ;;  %v8789_v12 = vpop.f32.mrb[159].mxu0  ;;  %v9117_v21 = vld [vmem:[%s10795_s9 + $0xd8] sm:$0xff]  }
0x216b   : > { %v9119_v24 = vld [vmem:[%s10795_s9 + $0xf8] sm:$0xff]  }
0x216c   : > { %v10429_v25 = vadd.f32 %v5647_v48, %v5643_v31  ;;  %v5652_v29 = vsel %vm692_vm2, %v10426_v44, 0.0  ;;  %v9115_v48 = vld [vmem:[%s10795_s9 + $0xe8] sm:$0xff]  }
0x216d   : > { %5653 = vadd.xlane.f32.xlu1 %v5652_v29 }
0x216e   : > { %v5655_v28 = vsel %vm692_vm2, %v10429_v25, 0.0 }
0x216f   : > { %5656 = vadd.xlane.f32.xlu0 %v5655_v28 }
0x21fa   : > { %v5654_v11 = vpop.xlane.xlu1 %5653 }
0x21fb   : > { %v5658_v18 = vmul.f32 0.03125, %v5654_v11 }
0x21fc   : > { %v5657_v8 = vpop.xlane.xlu0 %5656 }
0x21fd   : > { %v5660_v30 = vsub.f32 %v10426_v44, %v5658_v18  ;;  %v5659_v33 = vmul.f32 0.03125, %v5657_v8 }
0x21ff   : > { %v5661_v34 = vsub.f32 %v10429_v25, %v5659_v33  ;;  %v5662_v10 = vmul.f32 %v5660_v30, %v5660_v30 }
0x2201   : > { %v5664_v35 = vsel %vm692_vm2, %v5662_v10, 0.0  ;;  %v5663_v23 = vmul.f32 %v5661_v34, %v5661_v34 }
0x2202   : > { %5665 = vadd.xlane.f32.xlu1 %v5664_v35 }
0x2203   : > { %v5667_v13 = vsel %vm692_vm2, %v5663_v23, 0.0 }
0x2204   : > { %5668 = vadd.xlane.f32.xlu0 %v5667_v13 }
0x228f   : > { %v5666_v42 = vpop.xlane.xlu1 %5665 }
0x2290   : > { %v5670_v43 = vmul.f32 0.03125, %v5666_v42 }
0x2291   : > { %v5669_v45 = vpop.xlane.xlu0 %5668 }
0x2292   : > { %v5672_v46 = vadd.f32 1e-05, %v5670_v43  ;;  %v5671_v59 = vmul.f32 0.03125, %v5669_v45 }
0x2294   : > { %9226 = vrsqrt.f32 %v5672_v46  ;;  %v5673_v0 = vadd.f32 1e-05, %v5671_v59 }
0x2296   : > { %9228 = vrsqrt.f32 %v5673_v0 }
0x229e   : > { %v9227_v50 = vpop.eup %9226 }
0x229f   : > { %v5676_v51 = vmul.f32 %v9227_v50, %v5660_v30 }
0x22a0   : > { %v9229_v52 = vpop.eup %9228 }
0x22a1   : > { %v5682_v54 = vmul.f32 %v5681_v49, %v5676_v51  ;;  %v5677_v56 = vmul.f32 %v9229_v52, %v5661_v34 }
0x22a3   : > { %v5683_v60 = vmul.f32 %v5681_v49, %v5677_v56  ;;  %v5688_v1 = vadd.f32 %v5687_v53, %v5682_v54 }
0x22a5   : > { %v5689_v3 = vadd.f32 %v5687_v53, %v5683_v60 }
0x22a7   : > { %v10470_v27 = vpack.c.bf16 %v5689_v3, %v5688_v1 }
0x22a9   : > { %8795 = vmatmul.mubr.msk.bf16.vlgmr.msra.gmra.mrb[160].mxu1 %vm692_vm2, %v10470_v27  ;;  %8811 = vmatmul.mubr.msk.bf16.vlgmr.msra.gmra.mrb[160].mxu0 %vm692_vm2, %v10470_v27 }
0x22aa   : > { %8799 = vmatpush3.bf16.msra.mxu1 %v9100_v57  ;;  %8823 = vmatpush3.bf16.msra.mxu0 %v9101_v58 }
0x22ab   : > { %8800 = vmatprep.subr.bf16.mxu1 %v9284_v15  ;;  %8824 = vmatprep.subr.bf16.mxu0 %v9284_v15 }
0x22ac   : > { %8802 = vmatprep.mubr.msk.bf16.mxu1 %vm9285_vm1, %v9284_v15  ;;  %8826 = vmatprep.mubr.msk.bf16.mxu0 %vm9285_vm1, %v9284_v15 }
0x22ae   : > { %8801 = vmatpush3.bf16.msra.mxu1 %v9102_v32  ;;  %8825 = vmatpush3.bf16.msra.mxu0 %v9103_v61 }
0x22af   : > { %8814 = vmatprep.subr.bf16.mxu1 %v9284_v15  ;;  %8838 = vmatprep.subr.bf16.mxu0 %v9284_v15 }
0x22b1   : > { %8803 = vmatmul.mubr.msk.bf16.vlgmr.msra.gmra.mrb[164].mxu1 %vm692_vm2, %v10470_v27  ;;  %8827 = vmatmul.mubr.msk.bf16.vlgmr.msra.gmra.mrb[164].mxu0 %vm692_vm2, %v10470_v27 }
0x22b2   : > { %8815 = vmatpush3.bf16.msra.mxu1 %v9104_v63  ;;  %8839 = vmatpush3.bf16.msra.mxu0 %v9105_v4 }
0x22b3   : > { %8816 = vmatprep.subr.bf16.mxu1 %v9284_v15  ;;  %8840 = vmatprep.subr.bf16.mxu0 %v9284_v15 }
0x22b4   : > { %8818 = vmatprep.mubr.msk.bf16.mxu1 %vm9285_vm1, %v9284_v15  ;;  %8842 = vmatprep.mubr.msk.bf16.mxu0 %vm9285_vm1, %v9284_v15 }
0x22b6   : > { %8817 = vmatpush3.bf16.msra.mxu1 %v9106_v5  ;;  %8841 = vmatpush3.bf16.msra.mxu0 %v9107_v9 }
0x22b7   : > { %8830 = vmatprep.subr.bf16.mxu1 %v9284_v15  ;;  %8854 = vmatprep.subr.bf16.mxu0 %v9284_v15 }
0x22b9   : > { %8819 = vmatmul.mubr.msk.bf16.vlgmr.msra.gmra.mrb[168].mxu1 %vm692_vm2, %v10470_v27  ;;  %8843 = vmatmul.mubr.msk.bf16.vlgmr.msra.gmra.mrb[168].mxu0 %vm692_vm2, %v10470_v27 }
0x22ba   : > { %8831 = vmatpush3.bf16.msra.mxu1 %v9108_v14  ;;  %8855 = vmatpush3.bf16.msra.mxu0 %v9109_v16 }
0x22bb   : > { %8832 = vmatprep.subr.bf16.mxu1 %v9284_v15  ;;  %8856 = vmatprep.subr.bf16.mxu0 %v9284_v15 }
0x22bc   : > { %8834 = vmatprep.mubr.msk.bf16.mxu1 %vm9285_vm1, %v9284_v15  ;;  %8858 = vmatprep.mubr.msk.bf16.mxu0 %vm9285_vm1, %v9284_v15 }
0x22be   : > { %8833 = vmatpush3.bf16.msra.mxu1 %v9110_v55  ;;  %8857 = vmatpush3.bf16.msra.mxu0 %v9111_v62 }
0x22bf   : > { %8846 = vmatprep.subr.bf16.mxu1 %v9284_v15  ;;  %8870 = vmatprep.subr.bf16.mxu0 %v9284_v15 }
0x22c1   : > { %8835 = vmatmul.mubr.msk.bf16.vlgmr.msra.gmra.mrb[172].mxu1 %vm692_vm2, %v10470_v27  ;;  %8859 = vmatmul.mubr.msk.bf16.vlgmr.msra.gmra.mrb[172].mxu0 %vm692_vm2, %v10470_v27 }
0x22c2   : > { %8847 = vmatpush3.bf16.msra.mxu1 %v9112_v47  ;;  %8871 = vmatpush3.bf16.msra.mxu0 %v9113_v17 }
0x22c3   : > { %8848 = vmatprep.subr.bf16.mxu1 %v9284_v15  ;;  %8872 = vmatprep.subr.bf16.mxu0 %v9284_v15 }
0x22c4   : > { %8850 = vmatprep.mubr.msk.bf16.mxu1 %vm9285_vm1, %v9284_v15  ;;  %8874 = vmatprep.mubr.msk.bf16.mxu0 %vm9285_vm1, %v9284_v15 }
0x22c6   : > { %8849 = vmatpush3.bf16.msra.mxu1 %v9114_v19  ;;  %8873 = vmatpush3.bf16.msra.mxu0 %v9115_v48 }
0x22c7   : > { %8862 = vmatprep.subr.bf16.mxu1 %v9284_v15  ;;  %8886 = vmatprep.subr.bf16.mxu0 %v9284_v15 }
0x22c9   : > { %8851 = vmatmul.mubr.msk.bf16.vlgmr.msra.gmra.mrb[176].mxu1 %vm692_vm2, %v10470_v27  ;;  %8875 = vmatmul.mubr.msk.bf16.vlgmr.msra.gmra.mrb[176].mxu0 %vm692_vm2, %v10470_v27 }
0x22ca   : > { %8863 = vmatpush3.bf16.msra.mxu1 %v9116_v20  ;;  %8866 = vmatprep.mubr.msk.bf16.mxu1 %vm9285_vm1, %v9284_v15 }
0x22cb   : > { %8864 = vmatprep.subr.bf16.mxu1 %v9284_v15  ;;  %8888 = vmatprep.mubr.msk.bf16.mxu0 %vm9285_vm1, %v9284_v15 }
0x22ce   : > { %8865 = vmatpush3.bf16.msra.mxu1 %v9117_v21 }
0x22cf   : > { %8878 = vmatprep.subr.bf16.mxu1 %v9284_v15 }
0x22d1   : > { %8867 = vmatmul.mubr.msk.bf16.vlgmr.msra.gmra.mrb[180].mxu1 %vm692_vm2, %v10470_v27 }
0x22d2   : > { %8879 = vmatpush3.bf16.msra.mxu1 %v9118_v22  ;;  %8882 = vmatprep.mubr.msk.bf16.mxu1 %vm9285_vm1, %v9284_v15 }
0x22d3   : > { %8880 = vmatprep.subr.bf16.mxu1 %v9284_v15 }
0x22d6   : > { %8881 = vmatpush3.bf16.msra.mxu1 %v9119_v24 }
0x22d7   : > { %8892 = vmatprep.subr.bf16.mxu1 %v9284_v15 }
0x22d9   : > { %8883 = vmatmul.mubr.msk.bf16.vlgmr.msra.gmra.mrb[184].mxu1 %vm692_vm2, %v10470_v27 }
0x22da   : > { %8894 = vmatprep.mubr.msk.bf16.mxu1 %vm9285_vm1, %v9284_v15 }
0x237c   : > { %v5757_v31 = vpop.f32.mrb[160].mxu1  ;;  %v5863_v12 = vpop.f32.mrb[160].mxu0 }
0x237d   : > { %v8796_v29 = vpop.f32.mrb[161].mxu1  ;;  %v8812_v28 = vpop.f32.mrb[161].mxu0  ;;  %v5923_v8 = vmul.f32 0.5, %v5757_v31  ;;  %v5927_v30 = vmul.f32 0.5, %v5863_v12 }
0x237e   : > { %v5760_v11 = vpop.f32.mrb[162].mxu1  ;;  %v5866_v18 = vpop.f32.mrb[162].mxu0 }
0x237f   : > { %v5924_v33 = vmul.f32 0.5, %v5760_v11  ;;  %v5928_v34 = vmul.f32 0.5, %v5866_v18  ;;  %v8797_v10 = vpop.f32.mrb[163].mxu1  ;;  %v8813_v35 = vpop.f32.mrb[163].mxu0 }
0x2381   : > { %v6389_v23 = vpack.c.bf16 %v5924_v33, %v5923_v8  ;;  %v6391_v13 = vpack.c.bf16 %v5928_v34, %v5927_v30 }
0x2384   : > { %v5810_v36 = vpop.f32.mrb[164].mxu1  ;;  %v5994_v37 = vpop.f32.mrb[164].mxu0 }
0x2385   : > { %v8804_v38 = vpop.f32.mrb[165].mxu1  ;;  %v8828_v41 = vpop.f32.mrb[165].mxu0  ;;  %v5925_v45 = vmul.f32 0.5, %v5810_v36 }
0x2386   : > { %v5813_v42 = vpop.f32.mrb[166].mxu1  ;;  %v5997_v43 = vpop.f32.mrb[166].mxu0 }
0x2387   : > { %v5926_v46 = vmul.f32 0.5, %v5813_v42  ;;  %v6393_v59 = vpack.c.bf16 %v5997_v43, %v5994_v37  ;;  %v8805_v0 = vpop.f32.mrb[167].mxu1  ;;  %v8829_v49 = vpop.f32.mrb[167].mxu0 }
0x2389   : > { %v6390_v50 = vpack.c.bf16 %v5926_v46, %v5925_v45  ;;  %v6401_v51 = vsel %vm1531_vm5, %v6393_v59, 0 }
0x238a   : > { %8887 = vmatpush3.bf16.xpose.msra.mxu0 %v6401_v51 }
0x238b   : > { %8898 = vmatprep.subr.bf16.mxu0 %v9284_v15 }
0x238c   : > { %v5916_v52 = vpop.f32.mrb[168].mxu1  ;;  %v6100_v53 = vpop.f32.mrb[168].mxu0 }
0x238d   : > { %v8820_v54 = vpop.f32.mrb[169].mxu1  ;;  %v8844_v56 = vpop.f32.mrb[169].mxu0  ;;  %v5929_v3 = vmul.f32 0.5, %v5916_v52 }
0x238e   : > { %v5919_v60 = vpop.f32.mrb[170].mxu1  ;;  %v6103_v1 = vpop.f32.mrb[170].mxu0 }
0x238f   : > { %v5930_v57 = vmul.f32 0.5, %v5919_v60  ;;  %v6395_v58 = vpack.c.bf16 %v6103_v1, %v6100_v53  ;;  %v8821_v27 = vpop.f32.mrb[171].mxu1  ;;  %v8845_v32 = vpop.f32.mrb[171].mxu0 }
0x2391   : > { %v6392_v61 = vpack.c.bf16 %v5930_v57, %v5929_v3  ;;  %v6495_v63 = vsel %vm1531_vm5, %v6395_v58, 0  ;;  %8889 = vmatmul.mubr.msk.bf16.vlgmr.msra.gmra.mrb[180].mxu0 %vm1531_vm5, %v6389_v23 }
0x2392   : > { %8899 = vmatpush3.bf16.xpose.msra.mxu0 %v6495_v63  ;;  %8900 = vmatprep.mubr.msk.bf16.mxu0 %vm9285_vm1, %v9284_v15 }
0x2393   : > { %8910 = vmatprep.subr.bf16.mxu0 %v9284_v15 }
0x2394   : > { %v6047_v4 = vpop.f32.mrb[172].mxu1  ;;  %v6223_v5 = vpop.f32.mrb[172].mxu0 }
0x2395   : > { %v8836_v9 = vpop.f32.mrb[173].mxu1  ;;  %v8860_v14 = vpop.f32.mrb[173].mxu0 }
0x2396   : > { %v6050_v16 = vpop.f32.mrb[174].mxu1  ;;  %v6226_v55 = vpop.f32.mrb[174].mxu0 }
0x2397   : > { %v6394_v62 = vpack.c.bf16 %v6050_v16, %v6047_v4  ;;  %v6677_v47 = vpack.c.bf16 %v6226_v55, %v6223_v5  ;;  %v8837_v17 = vpop.f32.mrb[175].mxu1  ;;  %v8861_v19 = vpop.f32.mrb[175].mxu0 }
0x2399   : > { %v6448_v48 = vsel %vm1531_vm5, %v6394_v62, 0  ;;  %8901 = vmatmul.mubr.msk.bf16.vlgmr.msra.gmra.mrb[184].mxu0 %vm1531_vm5, %v6391_v13 }
0x239a   : > { %8893 = vmatpush3.bf16.xpose.msra.mxu1 %v6448_v48  ;;  %8911 = vmatpush3.bf16.msra.mxu0 %v6677_v47 }
0x239b   : > { %8904 = vmatprep.subr.bf16.mxu1 %v9284_v15  ;;  %8912 = vmatprep.mubr.msk.bf16.mxu0 %vm9285_vm1, %v9284_v15 }
0x239c   : > { %v6153_v20 = vpop.f32.mrb[176].mxu1  ;;  %v10606_v21 = vpop.f32.mrb[176].mxu0  ;;  %8922 = vmatprep.subr.bf16.mxu0 %v9284_v15 }
0x239d   : > { %v8852_v22 = vpop.f32.mrb[177].mxu1  ;;  %v8876_v24 = vpop.f32.mrb[177].mxu0 }
0x239e   : > { %v6156_v31 = vpop.f32.mrb[178].mxu1  ;;  %v10609_v12 = vpop.f32.mrb[178].mxu0 }
0x239f   : > { %v6396_v29 = vpack.c.bf16 %v6156_v31, %v6153_v20  ;;  %v6679_v28 = vpack.c.bf16 %v10609_v12, %v10606_v21  ;;  %v8853_v11 = vpop.f32.mrb[179].mxu1  ;;  %v8877_v18 = vpop.f32.mrb[179].mxu0 }
0x23a1   : > { %v6542_v8 = vsel %vm1531_vm5, %v6396_v29, 0  ;;  %8895 = vmatmul.mubr.msk.bf16.vlgmr.msra.gmra.mrb[188].mxu1 %vm1531_vm5, %v6390_v50 }
0x23a2   : > { %8905 = vmatpush3.bf16.xpose.msra.mxu1 %v6542_v8  ;;  %8906 = vmatprep.mubr.msk.bf16.mxu1 %vm9285_vm1, %v9284_v15 }
0x23a3   : > { %8916 = vmatprep.subr.bf16.mxu1 %v9284_v15 }
0x23a4   : > { %v6276_v30 = vpop.f32.mrb[180].mxu1 }
0x23a5   : > { %v8868_v33 = vpop.f32.mrb[181].mxu1 }
0x23a6   : > { %v6279_v34 = vpop.f32.mrb[182].mxu1 }
0x23a7   : > { %v6678_v10 = vpack.c.bf16 %v6279_v34, %v6276_v30  ;;  %v8869_v35 = vpop.f32.mrb[183].mxu1 }
0x23a9   : > { %8907 = vmatmul.mubr.msk.bf16.vlgmr.msra.gmra.mrb[192].mxu1 %vm1531_vm5, %v6392_v61 }
0x23aa   : > { %8917 = vmatpush3.bf16.msra.mxu1 %v6678_v10  ;;  %8918 = vmatprep.mubr.msk.bf16.mxu1 %vm9285_vm1, %v9284_v15 }
0x23ab   : > { %8928 = vmatprep.subr.bf16.mxu1 %v9284_v15 }
0x23ac   : > { %v10622_v23 = vpop.f32.mrb[184].mxu1 }
0x23ad   : > { %v8884_v13 = vpop.f32.mrb[185].mxu1 }
0x23ae   : > { %v10624_v36 = vpop.f32.mrb[186].mxu1 }
0x23af   : > { %v6680_v37 = vpack.c.bf16 %v10624_v36, %v10622_v23  ;;  %v8885_v38 = vpop.f32.mrb[187].mxu1  ;;  %v7878_v23 = vld [vmem:[%s10796_s10 + $0x18] sm:$0x3] }
0x23b0   : > { %v6870_v36 = vsel %vm1965_vm8, %v7878_v23, 0 }
0x2464   : > { %v6437_v41 = vpop.f32.mrb[180].mxu0 }
0x2465   : > { %v8890_v42 = vpop.f32.mrb[181].mxu0  ;;  %v6585_v43 = vsel %vm745_vm4, %v6437_v41, -inf }
0x2466   : > { %6586 = vmax.xlane.f32.xlu1 %v6585_v43  ;;  %v6440_v45 = vpop.f32.mrb[182].mxu0 }
0x2467   : > { %v8891_v46 = vpop.f32.mrb[183].mxu0  ;;  %v6588_v59 = vsel %vm745_vm4, %v6440_v45, -inf }
0x2468   : > { %6589 = vmax.xlane.f32.xlu0 %v6588_v59 }
0x246c   : > { %v6531_v0 = vpop.f32.mrb[184].mxu0 }
0x246d   : > { %v8902_v49 = vpop.f32.mrb[185].mxu0  ;;  %v6597_v3 = vsel %vm745_vm4, %v6531_v0, -inf }
0x246e   : > { %v6534_v50 = vpop.f32.mrb[186].mxu0 }
0x246f   : > { %v8903_v51 = vpop.f32.mrb[187].mxu0  ;;  %v6600_v57 = vsel %vm745_vm4, %v6534_v50, -inf }
0x2474   : > { %v6484_v52 = vpop.f32.mrb[188].mxu1 }
0x2475   : > { %v8896_v53 = vpop.f32.mrb[189].mxu1  ;;  %v6591_v54 = vsel %vm745_vm4, %v6484_v52, -inf }
0x2476   : > { %6592 = vmax.xlane.f32.xlu1 %v6591_v54  ;;  %v6487_v56 = vpop.f32.mrb[190].mxu1 }
0x2477   : > { %v8897_v60 = vpop.f32.mrb[191].mxu1  ;;  %v6594_v1 = vsel %vm745_vm4, %v6487_v56, -inf }
0x2478   : > { %6595 = vmax.xlane.f32.xlu0 %v6594_v1 }
0x247a   : > { %6598 = vmax.xlane.f32.xlu1 %v6597_v3 }
0x247c   : > { %6601 = vmax.xlane.f32.xlu0 %v6600_v57  ;;  %v6578_v58 = vpop.f32.mrb[192].mxu1 }
0x247d   : > { %v8908_v27 = vpop.f32.mrb[193].mxu1  ;;  %v6603_v32 = vsel %vm745_vm4, %v6578_v58, -inf }
0x247e   : > { %6604 = vmax.xlane.f32.xlu1 %v6603_v32  ;;  %v6581_v61 = vpop.f32.mrb[194].mxu1 }
0x247f   : > { %v8909_v63 = vpop.f32.mrb[195].mxu1  ;;  %v6606_v4 = vsel %vm745_vm4, %v6581_v61, -inf }
0x2480   : > { %6607 = vmax.xlane.f32.xlu0 %v6606_v4 }
0x24f3   : > { %v6587_v5 = vpop.xlane.xlu1 %6586 }
0x24f4   : > { %v6609_v9 = vsub.f32 %v6437_v41, %v6587_v5 }
0x24f5   : > { %v6590_v14 = vpop.xlane.xlu0 %6589 }
0x24f6   : > { %v6617_v16 = vmul.f32 1.442695, %v6609_v9  ;;  %v6610_v55 = vsub.f32 %v6440_v45, %v6590_v14 }
0x24f8   : > { %9230 = vpow2.f32 %v6617_v16  ;;  %v6619_v62 = vmul.f32 1.442695, %v6610_v55 }
0x24fa   : > { %9232 = vpow2.f32 %v6619_v62 }
0x2502   : > { %v9231_v47 = vpop.eup %9230 }
0x2503   : > { %v6593_v17 = vpop.xlane.xlu1 %6592  ;;  %v6633_v19 = vsel %vm745_vm4, %v9231_v47, 0.0 }
0x2504   : > { %v9233_v48 = vpop.eup %9232  ;;  %v6611_v20 = vsub.f32 %v6484_v52, %v6593_v17  ;;  %6634 = vadd.xlane.f32.xlu1 %v6633_v19 }
0x2505   : > { %v6596_v22 = vpop.xlane.xlu0 %6595  ;;  %v6636_v24 = vsel %vm745_vm4, %v9233_v48, 0.0 }
0x2506   : > { %v6621_v31 = vmul.f32 1.442695, %v6611_v20  ;;  %v6612_v29 = vsub.f32 %v6487_v56, %v6596_v22  ;;  %6637 = vadd.xlane.f32.xlu0 %v6636_v24 }
0x2507   : > { %v6599_v11 = vpop.xlane.xlu1 %6598 }
0x2508   : > { %9234 = vpow2.f32 %v6621_v31  ;;  %v6623_v18 = vmul.f32 1.442695, %v6612_v29  ;;  %v6613_v8 = vsub.f32 %v6531_v0, %v6599_v11 }
0x2509   : > { %v6602_v30 = vpop.xlane.xlu0 %6601 }
0x250a   : > { %9236 = vpow2.f32 %v6623_v18  ;;  %v6625_v33 = vmul.f32 1.442695, %v6613_v8  ;;  %v6614_v34 = vsub.f32 %v6534_v50, %v6602_v30  ;;  %v7880_v30 = vld [vmem:[%s10796_s10 + $0x1c] sm:$0x3] }
0x250b   : > { %v6605_v10 = vpop.xlane.xlu1 %6604 }
0x250c   : > { %9238 = vpow2.f32 %v6625_v33  ;;  %v6627_v35 = vmul.f32 1.442695, %v6614_v34  ;;  %v6615_v13 = vsub.f32 %v6578_v58, %v6605_v10 }
0x250d   : > { %v6608_v38 = vpop.xlane.xlu0 %6607 }
0x250e   : > { %9240 = vpow2.f32 %v6627_v35  ;;  %v6629_v41 = vmul.f32 1.442695, %v6615_v13  ;;  %v6616_v42 = vsub.f32 %v6581_v61, %v6608_v38  ;;  %v6964_v13 = vsel %vm1965_vm8, %v7880_v30, 0 }
0x2510   : > { %9242 = vpow2.f32 %v6629_v41  ;;  %v6631_v43 = vmul.f32 1.442695, %v6616_v42  ;;  %v7881_v41 = vld [vmem:[%s10796_s10 + $0x1e] sm:$0x3] }
0x2512   : > { %v9235_v45 = vpop.eup %9234  ;;  %9244 = vpow2.f32 %v6631_v43 }
0x2513   : > { %v6639_v46 = vsel %vm745_vm4, %v9235_v45, 0.0 }
0x2514   : > { %v9237_v59 = vpop.eup %9236  ;;  %6640 = vadd.xlane.f32.xlu1 %v6639_v46 }
0x2515   : > { %v6642_v0 = vsel %vm745_vm4, %v9237_v59, 0.0 }
0x2516   : > { %v9239_v49 = vpop.eup %9238  ;;  %6643 = vadd.xlane.f32.xlu0 %v6642_v0 }
0x2517   : > { %v6645_v50 = vsel %vm745_vm4, %v9239_v49, 0.0 }
0x2518   : > { %v9241_v51 = vpop.eup %9240  ;;  %6646 = vadd.xlane.f32.xlu1 %v6645_v50 }
0x2519   : > { %v6648_v52 = vsel %vm745_vm4, %v9241_v51, 0.0 }
0x251a   : > { %v9243_v53 = vpop.eup %9242  ;;  %6649 = vadd.xlane.f32.xlu0 %v6648_v52 }
0x251b   : > { %v6651_v54 = vsel %vm745_vm4, %v9243_v53, 0.0 }
0x251c   : > { %v9245_v56 = vpop.eup %9244  ;;  %6652 = vadd.xlane.f32.xlu1 %v6651_v54 }
0x251d   : > { %v6654_v60 = vsel %vm745_vm4, %v9245_v56, 0.0 }
0x251e   : > { %6655 = vadd.xlane.f32.xlu0 %v6654_v60 }
0x2591   : > { %v6635_v1 = vpop.xlane.xlu1 %6634 }
0x2592   : > { %9246 = vrcp.f32 %v6635_v1 }
0x2593   : > { %v6638_v3 = vpop.xlane.xlu0 %6637 }
0x2594   : > { %9248 = vrcp.f32 %v6638_v3 }
0x259c   : > { %v9247_v57 = vpop.eup %9246 }
0x259d   : > { %v6665_v27 = vmul.f32 %v9247_v57, %v9231_v47 }
0x259e   : > { %v9249_v58 = vpop.eup %9248 }
0x259f   : > { %v6666_v32 = vmul.f32 %v9249_v58, %v9233_v48 }
0x25a1   : > { %v6641_v61 = vpop.xlane.xlu1 %6640  ;;  %v6673_v63 = vpack.c.bf16 %v6666_v32, %v6665_v27 }
0x25a2   : > { %9250 = vrcp.f32 %v6641_v61 }
0x25a3   : > { %8913 = vmatmul.mubr.msk.bf16.vlgmr.msra.gmra.mrb[188].mxu0 %vm745_vm4, %v6673_v63  ;;  %v6644_v4 = vpop.xlane.xlu0 %6643 }
0x25a4   : > { %8923 = vmatpush3.bf16.msra.mxu0 %v6679_v28  ;;  %9252 = vrcp.f32 %v6644_v4  ;;  %8924 = vmatprep.mubr.msk.bf16.mxu0 %vm9285_vm1, %v9284_v15 }
0x25a5   : > { %v6647_v5 = vpop.xlane.xlu1 %6646  ;;  %8934 = vmatprep.subr.bf16.mxu0 %v9284_v15 }
0x25a6   : > { %9254 = vrcp.f32 %v6647_v5 }
0x25a7   : > { %v6650_v9 = vpop.xlane.xlu0 %6649 }
0x25a8   : > { %9256 = vrcp.f32 %v6650_v9 }
0x25a9   : > { %v6653_v14 = vpop.xlane.xlu1 %6652 }
0x25aa   : > { %9258 = vrcp.f32 %v6653_v14 }
0x25ab   : > { %v6656_v16 = vpop.xlane.xlu0 %6655 }
0x25ac   : > { %v9251_v55 = vpop.eup %9250  ;;  %9260 = vrcp.f32 %v6656_v16 }
0x25ad   : > { %v6667_v47 = vmul.f32 %v9251_v55, %v9235_v45 }
0x25ae   : > { %v9253_v62 = vpop.eup %9252 }
0x25af   : > { %v6668_v17 = vmul.f32 %v9253_v62, %v9237_v59  ;;  %v7011_v59 = vsel %vm1965_vm8, %v7881_v41, 0 }
0x25b0   : > { %v9255_v21 = vpop.eup %9254 }
0x25b1   : > { %v6674_v12 = vpack.c.bf16 %v6668_v17, %v6667_v47  ;;  %v6669_v19 = vmul.f32 %v9255_v21, %v9239_v49 }
0x25b2   : > { %v9257_v28 = vpop.eup %9256 }
0x25b3   : > { %v6670_v48 = vmul.f32 %v9257_v28, %v9241_v51  ;;  %8919 = vmatmul.mubr.msk.bf16.vlgmr.msra.gmra.mrb[196].mxu1 %vm745_vm4, %v6674_v12 }
0x25b4   : > { %v9259_v20 = vpop.eup %9258  ;;  %8929 = vmatpush3.bf16.msra.mxu1 %v6680_v37  ;;  %8930 = vmatprep.mubr.msk.bf16.mxu1 %vm9285_vm1, %v9284_v15  ;;  %v7879_v37 = vld [vmem:[%s10796_s10 + $0x1a] sm:$0x3] }
0x25b5   : > { %v6675_v22 = vpack.c.bf16 %v6670_v48, %v6669_v19  ;;  %8940 = vmatprep.subr.bf16.mxu1 %v9284_v15  ;;  %v6671_v31 = vmul.f32 %v9259_v20, %v9243_v53  ;;  %v6917_v18 = vsel %vm1965_vm8, %v7879_v37, 0 }
0x25b6   : > { %v9261_v24 = vpop.eup %9260 }
0x25b7   : > { %v6672_v29 = vmul.f32 %v9261_v24, %v9245_v56  ;;  %8925 = vmatmul.mubr.msk.bf16.vlgmr.msra.gmra.mrb[192].mxu0 %vm745_vm4, %v6675_v22 }
0x25b8   : > { %8936 = vmatprep.mubr.msk.bf16.mxu0 %vm9285_vm1, %v9284_v15  ;;  %8935 = vmatpush3.bf16.msra.mxu0 %v6870_v36 }
0x25b9   : > { %v6676_v11 = vpack.c.bf16 %v6672_v29, %v6671_v31  ;;  %8946 = vmatprep.subr.bf16.mxu0 %v9284_v15 }
0x25bb   : > { %8931 = vmatmul.mubr.msk.bf16.vlgmr.msra.gmra.mrb[200].mxu1 %vm745_vm4, %v6676_v11  ;;  %v7073_v11 = vrot.slane %v10458_v2, %v9449_v6 }
0x25bc   : > { %8942 = vmatprep.mubr.msk.bf16.mxu1 %vm9285_vm1, %v9284_v15  ;;  %8941 = vmatpush3.bf16.msra.mxu1 %v6917_v18 }
0x25bd   : > { %8952 = vmatprep.subr.bf16.mxu1 %v9284_v15 }
0x2676   : > { %v6718_v8 = vpop.f32.mrb[188].mxu0 }
0x2677   : > { %v8914_v33 = vpop.f32.mrb[189].mxu0 }
0x2678   : > { %v6721_v34 = vpop.f32.mrb[190].mxu0 }
0x2679   : > { %v6857_v10 = vpack.c.bf16 %v6721_v34, %v6718_v8  ;;  %v8915_v35 = vpop.f32.mrb[191].mxu0 }
0x267b   : > { %8937 = vmatmul.mubr.msk.bf16.vlgmr.msra.gmra.mrb[196].mxu0 %vm1531_vm5, %v6857_v10 }
0x267c   : > { %8947 = vmatpush3.bf16.msra.mxu0 %v6964_v13  ;;  %8948 = vmatprep.mubr.msk.bf16.mxu0 %vm9285_vm1, %v9284_v15 }
0x267d   : > { %8958 = vmatprep.subr.bf16.mxu0 %v9284_v15 }
0x2686   : > { %v6762_v38 = vpop.f32.mrb[196].mxu1 }
0x2687   : > { %v8920_v42 = vpop.f32.mrb[197].mxu1 }
0x2688   : > { %v6765_v43 = vpop.f32.mrb[198].mxu1 }
0x2689   : > { %v6858_v45 = vpack.c.bf16 %v6765_v43, %v6762_v38  ;;  %v8921_v46 = vpop.f32.mrb[199].mxu1 }
0x268a   : > { %v6806_v0 = vpop.f32.mrb[192].mxu0 }
0x268b   : > { %v8926_v49 = vpop.f32.mrb[193].mxu0  ;;  %8943 = vmatmul.mubr.msk.bf16.vlgmr.msra.gmra.mrb[204].mxu1 %vm1531_vm5, %v6858_v45 }
0x268c   : > { %v6809_v50 = vpop.f32.mrb[194].mxu0  ;;  %8953 = vmatpush3.bf16.msra.mxu1 %v7011_v59  ;;  %8954 = vmatprep.mubr.msk.bf16.mxu1 %vm9285_vm1, %v9284_v15  ;;  %v9120_v59 = vld [vmem:[%s10798_s12 + $0x30] sm:$0xff]  }
0x268d   : > { %v6859_v51 = vpack.c.bf16 %v6809_v50, %v6806_v0  ;;  %v8927_v52 = vpop.f32.mrb[195].mxu0  ;;  %8966 = vmatprep.subr.bf16.mxu1 %v9284_v15  ;;  %v9121_v0 = vld [vmem:[%s10798_s12 + $0x38] sm:$0xff]  }
0x268e   : > { %v6850_v53 = vpop.f32.mrb[200].mxu1 }
0x268f   : > { %v8932_v54 = vpop.f32.mrb[201].mxu1  ;;  %8949 = vmatmul.mubr.msk.bf16.vlgmr.msra.gmra.mrb[200].mxu0 %vm1531_vm5, %v6859_v51 }
0x2690   : > { %v6853_v56 = vpop.f32.mrb[202].mxu1  ;;  %8962 = vmatprep.mubr.msk.bf16.mxu0 %vm9285_vm1, %v9284_v15  ;;  %8959 = vmatpush3.bf16.msra.mxu0 %v9120_v59 }
0x2691   : > { %v6860_v60 = vpack.c.bf16 %v6853_v56, %v6850_v53  ;;  %v8933_v1 = vpop.f32.mrb[203].mxu1  ;;  %8960 = vmatprep.subr.bf16.mxu0 %v9284_v15  ;;  %v7105_v56 = vrot.slane %v10458_v2, %v9739_v39  ;;  %v9122_v39 = vld [vmem:[%s10800_s14 + $0x60] sm:$0xff]  }
0x2693   : > { %8955 = vmatmul.mubr.msk.bf16.vlgmr.msra.gmra.mrb[208].mxu1 %vm1531_vm5, %v6860_v60 }
0x2694   : > { %8974 = vmatprep.mubr.msk.bf16.mxu1 %vm9285_vm1, %v9284_v15  ;;  %8961 = vmatpush3.bf16.msra.mxu0 %v9121_v0 }
0x2695   : > { %8978 = vmatprep.subr.bf16.mxu0 %v9284_v15  ;;  %8967 = vmatpush3.bf16.msra.mxu1 %v9122_v39  ;;  %v7322_v39 = vsub.s32 6, %v9420_v26 }
0x2696   : > { %8968 = vmatprep.subr.bf16.mxu1 %v9284_v15 }
0x274e   : > { %v6906_v3 = vpop.f32.mrb[196].mxu0 }
0x274f   : > { %v8938_v57 = vpop.f32.mrb[197].mxu0  ;;  %v7054_v61 = vsel %vm692_vm2, %v6906_v3, 0.0 }
0x2750   : > { %v6909_v58 = vpop.f32.mrb[198].mxu0 }
0x2751   : > { %v8939_v27 = vpop.f32.mrb[199].mxu0  ;;  %v7061_v14 = vsel %vm692_vm2, %v6909_v58, 0.0 }
0x2752   : > { %v7111_v27 = vrot.slane %v10458_v2, %v9742_v40  ;;  %v9124_v40 = vld [vmem:[%s10800_s14 + $0x70] sm:$0xff]  }
0x275e   : > { %v6953_v32 = vpop.f32.mrb[204].mxu1 }
0x275f   : > { %v7055_v63 = vsel %vm692_vm2, %v6953_v32, 0.0  ;;  %v8944_v4 = vpop.f32.mrb[205].mxu1 }
0x2760   : > { %v7056_v5 = vadd.f32 %v7055_v63, %v7054_v61  ;;  %v6956_v9 = vpop.f32.mrb[206].mxu1 }
0x2761   : > { %v7062_v16 = vsel %vm692_vm2, %v6956_v9, 0.0  ;;  %v8945_v55 = vpop.f32.mrb[207].mxu1  ;;  %v9125_v9 = vld [vmem:[%s10800_s14 + $0x78] sm:$0xff]  }
0x2762   : > { %v7063_v62 = vadd.f32 %v7062_v16, %v7061_v14  ;;  %v7000_v47 = vpop.f32.mrb[200].mxu0  ;;  %v7891_v14 = vld [vmem:[%s10799_s13 + $0x3] ss:$0 sm:$0xff] }
0x2763   : > { %v7057_v17 = vsel %vm692_vm2, %v7000_v47, 0.0  ;;  %v8950_v21 = vpop.f32.mrb[201].mxu0 }
0x2764   : > { %v7058_v12 = vadd.f32 %v7057_v17, %v7056_v5  ;;  %v7003_v28 = vpop.f32.mrb[202].mxu0  ;;  %v9123_v5 = vld [vmem:[%s10800_s14 + $0x68] sm:$0xff]  }
0x2765   : > { %v7064_v19 = vsel %vm692_vm2, %v7003_v28, 0.0  ;;  %v8951_v48 = vpop.f32.mrb[203].mxu0  ;;  %8969 = vmatpush3.bf16.msra.mxu1 %v9123_v5 }
0x2766   : > { %v7065_v20 = vadd.f32 %v7064_v19, %v7063_v62  ;;  %v7047_v22 = vpop.f32.mrb[208].mxu1  ;;  %8970 = vmatprep.subr.bf16.mxu1 %v9284_v15 }
0x2767   : > { %v7059_v24 = vsel %vm692_vm2, %v7047_v22, 0.0  ;;  %v8956_v31 = vpop.f32.mrb[209].mxu1 }
0x2768   : > { %v7060_v29 = vadd.f32 %v7059_v24, %v7058_v12  ;;  %v7050_v23 = vpop.f32.mrb[210].mxu1 }
0x2769   : > { %v7066_v36 = vsel %vm692_vm2, %v7050_v23, 0.0  ;;  %v8957_v37 = vpop.f32.mrb[211].mxu1  ;;  %8971 = vmatpush3.bf16.msra.mxu1 %v9124_v40 }
0x276a   : > { %v7068_v18 = vadd.f32 %v7060_v29, %v10426_v44  ;;  %v7067_v8 = vadd.f32 %v7066_v36, %v7065_v20  ;;  %8972 = vmatprep.subr.bf16.mxu1 %v9284_v15 }
0x276c   : > { %v10707_v30 = vadd.f32 %v7073_v11, %v7068_v18  ;;  %v7069_v33 = vadd.f32 %v7067_v8, %v10429_v25 }
0x276d   : > { %8973 = vmatpush3.bf16.msra.mxu1 %v9125_v9 }
0x276e   : > { %v7076_v34 = vsel %vm692_vm2, %v10707_v30, 0.0  ;;  %v10712_v10 = vadd.f32 %v7073_v11, %v7069_v33 }
0x276f   : > { %7077 = vadd.xlane.f32.xlu1 %v7076_v34 }
0x2770   : > { %v7079_v6 = vsel %vm692_vm2, %v10712_v10, 0.0 }
0x2771   : > { %7080 = vadd.xlane.f32.xlu0 %v7079_v6 }
0x27fc   : > { %v7078_v35 = vpop.xlane.xlu1 %7077 }
0x27fd   : > { %v7082_v13 = vmul.f32 0.03125, %v7078_v35 }
0x27fe   : > { %v7081_v38 = vpop.xlane.xlu0 %7080 }
0x27ff   : > { %v7084_v44 = vsub.f32 %v10707_v30, %v7082_v13  ;;  %v7083_v41 = vmul.f32 0.03125, %v7081_v38  ;;  %v7285_v13 = vrot.slane %v10458_v2, %v9774_v7 }
0x2801   : > { %v7085_v42 = vsub.f32 %v10712_v10, %v7083_v41  ;;  %v7086_v43 = vmul.f32 %v7084_v44, %v7084_v44 }
0x2803   : > { %v7088_v25 = vsel %vm692_vm2, %v7086_v43, 0.0  ;;  %v7087_v45 = vmul.f32 %v7085_v42, %v7085_v42 }
0x2804   : > { %7089 = vadd.xlane.f32.xlu1 %v7088_v25 }
0x2805   : > { %v7091_v46 = vsel %vm692_vm2, %v7087_v45, 0.0 }
0x2806   : > { %7092 = vadd.xlane.f32.xlu0 %v7091_v46 }
0x2891   : > { %v7090_v49 = vpop.xlane.xlu1 %7089 }
0x2892   : > { %v7094_v50 = vmul.f32 0.03125, %v7090_v49 }
0x2893   : > { %v7093_v51 = vpop.xlane.xlu0 %7092 }
0x2894   : > { %v7096_v52 = vadd.f32 1e-05, %v7094_v50  ;;  %v7095_v53 = vmul.f32 0.03125, %v7093_v51 }
0x2896   : > { %9262 = vrsqrt.f32 %v7096_v52  ;;  %v7097_v54 = vadd.f32 1e-05, %v7095_v53 }
0x2898   : > { %9264 = vrsqrt.f32 %v7097_v54 }
0x28a0   : > { %v9263_v60 = vpop.eup %9262 }
0x28a1   : > { %v7100_v1 = vmul.f32 %v9263_v60, %v7084_v44  ;;  %v9126_v60 = vld [vmem:[%s10801_s15] sm:$0xff]  }
0x28a2   : > { %v9265_v3 = vpop.eup %9264 }
0x28a3   : > { %v7106_v57 = vmul.f32 %v7105_v56, %v7100_v1  ;;  %v7101_v58 = vmul.f32 %v9265_v3, %v7085_v42  ;;  %v9127_v1 = vld [vmem:[%s10801_s15 + $0x8] sm:$0xff]  }
0x28a5   : > { %v7107_v32 = vmul.f32 %v7105_v56, %v7101_v58  ;;  %v7112_v61 = vadd.f32 %v7111_v27, %v7106_v57 }
0x28a7   : > { %v7113_v63 = vadd.f32 %v7111_v27, %v7107_v32 }
0x28a9   : > { %v7114_v4 = vpack.c.bf16 %v7113_v63, %v7112_v61  ;;  %v9275_v63 = vld [vmem:[%s10792_s6] sm:$0xff] }
0x28ab   : > { %8963 = vmatmul.mubr.msk.bf16.vlgmr.msra.gmra.mrb[204].mxu0 %vm692_vm2, %v7114_v4  ;;  %v7317_v4 = vrot.slane %v9275_v63, %v9774_v7 }
0x28ac   : > { %8982 = vmatprep.mubr.msk.bf16.mxu0 %vm9285_vm1, %v9284_v15  ;;  %8979 = vmatpush3.bf16.msra.mxu0 %v9126_v60 }
0x28ad   : > { %8980 = vmatprep.subr.bf16.mxu0 %v9284_v15 }
0x28b0   : > { %8981 = vmatpush3.bf16.msra.mxu0 %v9127_v1 }
0x297e   : > { %v7177_v16 = vpop.f32.mrb[204].mxu0 }
0x297f   : > { %v7178_v55 = vadd.f32 %v7891_v14, %v7177_v16  ;;  %v8964_v62 = vpop.f32.mrb[205].mxu0  ;;  %v7323_v16 = vrot.slane %v9275_v63, %v7322_v39 }
0x2980   : > { %v7180_v47 = vpop.f32.mrb[206].mxu0 }
0x2981   : > { %v7186_v17 = vmul.f32 0.044715, %v7178_v55  ;;  %v7181_v21 = vadd.f32 %v7891_v14, %v7180_v47  ;;  %v8965_v12 = vpop.f32.mrb[207].mxu0  ;;  %v7184_v18 = vmul.f32 0.5, %v7178_v55 }
0x2983   : > { %v7188_v28 = vmul.f32 %v7186_v17, %v7178_v55  ;;  %v7187_v19 = vmul.f32 0.044715, %v7181_v21  ;;  %v7185_v8 = vmul.f32 0.5, %v7181_v21 }
0x2985   : > { %v7190_v48 = vmul.f32 %v7188_v28, %v7178_v55  ;;  %v7189_v20 = vmul.f32 %v7187_v19, %v7181_v21 }
0x2987   : > { %v7192_v22 = vadd.f32 %v7190_v48, %v7178_v55  ;;  %v7191_v24 = vmul.f32 %v7189_v20, %v7181_v21 }
0x2989   : > { %v7194_v31 = vmul.f32 0.7978846, %v7192_v22  ;;  %v7193_v29 = vadd.f32 %v7191_v24, %v7181_v21  ;;  %v7908_v21 = vld [vmem:[%s10802_s16] ss:$0 sm:$0xff] }
0x298b   : > { %9266 = vtanh.f32 %v7194_v31  ;;  %v7195_v11 = vmul.f32 0.7978846, %v7193_v29 }
0x298d   : > { %9268 = vtanh.f32 %v7195_v11 }
0x2995   : > { %v9267_v23 = vpop.eup %9266 }
0x2996   : > { %v7198_v36 = vadd.f32 1.0, %v9267_v23 }
0x2997   : > { %v9269_v37 = vpop.eup %9268 }
0x2998   : > { %v7199_v33 = vadd.f32 1.0, %v9269_v37  ;;  %v7200_v34 = vmul.f32 %v7198_v36, %v7184_v18 }
0x299a   : > { %v7201_v6 = vmul.f32 %v7199_v33, %v7185_v8 }
0x299c   : > { %v7202_v35 = vpack.c.bf16 %v7201_v6, %v7200_v34 }
0x299e   : > { %8975 = vmatmul.mubr.msk.bf16.vlgmr.msra.gmra.mrb[212].mxu1 %vm571_vm0, %v7202_v35 }
0x2a71   : > { %v7273_v38 = vpop.f32.mrb[212].mxu1 }
0x2a72   : > { %v7280_v44 = vadd.f32 %v7273_v38, %v10707_v30  ;;  %v8976_v41 = vpop.f32.mrb[213].mxu1 }
0x2a73   : > { %v7276_v42 = vpop.f32.mrb[214].mxu1 }
0x2a74   : > { %v7286_v43 = vadd.f32 %v7285_v13, %v7280_v44  ;;  %v7281_v25 = vadd.f32 %v7276_v42, %v10712_v10  ;;  %v8977_v45 = vpop.f32.mrb[215].mxu1 }
0x2a76   : > { %v7288_v46 = vsel %vm692_vm2, %v7286_v43, 0.0  ;;  %v7287_v59 = vadd.f32 %v7285_v13, %v7281_v25 }
0x2a77   : > { %7289 = vadd.xlane.f32.xlu1 %v7288_v46 }
0x2a78   : > { %v7291_v0 = vsel %vm692_vm2, %v7287_v59, 0.0 }
0x2a79   : > { %7292 = vadd.xlane.f32.xlu0 %v7291_v0 }
0x2b04   : > { %v7290_v49 = vpop.xlane.xlu1 %7289 }
0x2b05   : > { %v7294_v50 = vmul.f32 0.03125, %v7290_v49 }
0x2b06   : > { %v7293_v51 = vpop.xlane.xlu0 %7292 }
0x2b07   : > { %v7296_v2 = vsub.f32 %v7286_v43, %v7294_v50  ;;  %v7295_v52 = vmul.f32 0.03125, %v7293_v51 }
0x2b09   : > { %v7297_v53 = vsub.f32 %v7287_v59, %v7295_v52  ;;  %v7298_v30 = vmul.f32 %v7296_v2, %v7296_v2 }
0x2b0b   : > { %v7300_v54 = vsel %vm692_vm2, %v7298_v30, 0.0  ;;  %v7299_v56 = vmul.f32 %v7297_v53, %v7297_v53 }
0x2b0c   : > { %7301 = vadd.xlane.f32.xlu1 %v7300_v54 }
0x2b0d   : > { %v7303_v10 = vsel %vm692_vm2, %v7299_v56, 0.0 }
0x2b0e   : > { %7304 = vadd.xlane.f32.xlu0 %v7303_v10 }
0x2b99   : > { %v7302_v3 = vpop.xlane.xlu1 %7301 }
0x2b9a   : > { %v7306_v57 = vmul.f32 0.03125, %v7302_v3 }
0x2b9b   : > { %v7305_v58 = vpop.xlane.xlu0 %7304 }
0x2b9c   : > { %v7308_v27 = vadd.f32 1e-05, %v7306_v57  ;;  %v7307_v32 = vmul.f32 0.03125, %v7305_v58 }
0x2b9e   : > { %9270 = vrsqrt.f32 %v7308_v27  ;;  %v7309_v61 = vadd.f32 1e-05, %v7307_v32 }
0x2ba0   : > { %9272 = vrsqrt.f32 %v7309_v61 }
0x2ba8   : > { %v9271_v5 = vpop.eup %9270 }
0x2ba9   : > { %v7312_v15 = vmul.f32 %v9271_v5, %v7296_v2 }
0x2baa   : > { %v9273_v40 = vpop.eup %9272 }
0x2bab   : > { %v7318_v9 = vmul.f32 %v7317_v4, %v7312_v15  ;;  %v7313_v14 = vmul.f32 %v9273_v40, %v7297_v53 }
0x2bad   : > { %v7319_v55 = vmul.f32 %v7317_v4, %v7313_v14  ;;  %v7324_v62 = vadd.f32 %v7323_v16, %v7318_v9 }
0x2baf   : > { %v7325_v47 = vadd.f32 %v7323_v16, %v7319_v55 }
0x2bb1   : > { %v7326_v17 = vpack.c.bf16 %v7325_v47, %v7324_v62 }
0x2bb3   : > { %8983 = vmatmul.mubr.msk.bf16.vlgmr.msra.gmra.mrb[208].mxu0 %vm692_vm2, %v7326_v17 }
0x2c86   : > { %v7387_v26 = vpop.f32.mrb[208].mxu0 }
0x2c87   : > { %v7388_v7 = vadd.f32 %v7908_v21, %v7387_v26  ;;  %v8984_v12 = vpop.f32.mrb[209].mxu0 }
0x2c88   : > { %v7390_v28 = vpop.f32.mrb[210].mxu0 }
0x2c89   : > { %7394 = vst [vmem:[%s565_s18] sm:$0xff] %v7388_v7  ;;  %v7391_v19 = vadd.f32 %v7908_v21, %v7390_v28  ;;  %v8985_v48 = vpop.f32.mrb[211].mxu0 }
0x2c8b   : > { %7395 = vst [vmem:[%s565_s18 + $0x8] sm:$0xff] %v7391_v19 }
0x2c8c PF: > { %s27_s24 = sadd.s32 1, %s9282_s24  }
0x2c8d   : > { %p24_p4 = scmp.ge.s32.totalorder %s27_s24, 4  }
0x2c8f   :  { %26 = sbr.rel (!%p24_p4) target bundleno = 3 (0x3), region = 145 }

</bundles_post_ra>
